<compile_context>
chip_gen: v7x
topology: tpu7x:2x2x1
jax: 0.10.0
libtpu: 0.0.40
codegen_flags: <defaults>
</compile_context>

<pallas_src>
import jax
import jax.numpy as jnp
import numpy as np
from jax.experimental import pallas as pl
from jax.experimental.pallas import tpu as pltpu  # noqa: F401  (TPU backend)


def _lstm_cell(gates, c_prev, H):
    """One LSTM cell update. `gates` is (B, 4H) in PyTorch order [i|f|g|o]."""
    sig = jax.nn.sigmoid(gates)          # full-width EUP op
    th = jnp.tanh(gates)                 # full-width EUP op
    i_g = sig[:, 0:H]
    f_g = sig[:, H:2 * H]
    g_g = th[:, 2 * H:3 * H]
    o_g = sig[:, 3 * H:4 * H]
    c_new = f_g * c_prev + i_g * g_g
    h_new = o_g * jnp.tanh(c_new)
    return h_new, c_new


def lstm_kernel(x_ref, w0_ref, whh0_ref, wcomb_ref, bias_ref, wout_ref,
                bout_ref, out_ref):
    """Single invocation; whole problem lives in VMEM.

    x_ref    : (B, T, E)       batch-first input (native layout)
    w0_ref   : (E, 4H)         layer-0 W_ih^T
    whh0_ref : (H, 4H)         layer-0 W_hh^T
    wcomb_ref: (L-1, 2H, 4H)   layers 1..L-1: stacked [W_ih^T ; W_hh^T]
    bias_ref : (L, 4H)         b_ih + b_hh per layer
    wout_ref : (H, 1)          hidden2perf W^T
    bout_ref : (1, 1)          hidden2perf bias
    out_ref  : (B, 1)          prediction
    """
    B, T, E = x_ref.shape
    L, H4 = bias_ref.shape
    H = H4 // 4

    bias = bias_ref[...]                              # (L, 4H), loaded once

    # Layer-0 input projection for ALL timesteps in one MXU call (independent
    # of the recurrent state), layer-0 bias folded in.
    x_all = x_ref[...].astype(jnp.float32).reshape(B * T, E)
    gi0 = jnp.dot(x_all, w0_ref[...], preferred_element_type=jnp.float32)
    gi0 = (gi0 + bias[0][None, :]).reshape(B, T, H4)  # (B, T, 4H)

    whh0 = whh0_ref[...]                              # (H, 4H), loaded once
    # Hoist per-layer bias broadcasts out of the unrolled time loop.
    b_rows = [jnp.broadcast_to(bias[l][None, :], (B, H4)) for l in range(1, L)]

    h = [jnp.zeros((B, H), jnp.float32) for _ in range(L)]
    c = [jnp.zeros((B, H), jnp.float32) for _ in range(L)]

    for t in range(T):                # fully unrolled: no per-step grid overhead
        # ---- layer 0: only the recurrent matmul sits on the serial path.
        gates = gi0[:, t, :] + jnp.dot(h[0], whh0,
                                       preferred_element_type=jnp.float32)
        h[0], c[0] = _lstm_cell(gates, c[0], H)
        # ---- layers 1..L-1: one fused matmul on [x, h_prev] per layer.
        for l in range(1, L):
            xh = jnp.concatenate([h[l - 1], h[l]], axis=-1)       # (B, 2H)
            gates = jnp.dot(xh, wcomb_ref[l - 1],
                            preferred_element_type=jnp.float32) + b_rows[l - 1]
            h[l], c[l] = _lstm_cell(gates, c[l], H)

    # hidden2perf on the top layer's last hidden state
    # (== lstm_out.transpose(0,1)[-1] in the PyTorch module).
    perf = jnp.dot(h[L - 1], wout_ref[...],
                   preferred_element_type=jnp.float32) + bout_ref[...]
    out_ref[...] = perf.astype(out_ref.dtype)


def conv_perf_predictor_forward(features, packed):
    """features: (B, T, E) float32 (PyTorch batch_first layout, kept as-is)."""
    B, T, E = features.shape
    return pl.pallas_call(
        lstm_kernel,
        out_shape=jax.ShapeDtypeStruct((B, 1), jnp.float32),
        # No grid: single invocation; every operand is a full-array VMEM block.
    )(features.astype(jnp.float32), packed["w0"], packed["whh0"],
      packed["wcomb"], packed["bias"], packed["wout_t"], packed["bout"])


def init_params(key, embedding_dim, hidden_dim, num_layers):
    """Deterministic init mimicking PyTorch's uniform(-1/sqrt(H), 1/sqrt(H))."""
    H, E, L = hidden_dim, embedding_dim, num_layers
    bound = 1.0 / np.sqrt(H)
    keys = jax.random.split(key, 7)
    u = lambda k, shape: jax.random.uniform(k, shape, jnp.float32, -bound, bound)
    return {
        "wih0_t": u(keys[0], (E, 4 * H)),                     # layer 0: W_ih^T
        "wih_t":  u(keys[1], (L - 1, H, 4 * H)),              # layers 1..: W_ih^T
        "whh_t":  u(keys[2], (L, H, 4 * H)),                  # W_hh^T
        "bias":   u(keys[3], (L, 4 * H)) + u(keys[4], (L, 4 * H)),  # b_ih + b_hh
        "wout_t": u(keys[5], (H, 1)),                         # hidden2perf W^T
        "bout":   u(keys[6], (1, 1)),                         # hidden2perf b
    }


def pack_params(params):
    """One-time host-side re-layout: pre-stack [W_ih^T ; W_hh^T] per upper layer."""
    wcomb = jnp.concatenate([params["wih_t"], params["whh_t"][1:]], axis=1)
    return {
        "w0": params["wih0_t"],          # (E, 4H)
        "whh0": params["whh_t"][0],      # (H, 4H)
        "wcomb": wcomb,                  # (L-1, 2H, 4H)
        "bias": params["bias"],          # (L, 4H)
        "wout_t": params["wout_t"],      # (H, 1)
        "bout": params["bout"],          # (1, 1)
    }


def lstm_reference(features, params):
    """Pure-JAX reference of the same forward (eval mode)."""
    B, T, E = features.shape
    L, H, _ = params["whh_t"].shape
    h0 = jnp.zeros((L, B, H), jnp.float32)
    c0 = jnp.zeros((L, B, H), jnp.float32)

    def step(carry, xt):
        h, c = carry
        inp = xt
        hs, cs = [], []
        for l in range(L):
            wih = params["wih0_t"] if l == 0 else params["wih_t"][l - 1]
            gates = inp @ wih + h[l] @ params["whh_t"][l] + params["bias"][l]
            i_g = jax.nn.sigmoid(gates[:, 0:H])
            f_g = jax.nn.sigmoid(gates[:, H:2 * H])
            g_g = jnp.tanh(gates[:, 2 * H:3 * H])
            o_g = jax.nn.sigmoid(gates[:, 3 * H:4 * H])
            cn = f_g * c[l] + i_g * g_g
            hn = o_g * jnp.tanh(cn)
            hs.append(hn)
            cs.append(cn)
            inp = hn
        return (jnp.stack(hs), jnp.stack(cs)), inp

    (_, _), outs = jax.lax.scan(step, (h0, c0),
                                jnp.transpose(features, (1, 0, 2)))
    last = outs[-1]                            # (B, H) == lstm_out[:, -1, :]
    return last @ params["wout_t"] + params["bout"]


if __name__ == "__main__":
    # Small shapes consistent with the module: batch=2, seq=8,
    # embedding_dim=32, hidden_dim=32, num_layers=4.
    B, T, E, H, L = 2, 8, 32, 32, 4

    key = jax.random.PRNGKey(0)
    k_x, k_p = jax.random.split(key)
    features = jax.random.normal(k_x, (B, T, E), jnp.float32)
    params = init_params(k_p, E, H, L)
    packed = pack_params(params)

    perf = conv_perf_predictor_forward(features, packed)
    perf = jax.block_until_ready(perf)

    ref = jax.block_until_ready(lstm_reference(features, params))
    assert perf.shape == (B, 1)
    np.testing.assert_allclose(np.asarray(perf), np.asarray(ref),
                               rtol=1e-4, atol=1e-5)

    print("KERNEL_OK")
</pallas_src>

<mosaic_0001>
module attributes {stable_mosaic.version = 11 : i64} {
  func.func @lstm_kernel(%arg0: memref<2x8x32xf32, #tpu.memory_space<vmem>>, %arg1: memref<32x128xf32, #tpu.memory_space<vmem>>, %arg2: memref<32x128xf32, #tpu.memory_space<vmem>>, %arg3: memref<3x64x128xf32, #tpu.memory_space<vmem>>, %arg4: memref<4x128xf32, #tpu.memory_space<vmem>>, %arg5: memref<32x1xf32, #tpu.memory_space<vmem>>, %arg6: memref<1x1xf32, #tpu.memory_space<vmem>>, %arg7: memref<2x1xf32, #tpu.memory_space<vmem>>) attributes {dimension_semantics = [], scalar_prefetch = 0 : i64, scratch_operands = 0 : i64, tpu.core_type = #tpu.core_type<tc>} {
    %c0 = arith.constant 0 : index
    %c0_0 = arith.constant 0 : index
    %0 = vector.load %arg4[%c0, %c0_0] : memref<4x128xf32, #tpu.memory_space<vmem>>, vector<4x128xf32>
    %c0_1 = arith.constant 0 : index
    %c0_2 = arith.constant 0 : index
    %c0_3 = arith.constant 0 : index
    %1 = vector.load %arg0[%c0_1, %c0_2, %c0_3] : memref<2x8x32xf32, #tpu.memory_space<vmem>>, vector<2x8x32xf32>
    %2 = vector.shape_cast %1 : vector<2x8x32xf32> to vector<16x32xf32>
    %c0_4 = arith.constant 0 : index
    %c0_5 = arith.constant 0 : index
    %3 = vector.load %arg1[%c0_4, %c0_5] : memref<32x128xf32, #tpu.memory_space<vmem>>, vector<32x128xf32>
    %cst = arith.constant dense<0.000000e+00> : vector<16x128xf32>
    %4 = tpu.matmul %2, %3, %cst {dimension_numbers = #tpu.dot_dimension_numbers<[1], [0], [0], [1], [0, 0, 1, 1], [], []>} : vector<16x32xf32>, vector<32x128xf32>, vector<16x128xf32> -> vector<16x128xf32>
    %5 = vector.extract_strided_slice %0 {offsets = [0, 0], sizes = [1, 128], strides = [1, 1]} : vector<4x128xf32> to vector<1x128xf32>
    %6 = vector.shape_cast %5 : vector<1x128xf32> to vector<128xf32>
    %7 = vector.shape_cast %6 : vector<128xf32> to vector<1x128xf32>
    %8 = vector.broadcast %7 : vector<1x128xf32> to vector<16x128xf32>
    %9 = arith.addf %4, %8 : vector<16x128xf32>
    %10 = vector.shape_cast %9 : vector<16x128xf32> to vector<2x8x128xf32>
    %c0_6 = arith.constant 0 : index
    %c0_7 = arith.constant 0 : index
    %11 = vector.load %arg2[%c0_6, %c0_7] : memref<32x128xf32, #tpu.memory_space<vmem>>, vector<32x128xf32>
    %12 = vector.extract_strided_slice %0 {offsets = [1, 0], sizes = [1, 128], strides = [1, 1]} : vector<4x128xf32> to vector<1x128xf32>
    %13 = vector.shape_cast %12 : vector<1x128xf32> to vector<128xf32>
    %14 = vector.shape_cast %13 : vector<128xf32> to vector<1x128xf32>
    %15 = vector.shape_cast %14 : vector<1x128xf32> to vector<1x128xf32>
    %16 = vector.broadcast %15 : vector<1x128xf32> to vector<2x128xf32>
    %17 = vector.extract_strided_slice %0 {offsets = [2, 0], sizes = [1, 128], strides = [1, 1]} : vector<4x128xf32> to vector<1x128xf32>
    %18 = vector.shape_cast %17 : vector<1x128xf32> to vector<128xf32>
    %19 = vector.shape_cast %18 : vector<128xf32> to vector<1x128xf32>
    %20 = vector.shape_cast %19 : vector<1x128xf32> to vector<1x128xf32>
    %21 = vector.broadcast %20 : vector<1x128xf32> to vector<2x128xf32>
    %22 = vector.extract_strided_slice %0 {offsets = [3, 0], sizes = [1, 128], strides = [1, 1]} : vector<4x128xf32> to vector<1x128xf32>
    %23 = vector.shape_cast %22 : vector<1x128xf32> to vector<128xf32>
    %24 = vector.shape_cast %23 : vector<128xf32> to vector<1x128xf32>
    %25 = vector.shape_cast %24 : vector<1x128xf32> to vector<1x128xf32>
    %26 = vector.broadcast %25 : vector<1x128xf32> to vector<2x128xf32>
    %cst_8 = arith.constant 0.000000e+00 : f32
    %27 = vector.broadcast %cst_8 : f32 to vector<2x32xf32>
    %cst_9 = arith.constant 0.000000e+00 : f32
    %28 = vector.broadcast %cst_9 : f32 to vector<2x32xf32>
    %cst_10 = arith.constant 0.000000e+00 : f32
    %29 = vector.broadcast %cst_10 : f32 to vector<2x32xf32>
    %cst_11 = arith.constant 0.000000e+00 : f32
    %30 = vector.broadcast %cst_11 : f32 to vector<2x32xf32>
    %cst_12 = arith.constant 0.000000e+00 : f32
    %31 = vector.broadcast %cst_12 : f32 to vector<2x32xf32>
    %cst_13 = arith.constant 0.000000e+00 : f32
    %32 = vector.broadcast %cst_13 : f32 to vector<2x32xf32>
    %cst_14 = arith.constant 0.000000e+00 : f32
    %33 = vector.broadcast %cst_14 : f32 to vector<2x32xf32>
    %cst_15 = arith.constant 0.000000e+00 : f32
    %34 = vector.broadcast %cst_15 : f32 to vector<2x32xf32>
    %35 = vector.extract_strided_slice %10 {offsets = [0, 0, 0], sizes = [2, 1, 128], strides = [1, 1, 1]} : vector<2x8x128xf32> to vector<2x1x128xf32>
    %36 = vector.shape_cast %35 : vector<2x1x128xf32> to vector<2x128xf32>
    %cst_16 = arith.constant dense<0.000000e+00> : vector<2x128xf32>
    %37 = tpu.matmul %27, %11, %cst_16 {dimension_numbers = #tpu.dot_dimension_numbers<[1], [0], [0], [1], [0, 0, 1, 1], [], []>} : vector<2x32xf32>, vector<32x128xf32>, vector<2x128xf32> -> vector<2x128xf32>
    %38 = arith.addf %36, %37 : vector<2x128xf32>
    %39 = arith.negf %38 : vector<2x128xf32>
    %40 = math.exp %39 : vector<2x128xf32>
    %cst_17 = arith.constant 1.000000e+00 : f32
    %41 = vector.broadcast %cst_17 : f32 to vector<2x128xf32>
    %42 = arith.addf %41, %40 : vector<2x128xf32>
    %43 = arith.divf %41, %42 : vector<2x128xf32>
    %44 = math.tanh %38 : vector<2x128xf32>
    %45 = vector.extract_strided_slice %43 {offsets = [0, 0], sizes = [2, 32], strides = [1, 1]} : vector<2x128xf32> to vector<2x32xf32>
    %46 = vector.extract_strided_slice %43 {offsets = [0, 32], sizes = [2, 32], strides = [1, 1]} : vector<2x128xf32> to vector<2x32xf32>
    %47 = vector.extract_strided_slice %44 {offsets = [0, 64], sizes = [2, 32], strides = [1, 1]} : vector<2x128xf32> to vector<2x32xf32>
    %48 = vector.extract_strided_slice %43 {offsets = [0, 96], sizes = [2, 32], strides = [1, 1]} : vector<2x128xf32> to vector<2x32xf32>
    %49 = arith.mulf %46, %31 : vector<2x32xf32>
    %50 = arith.mulf %45, %47 : vector<2x32xf32>
    %51 = arith.addf %49, %50 : vector<2x32xf32>
    %52 = math.tanh %51 : vector<2x32xf32>
    %53 = arith.mulf %48, %52 : vector<2x32xf32>
    %54 = tpu.concatenate %53, %28 in 1 : vector<2x32xf32>, vector<2x32xf32> -> vector<2x64xf32>
    %c0_18 = arith.constant 0 : index
    %c0_19 = arith.constant 0 : index
    %c0_20 = arith.constant 0 : index
    %55 = vector.load %arg3[%c0_18, %c0_19, %c0_20] : memref<3x64x128xf32, #tpu.memory_space<vmem>>, vector<1x64x128xf32>
    %56 = vector.shape_cast %55 : vector<1x64x128xf32> to vector<64x128xf32>
    %cst_21 = arith.constant dense<0.000000e+00> : vector<2x128xf32>
    %57 = tpu.matmul %54, %56, %cst_21 {dimension_numbers = #tpu.dot_dimension_numbers<[1], [0], [0], [1], [0, 0, 1, 1], [], []>} : vector<2x64xf32>, vector<64x128xf32>, vector<2x128xf32> -> vector<2x128xf32>
    %58 = arith.addf %57, %16 : vector<2x128xf32>
    %59 = arith.negf %58 : vector<2x128xf32>
    %60 = math.exp %59 : vector<2x128xf32>
    %cst_22 = arith.constant 1.000000e+00 : f32
    %61 = vector.broadcast %cst_22 : f32 to vector<2x128xf32>
    %62 = arith.addf %61, %60 : vector<2x128xf32>
    %63 = arith.divf %61, %62 : vector<2x128xf32>
    %64 = math.tanh %58 : vector<2x128xf32>
    %65 = vector.extract_strided_slice %63 {offsets = [0, 0], sizes = [2, 32], strides = [1, 1]} : vector<2x128xf32> to vector<2x32xf32>
    %66 = vector.extract_strided_slice %63 {offsets = [0, 32], sizes = [2, 32], strides = [1, 1]} : vector<2x128xf32> to vector<2x32xf32>
    %67 = vector.extract_strided_slice %64 {offsets = [0, 64], sizes = [2, 32], strides = [1, 1]} : vector<2x128xf32> to vector<2x32xf32>
    %68 = vector.extract_strided_slice %63 {offsets = [0, 96], sizes = [2, 32], strides = [1, 1]} : vector<2x128xf32> to vector<2x32xf32>
    %69 = arith.mulf %66, %32 : vector<2x32xf32>
    %70 = arith.mulf %65, %67 : vector<2x32xf32>
    %71 = arith.addf %69, %70 : vector<2x32xf32>
    %72 = math.tanh %71 : vector<2x32xf32>
    %73 = arith.mulf %68, %72 : vector<2x32xf32>
    %74 = tpu.concatenate %73, %29 in 1 : vector<2x32xf32>, vector<2x32xf32> -> vector<2x64xf32>
    %c1 = arith.constant 1 : index
    %c0_23 = arith.constant 0 : index
    %c0_24 = arith.constant 0 : index
    %75 = vector.load %arg3[%c1, %c0_23, %c0_24] : memref<3x64x128xf32, #tpu.memory_space<vmem>>, vector<1x64x128xf32>
    %76 = vector.shape_cast %75 : vector<1x64x128xf32> to vector<64x128xf32>
    %cst_25 = arith.constant dense<0.000000e+00> : vector<2x128xf32>
    %77 = tpu.matmul %74, %76, %cst_25 {dimension_numbers = #tpu.dot_dimension_numbers<[1], [0], [0], [1], [0, 0, 1, 1], [], []>} : vector<2x64xf32>, vector<64x128xf32>, vector<2x128xf32> -> vector<2x128xf32>
    %78 = arith.addf %77, %21 : vector<2x128xf32>
    %79 = arith.negf %78 : vector<2x128xf32>
    %80 = math.exp %79 : vector<2x128xf32>
    %cst_26 = arith.constant 1.000000e+00 : f32
    %81 = vector.broadcast %cst_26 : f32 to vector<2x128xf32>
    %82 = arith.addf %81, %80 : vector<2x128xf32>
    %83 = arith.divf %81, %82 : vector<2x128xf32>
    %84 = math.tanh %78 : vector<2x128xf32>
    %85 = vector.extract_strided_slice %83 {offsets = [0, 0], sizes = [2, 32], strides = [1, 1]} : vector<2x128xf32> to vector<2x32xf32>
    %86 = vector.extract_strided_slice %83 {offsets = [0, 32], sizes = [2, 32], strides = [1, 1]} : vector<2x128xf32> to vector<2x32xf32>
    %87 = vector.extract_strided_slice %84 {offsets = [0, 64], sizes = [2, 32], strides = [1, 1]} : vector<2x128xf32> to vector<2x32xf32>
    %88 = vector.extract_strided_slice %83 {offsets = [0, 96], sizes = [2, 32], strides = [1, 1]} : vector<2x128xf32> to vector<2x32xf32>
    %89 = arith.mulf %86, %33 : vector<2x32xf32>
    %90 = arith.mulf %85, %87 : vector<2x32xf32>
    %91 = arith.addf %89, %90 : vector<2x32xf32>
    %92 = math.tanh %91 : vector<2x32xf32>
    %93 = arith.mulf %88, %92 : vector<2x32xf32>
    %94 = tpu.concatenate %93, %30 in 1 : vector<2x32xf32>, vector<2x32xf32> -> vector<2x64xf32>
    %c2 = arith.constant 2 : index
    %c0_27 = arith.constant 0 : index
    %c0_28 = arith.constant 0 : index
    %95 = vector.load %arg3[%c2, %c0_27, %c0_28] : memref<3x64x128xf32, #tpu.memory_space<vmem>>, vector<1x64x128xf32>
    %96 = vector.shape_cast %95 : vector<1x64x128xf32> to vector<64x128xf32>
    %cst_29 = arith.constant dense<0.000000e+00> : vector<2x128xf32>
    %97 = tpu.matmul %94, %96, %cst_29 {dimension_numbers = #tpu.dot_dimension_numbers<[1], [0], [0], [1], [0, 0, 1, 1], [], []>} : vector<2x64xf32>, vector<64x128xf32>, vector<2x128xf32> -> vector<2x128xf32>
    %98 = arith.addf %97, %26 : vector<2x128xf32>
    %99 = arith.negf %98 : vector<2x128xf32>
    %100 = math.exp %99 : vector<2x128xf32>
    %cst_30 = arith.constant 1.000000e+00 : f32
    %101 = vector.broadcast %cst_30 : f32 to vector<2x128xf32>
    %102 = arith.addf %101, %100 : vector<2x128xf32>
    %103 = arith.divf %101, %102 : vector<2x128xf32>
    %104 = math.tanh %98 : vector<2x128xf32>
    %105 = vector.extract_strided_slice %103 {offsets = [0, 0], sizes = [2, 32], strides = [1, 1]} : vector<2x128xf32> to vector<2x32xf32>
    %106 = vector.extract_strided_slice %103 {offsets = [0, 32], sizes = [2, 32], strides = [1, 1]} : vector<2x128xf32> to vector<2x32xf32>
    %107 = vector.extract_strided_slice %104 {offsets = [0, 64], sizes = [2, 32], strides = [1, 1]} : vector<2x128xf32> to vector<2x32xf32>
    %108 = vector.extract_strided_slice %103 {offsets = [0, 96], sizes = [2, 32], strides = [1, 1]} : vector<2x128xf32> to vector<2x32xf32>
    %109 = arith.mulf %106, %34 : vector<2x32xf32>
    %110 = arith.mulf %105, %107 : vector<2x32xf32>
    %111 = arith.addf %109, %110 : vector<2x32xf32>
    %112 = math.tanh %111 : vector<2x32xf32>
    %113 = arith.mulf %108, %112 : vector<2x32xf32>
    %114 = vector.extract_strided_slice %10 {offsets = [0, 1, 0], sizes = [2, 1, 128], strides = [1, 1, 1]} : vector<2x8x128xf32> to vector<2x1x128xf32>
    %115 = vector.shape_cast %114 : vector<2x1x128xf32> to vector<2x128xf32>
    %cst_31 = arith.constant dense<0.000000e+00> : vector<2x128xf32>
    %116 = tpu.matmul %53, %11, %cst_31 {dimension_numbers = #tpu.dot_dimension_numbers<[1], [0], [0], [1], [0, 0, 1, 1], [], []>} : vector<2x32xf32>, vector<32x128xf32>, vector<2x128xf32> -> vector<2x128xf32>
    %117 = arith.addf %115, %116 : vector<2x128xf32>
    %118 = arith.negf %117 : vector<2x128xf32>
    %119 = math.exp %118 : vector<2x128xf32>
    %cst_32 = arith.constant 1.000000e+00 : f32
    %120 = vector.broadcast %cst_32 : f32 to vector<2x128xf32>
    %121 = arith.addf %120, %119 : vector<2x128xf32>
    %122 = arith.divf %120, %121 : vector<2x128xf32>
    %123 = math.tanh %117 : vector<2x128xf32>
    %124 = vector.extract_strided_slice %122 {offsets = [0, 0], sizes = [2, 32], strides = [1, 1]} : vector<2x128xf32> to vector<2x32xf32>
    %125 = vector.extract_strided_slice %122 {offsets = [0, 32], sizes = [2, 32], strides = [1, 1]} : vector<2x128xf32> to vector<2x32xf32>
    %126 = vector.extract_strided_slice %123 {offsets = [0, 64], sizes = [2, 32], strides = [1, 1]} : vector<2x128xf32> to vector<2x32xf32>
    %127 = vector.extract_strided_slice %122 {offsets = [0, 96], sizes = [2, 32], strides = [1, 1]} : vector<2x128xf32> to vector<2x32xf32>
    %128 = arith.mulf %125, %51 : vector<2x32xf32>
    %129 = arith.mulf %124, %126 : vector<2x32xf32>
    %130 = arith.addf %128, %129 : vector<2x32xf32>
    %131 = math.tanh %130 : vector<2x32xf32>
    %132 = arith.mulf %127, %131 : vector<2x32xf32>
    %133 = tpu.concatenate %132, %73 in 1 : vector<2x32xf32>, vector<2x32xf32> -> vector<2x64xf32>
    %c0_33 = arith.constant 0 : index
    %c0_34 = arith.constant 0 : index
    %c0_35 = arith.constant 0 : index
    %134 = vector.load %arg3[%c0_33, %c0_34, %c0_35] : memref<3x64x128xf32, #tpu.memory_space<vmem>>, vector<1x64x128xf32>
    %135 = vector.shape_cast %134 : vector<1x64x128xf32> to vector<64x128xf32>
    %cst_36 = arith.constant dense<0.000000e+00> : vector<2x128xf32>
    %136 = tpu.matmul %133, %135, %cst_36 {dimension_numbers = #tpu.dot_dimension_numbers<[1], [0], [0], [1], [0, 0, 1, 1], [], []>} : vector<2x64xf32>, vector<64x128xf32>, vector<2x128xf32> -> vector<2x128xf32>
    %137 = arith.addf %136, %16 : vector<2x128xf32>
    %138 = arith.negf %137 : vector<2x128xf32>
    %139 = math.exp %138 : vector<2x128xf32>
    %cst_37 = arith.constant 1.000000e+00 : f32
    %140 = vector.broadcast %cst_37 : f32 to vector<2x128xf32>
    %141 = arith.addf %140, %139 : vector<2x128xf32>
    %142 = arith.divf %140, %141 : vector<2x128xf32>
    %143 = math.tanh %137 : vector<2x128xf32>
    %144 = vector.extract_strided_slice %142 {offsets = [0, 0], sizes = [2, 32], strides = [1, 1]} : vector<2x128xf32> to vector<2x32xf32>
    %145 = vector.extract_strided_slice %142 {offsets = [0, 32], sizes = [2, 32], strides = [1, 1]} : vector<2x128xf32> to vector<2x32xf32>
    %146 = vector.extract_strided_slice %143 {offsets = [0, 64], sizes = [2, 32], strides = [1, 1]} : vector<2x128xf32> to vector<2x32xf32>
    %147 = vector.extract_strided_slice %142 {offsets = [0, 96], sizes = [2, 32], strides = [1, 1]} : vector<2x128xf32> to vector<2x32xf32>
    %148 = arith.mulf %145, %71 : vector<2x32xf32>
    %149 = arith.mulf %144, %146 : vector<2x32xf32>
    %150 = arith.addf %148, %149 : vector<2x32xf32>
    %151 = math.tanh %150 : vector<2x32xf32>
    %152 = arith.mulf %147, %151 : vector<2x32xf32>
    %153 = tpu.concatenate %152, %93 in 1 : vector<2x32xf32>, vector<2x32xf32> -> vector<2x64xf32>
    %c1_38 = arith.constant 1 : index
    %c0_39 = arith.constant 0 : index
    %c0_40 = arith.constant 0 : index
    %154 = vector.load %arg3[%c1_38, %c0_39, %c0_40] : memref<3x64x128xf32, #tpu.memory_space<vmem>>, vector<1x64x128xf32>
    %155 = vector.shape_cast %154 : vector<1x64x128xf32> to vector<64x128xf32>
    %cst_41 = arith.constant dense<0.000000e+00> : vector<2x128xf32>
    %156 = tpu.matmul %153, %155, %cst_41 {dimension_numbers = #tpu.dot_dimension_numbers<[1], [0], [0], [1], [0, 0, 1, 1], [], []>} : vector<2x64xf32>, vector<64x128xf32>, vector<2x128xf32> -> vector<2x128xf32>
    %157 = arith.addf %156, %21 : vector<2x128xf32>
    %158 = arith.negf %157 : vector<2x128xf32>
    %159 = math.exp %158 : vector<2x128xf32>
    %cst_42 = arith.constant 1.000000e+00 : f32
    %160 = vector.broadcast %cst_42 : f32 to vector<2x128xf32>
    %161 = arith.addf %160, %159 : vector<2x128xf32>
    %162 = arith.divf %160, %161 : vector<2x128xf32>
    %163 = math.tanh %157 : vector<2x128xf32>
    %164 = vector.extract_strided_slice %162 {offsets = [0, 0], sizes = [2, 32], strides = [1, 1]} : vector<2x128xf32> to vector<2x32xf32>
    %165 = vector.extract_strided_slice %162 {offsets = [0, 32], sizes = [2, 32], strides = [1, 1]} : vector<2x128xf32> to vector<2x32xf32>
    %166 = vector.extract_strided_slice %163 {offsets = [0, 64], sizes = [2, 32], strides = [1, 1]} : vector<2x128xf32> to vector<2x32xf32>
    %167 = vector.extract_strided_slice %162 {offsets = [0, 96], sizes = [2, 32], strides = [1, 1]} : vector<2x128xf32> to vector<2x32xf32>
    %168 = arith.mulf %165, %91 : vector<2x32xf32>
    %169 = arith.mulf %164, %166 : vector<2x32xf32>
    %170 = arith.addf %168, %169 : vector<2x32xf32>
    %171 = math.tanh %170 : vector<2x32xf32>
    %172 = arith.mulf %167, %171 : vector<2x32xf32>
    %173 = tpu.concatenate %172, %113 in 1 : vector<2x32xf32>, vector<2x32xf32> -> vector<2x64xf32>
    %c2_43 = arith.constant 2 : index
    %c0_44 = arith.constant 0 : index
    %c0_45 = arith.constant 0 : index
    %174 = vector.load %arg3[%c2_43, %c0_44, %c0_45] : memref<3x64x128xf32, #tpu.memory_space<vmem>>, vector<1x64x128xf32>
    %175 = vector.shape_cast %174 : vector<1x64x128xf32> to vector<64x128xf32>
    %cst_46 = arith.constant dense<0.000000e+00> : vector<2x128xf32>
    %176 = tpu.matmul %173, %175, %cst_46 {dimension_numbers = #tpu.dot_dimension_numbers<[1], [0], [0], [1], [0, 0, 1, 1], [], []>} : vector<2x64xf32>, vector<64x128xf32>, vector<2x128xf32> -> vector<2x128xf32>
    %177 = arith.addf %176, %26 : vector<2x128xf32>
    %178 = arith.negf %177 : vector<2x128xf32>
    %179 = math.exp %178 : vector<2x128xf32>
    %cst_47 = arith.constant 1.000000e+00 : f32
    %180 = vector.broadcast %cst_47 : f32 to vector<2x128xf32>
    %181 = arith.addf %180, %179 : vector<2x128xf32>
    %182 = arith.divf %180, %181 : vector<2x128xf32>
    %183 = math.tanh %177 : vector<2x128xf32>
    %184 = vector.extract_strided_slice %182 {offsets = [0, 0], sizes = [2, 32], strides = [1, 1]} : vector<2x128xf32> to vector<2x32xf32>
    %185 = vector.extract_strided_slice %182 {offsets = [0, 32], sizes = [2, 32], strides = [1, 1]} : vector<2x128xf32> to vector<2x32xf32>
    %186 = vector.extract_strided_slice %183 {offsets = [0, 64], sizes = [2, 32], strides = [1, 1]} : vector<2x128xf32> to vector<2x32xf32>
    %187 = vector.extract_strided_slice %182 {offsets = [0, 96], sizes = [2, 32], strides = [1, 1]} : vector<2x128xf32> to vector<2x32xf32>
    %188 = arith.mulf %185, %111 : vector<2x32xf32>
    %189 = arith.mulf %184, %186 : vector<2x32xf32>
    %190 = arith.addf %188, %189 : vector<2x32xf32>
    %191 = math.tanh %190 : vector<2x32xf32>
    %192 = arith.mulf %187, %191 : vector<2x32xf32>
    %193 = vector.extract_strided_slice %10 {offsets = [0, 2, 0], sizes = [2, 1, 128], strides = [1, 1, 1]} : vector<2x8x128xf32> to vector<2x1x128xf32>
    %194 = vector.shape_cast %193 : vector<2x1x128xf32> to vector<2x128xf32>
    %cst_48 = arith.constant dense<0.000000e+00> : vector<2x128xf32>
    %195 = tpu.matmul %132, %11, %cst_48 {dimension_numbers = #tpu.dot_dimension_numbers<[1], [0], [0], [1], [0, 0, 1, 1], [], []>} : vector<2x32xf32>, vector<32x128xf32>, vector<2x128xf32> -> vector<2x128xf32>
    %196 = arith.addf %194, %195 : vector<2x128xf32>
    %197 = arith.negf %196 : vector<2x128xf32>
    %198 = math.exp %197 : vector<2x128xf32>
    %cst_49 = arith.constant 1.000000e+00 : f32
    %199 = vector.broadcast %cst_49 : f32 to vector<2x128xf32>
    %200 = arith.addf %199, %198 : vector<2x128xf32>
    %201 = arith.divf %199, %200 : vector<2x128xf32>
    %202 = math.tanh %196 : vector<2x128xf32>
    %203 = vector.extract_strided_slice %201 {offsets = [0, 0], sizes = [2, 32], strides = [1, 1]} : vector<2x128xf32> to vector<2x32xf32>
    %204 = vector.extract_strided_slice %201 {offsets = [0, 32], sizes = [2, 32], strides = [1, 1]} : vector<2x128xf32> to vector<2x32xf32>
    %205 = vector.extract_strided_slice %202 {offsets = [0, 64], sizes = [2, 32], strides = [1, 1]} : vector<2x128xf32> to vector<2x32xf32>
    %206 = vector.extract_strided_slice %201 {offsets = [0, 96], sizes = [2, 32], strides = [1, 1]} : vector<2x128xf32> to vector<2x32xf32>
    %207 = arith.mulf %204, %130 : vector<2x32xf32>
    %208 = arith.mulf %203, %205 : vector<2x32xf32>
    %209 = arith.addf %207, %208 : vector<2x32xf32>
    %210 = math.tanh %209 : vector<2x32xf32>
    %211 = arith.mulf %206, %210 : vector<2x32xf32>
    %212 = tpu.concatenate %211, %152 in 1 : vector<2x32xf32>, vector<2x32xf32> -> vector<2x64xf32>
    %c0_50 = arith.constant 0 : index
    %c0_51 = arith.constant 0 : index
    %c0_52 = arith.constant 0 : index
    %213 = vector.load %arg3[%c0_50, %c0_51, %c0_52] : memref<3x64x128xf32, #tpu.memory_space<vmem>>, vector<1x64x128xf32>
    %214 = vector.shape_cast %213 : vector<1x64x128xf32> to vector<64x128xf32>
    %cst_53 = arith.constant dense<0.000000e+00> : vector<2x128xf32>
    %215 = tpu.matmul %212, %214, %cst_53 {dimension_numbers = #tpu.dot_dimension_numbers<[1], [0], [0], [1], [0, 0, 1, 1], [], []>} : vector<2x64xf32>, vector<64x128xf32>, vector<2x128xf32> -> vector<2x128xf32>
    %216 = arith.addf %215, %16 : vector<2x128xf32>
    %217 = arith.negf %216 : vector<2x128xf32>
    %218 = math.exp %217 : vector<2x128xf32>
    %cst_54 = arith.constant 1.000000e+00 : f32
    %219 = vector.broadcast %cst_54 : f32 to vector<2x128xf32>
    %220 = arith.addf %219, %218 : vector<2x128xf32>
    %221 = arith.divf %219, %220 : vector<2x128xf32>
    %222 = math.tanh %216 : vector<2x128xf32>
    %223 = vector.extract_strided_slice %221 {offsets = [0, 0], sizes = [2, 32], strides = [1, 1]} : vector<2x128xf32> to vector<2x32xf32>
    %224 = vector.extract_strided_slice %221 {offsets = [0, 32], sizes = [2, 32], strides = [1, 1]} : vector<2x128xf32> to vector<2x32xf32>
    %225 = vector.extract_strided_slice %222 {offsets = [0, 64], sizes = [2, 32], strides = [1, 1]} : vector<2x128xf32> to vector<2x32xf32>
    %226 = vector.extract_strided_slice %221 {offsets = [0, 96], sizes = [2, 32], strides = [1, 1]} : vector<2x128xf32> to vector<2x32xf32>
    %227 = arith.mulf %224, %150 : vector<2x32xf32>
    %228 = arith.mulf %223, %225 : vector<2x32xf32>
    %229 = arith.addf %227, %228 : vector<2x32xf32>
    %230 = math.tanh %229 : vector<2x32xf32>
    %231 = arith.mulf %226, %230 : vector<2x32xf32>
    %232 = tpu.concatenate %231, %172 in 1 : vector<2x32xf32>, vector<2x32xf32> -> vector<2x64xf32>
    %c1_55 = arith.constant 1 : index
    %c0_56 = arith.constant 0 : index
    %c0_57 = arith.constant 0 : index
    %233 = vector.load %arg3[%c1_55, %c0_56, %c0_57] : memref<3x64x128xf32, #tpu.memory_space<vmem>>, vector<1x64x128xf32>
    %234 = vector.shape_cast %233 : vector<1x64x128xf32> to vector<64x128xf32>
    %cst_58 = arith.constant dense<0.000000e+00> : vector<2x128xf32>
    %235 = tpu.matmul %232, %234, %cst_58 {dimension_numbers = #tpu.dot_dimension_numbers<[1], [0], [0], [1], [0, 0, 1, 1], [], []>} : vector<2x64xf32>, vector<64x128xf32>, vector<2x128xf32> -> vector<2x128xf32>
    %236 = arith.addf %235, %21 : vector<2x128xf32>
    %237 = arith.negf %236 : vector<2x128xf32>
    %238 = math.exp %237 : vector<2x128xf32>
    %cst_59 = arith.constant 1.000000e+00 : f32
    %239 = vector.broadcast %cst_59 : f32 to vector<2x128xf32>
    %240 = arith.addf %239, %238 : vector<2x128xf32>
    %241 = arith.divf %239, %240 : vector<2x128xf32>
    %242 = math.tanh %236 : vector<2x128xf32>
    %243 = vector.extract_strided_slice %241 {offsets = [0, 0], sizes = [2, 32], strides = [1, 1]} : vector<2x128xf32> to vector<2x32xf32>
    %244 = vector.extract_strided_slice %241 {offsets = [0, 32], sizes = [2, 32], strides = [1, 1]} : vector<2x128xf32> to vector<2x32xf32>
    %245 = vector.extract_strided_slice %242 {offsets = [0, 64], sizes = [2, 32], strides = [1, 1]} : vector<2x128xf32> to vector<2x32xf32>
    %246 = vector.extract_strided_slice %241 {offsets = [0, 96], sizes = [2, 32], strides = [1, 1]} : vector<2x128xf32> to vector<2x32xf32>
    %247 = arith.mulf %244, %170 : vector<2x32xf32>
    %248 = arith.mulf %243, %245 : vector<2x32xf32>
    %249 = arith.addf %247, %248 : vector<2x32xf32>
    %250 = math.tanh %249 : vector<2x32xf32>
    %251 = arith.mulf %246, %250 : vector<2x32xf32>
    %252 = tpu.concatenate %251, %192 in 1 : vector<2x32xf32>, vector<2x32xf32> -> vector<2x64xf32>
    %c2_60 = arith.constant 2 : index
    %c0_61 = arith.constant 0 : index
    %c0_62 = arith.constant 0 : index
    %253 = vector.load %arg3[%c2_60, %c0_61, %c0_62] : memref<3x64x128xf32, #tpu.memory_space<vmem>>, vector<1x64x128xf32>
    %254 = vector.shape_cast %253 : vector<1x64x128xf32> to vector<64x128xf32>
    %cst_63 = arith.constant dense<0.000000e+00> : vector<2x128xf32>
    %255 = tpu.matmul %252, %254, %cst_63 {dimension_numbers = #tpu.dot_dimension_numbers<[1], [0], [0], [1], [0, 0, 1, 1], [], []>} : vector<2x64xf32>, vector<64x128xf32>, vector<2x128xf32> -> vector<2x128xf32>
    %256 = arith.addf %255, %26 : vector<2x128xf32>
    %257 = arith.negf %256 : vector<2x128xf32>
    %258 = math.exp %257 : vector<2x128xf32>
    %cst_64 = arith.constant 1.000000e+00 : f32
    %259 = vector.broadcast %cst_64 : f32 to vector<2x128xf32>
    %260 = arith.addf %259, %258 : vector<2x128xf32>
    %261 = arith.divf %259, %260 : vector<2x128xf32>
    %262 = math.tanh %256 : vector<2x128xf32>
    %263 = vector.extract_strided_slice %261 {offsets = [0, 0], sizes = [2, 32], strides = [1, 1]} : vector<2x128xf32> to vector<2x32xf32>
    %264 = vector.extract_strided_slice %261 {offsets = [0, 32], sizes = [2, 32], strides = [1, 1]} : vector<2x128xf32> to vector<2x32xf32>
    %265 = vector.extract_strided_slice %262 {offsets = [0, 64], sizes = [2, 32], strides = [1, 1]} : vector<2x128xf32> to vector<2x32xf32>
    %266 = vector.extract_strided_slice %261 {offsets = [0, 96], sizes = [2, 32], strides = [1, 1]} : vector<2x128xf32> to vector<2x32xf32>
    %267 = arith.mulf %264, %190 : vector<2x32xf32>
    %268 = arith.mulf %263, %265 : vector<2x32xf32>
    %269 = arith.addf %267, %268 : vector<2x32xf32>
    %270 = math.tanh %269 : vector<2x32xf32>
    %271 = arith.mulf %266, %270 : vector<2x32xf32>
    %272 = vector.extract_strided_slice %10 {offsets = [0, 3, 0], sizes = [2, 1, 128], strides = [1, 1, 1]} : vector<2x8x128xf32> to vector<2x1x128xf32>
    %273 = vector.shape_cast %272 : vector<2x1x128xf32> to vector<2x128xf32>
    %cst_65 = arith.constant dense<0.000000e+00> : vector<2x128xf32>
    %274 = tpu.matmul %211, %11, %cst_65 {dimension_numbers = #tpu.dot_dimension_numbers<[1], [0], [0], [1], [0, 0, 1, 1], [], []>} : vector<2x32xf32>, vector<32x128xf32>, vector<2x128xf32> -> vector<2x128xf32>
    %275 = arith.addf %273, %274 : vector<2x128xf32>
    %276 = arith.negf %275 : vector<2x128xf32>
    %277 = math.exp %276 : vector<2x128xf32>
    %cst_66 = arith.constant 1.000000e+00 : f32
    %278 = vector.broadcast %cst_66 : f32 to vector<2x128xf32>
    %279 = arith.addf %278, %277 : vector<2x128xf32>
    %280 = arith.divf %278, %279 : vector<2x128xf32>
    %281 = math.tanh %275 : vector<2x128xf32>
    %282 = vector.extract_strided_slice %280 {offsets = [0, 0], sizes = [2, 32], strides = [1, 1]} : vector<2x128xf32> to vector<2x32xf32>
    %283 = vector.extract_strided_slice %280 {offsets = [0, 32], sizes = [2, 32], strides = [1, 1]} : vector<2x128xf32> to vector<2x32xf32>
    %284 = vector.extract_strided_slice %281 {offsets = [0, 64], sizes = [2, 32], strides = [1, 1]} : vector<2x128xf32> to vector<2x32xf32>
    %285 = vector.extract_strided_slice %280 {offsets = [0, 96], sizes = [2, 32], strides = [1, 1]} : vector<2x128xf32> to vector<2x32xf32>
    %286 = arith.mulf %283, %209 : vector<2x32xf32>
    %287 = arith.mulf %282, %284 : vector<2x32xf32>
    %288 = arith.addf %286, %287 : vector<2x32xf32>
    %289 = math.tanh %288 : vector<2x32xf32>
    %290 = arith.mulf %285, %289 : vector<2x32xf32>
    %291 = tpu.concatenate %290, %231 in 1 : vector<2x32xf32>, vector<2x32xf32> -> vector<2x64xf32>
    %c0_67 = arith.constant 0 : index
    %c0_68 = arith.constant 0 : index
    %c0_69 = arith.constant 0 : index
    %292 = vector.load %arg3[%c0_67, %c0_68, %c0_69] : memref<3x64x128xf32, #tpu.memory_space<vmem>>, vector<1x64x128xf32>
    %293 = vector.shape_cast %292 : vector<1x64x128xf32> to vector<64x128xf32>
    %cst_70 = arith.constant dense<0.000000e+00> : vector<2x128xf32>
    %294 = tpu.matmul %291, %293, %cst_70 {dimension_numbers = #tpu.dot_dimension_numbers<[1], [0], [0], [1], [0, 0, 1, 1], [], []>} : vector<2x64xf32>, vector<64x128xf32>, vector<2x128xf32> -> vector<2x128xf32>
    %295 = arith.addf %294, %16 : vector<2x128xf32>
    %296 = arith.negf %295 : vector<2x128xf32>
    %297 = math.exp %296 : vector<2x128xf32>
    %cst_71 = arith.constant 1.000000e+00 : f32
    %298 = vector.broadcast %cst_71 : f32 to vector<2x128xf32>
    %299 = arith.addf %298, %297 : vector<2x128xf32>
    %300 = arith.divf %298, %299 : vector<2x128xf32>
    %301 = math.tanh %295 : vector<2x128xf32>
    %302 = vector.extract_strided_slice %300 {offsets = [0, 0], sizes = [2, 32], strides = [1, 1]} : vector<2x128xf32> to vector<2x32xf32>
    %303 = vector.extract_strided_slice %300 {offsets = [0, 32], sizes = [2, 32], strides = [1, 1]} : vector<2x128xf32> to vector<2x32xf32>
    %304 = vector.extract_strided_slice %301 {offsets = [0, 64], sizes = [2, 32], strides = [1, 1]} : vector<2x128xf32> to vector<2x32xf32>
    %305 = vector.extract_strided_slice %300 {offsets = [0, 96], sizes = [2, 32], strides = [1, 1]} : vector<2x128xf32> to vector<2x32xf32>
    %306 = arith.mulf %303, %229 : vector<2x32xf32>
    %307 = arith.mulf %302, %304 : vector<2x32xf32>
    %308 = arith.addf %306, %307 : vector<2x32xf32>
    %309 = math.tanh %308 : vector<2x32xf32>
    %310 = arith.mulf %305, %309 : vector<2x32xf32>
    %311 = tpu.concatenate %310, %251 in 1 : vector<2x32xf32>, vector<2x32xf32> -> vector<2x64xf32>
    %c1_72 = arith.constant 1 : index
    %c0_73 = arith.constant 0 : index
    %c0_74 = arith.constant 0 : index
    %312 = vector.load %arg3[%c1_72, %c0_73, %c0_74] : memref<3x64x128xf32, #tpu.memory_space<vmem>>, vector<1x64x128xf32>
    %313 = vector.shape_cast %312 : vector<1x64x128xf32> to vector<64x128xf32>
    %cst_75 = arith.constant dense<0.000000e+00> : vector<2x128xf32>
    %314 = tpu.matmul %311, %313, %cst_75 {dimension_numbers = #tpu.dot_dimension_numbers<[1], [0], [0], [1], [0, 0, 1, 1], [], []>} : vector<2x64xf32>, vector<64x128xf32>, vector<2x128xf32> -> vector<2x128xf32>
    %315 = arith.addf %314, %21 : vector<2x128xf32>
    %316 = arith.negf %315 : vector<2x128xf32>
    %317 = math.exp %316 : vector<2x128xf32>
    %cst_76 = arith.constant 1.000000e+00 : f32
    %318 = vector.broadcast %cst_76 : f32 to vector<2x128xf32>
    %319 = arith.addf %318, %317 : vector<2x128xf32>
    %320 = arith.divf %318, %319 : vector<2x128xf32>
    %321 = math.tanh %315 : vector<2x128xf32>
    %322 = vector.extract_strided_slice %320 {offsets = [0, 0], sizes = [2, 32], strides = [1, 1]} : vector<2x128xf32> to vector<2x32xf32>
    %323 = vector.extract_strided_slice %320 {offsets = [0, 32], sizes = [2, 32], strides = [1, 1]} : vector<2x128xf32> to vector<2x32xf32>
    %324 = vector.extract_strided_slice %321 {offsets = [0, 64], sizes = [2, 32], strides = [1, 1]} : vector<2x128xf32> to vector<2x32xf32>
    %325 = vector.extract_strided_slice %320 {offsets = [0, 96], sizes = [2, 32], strides = [1, 1]} : vector<2x128xf32> to vector<2x32xf32>
    %326 = arith.mulf %323, %249 : vector<2x32xf32>
    %327 = arith.mulf %322, %324 : vector<2x32xf32>
    %328 = arith.addf %326, %327 : vector<2x32xf32>
    %329 = math.tanh %328 : vector<2x32xf32>
    %330 = arith.mulf %325, %329 : vector<2x32xf32>
    %331 = tpu.concatenate %330, %271 in 1 : vector<2x32xf32>, vector<2x32xf32> -> vector<2x64xf32>
    %c2_77 = arith.constant 2 : index
    %c0_78 = arith.constant 0 : index
    %c0_79 = arith.constant 0 : index
    %332 = vector.load %arg3[%c2_77, %c0_78, %c0_79] : memref<3x64x128xf32, #tpu.memory_space<vmem>>, vector<1x64x128xf32>
    %333 = vector.shape_cast %332 : vector<1x64x128xf32> to vector<64x128xf32>
    %cst_80 = arith.constant dense<0.000000e+00> : vector<2x128xf32>
    %334 = tpu.matmul %331, %333, %cst_80 {dimension_numbers = #tpu.dot_dimension_numbers<[1], [0], [0], [1], [0, 0, 1, 1], [], []>} : vector<2x64xf32>, vector<64x128xf32>, vector<2x128xf32> -> vector<2x128xf32>
    %335 = arith.addf %334, %26 : vector<2x128xf32>
    %336 = arith.negf %335 : vector<2x128xf32>
    %337 = math.exp %336 : vector<2x128xf32>
    %cst_81 = arith.constant 1.000000e+00 : f32
    %338 = vector.broadcast %cst_81 : f32 to vector<2x128xf32>
    %339 = arith.addf %338, %337 : vector<2x128xf32>
    %340 = arith.divf %338, %339 : vector<2x128xf32>
    %341 = math.tanh %335 : vector<2x128xf32>
    %342 = vector.extract_strided_slice %340 {offsets = [0, 0], sizes = [2, 32], strides = [1, 1]} : vector<2x128xf32> to vector<2x32xf32>
    %343 = vector.extract_strided_slice %340 {offsets = [0, 32], sizes = [2, 32], strides = [1, 1]} : vector<2x128xf32> to vector<2x32xf32>
    %344 = vector.extract_strided_slice %341 {offsets = [0, 64], sizes = [2, 32], strides = [1, 1]} : vector<2x128xf32> to vector<2x32xf32>
    %345 = vector.extract_strided_slice %340 {offsets = [0, 96], sizes = [2, 32], strides = [1, 1]} : vector<2x128xf32> to vector<2x32xf32>
    %346 = arith.mulf %343, %269 : vector<2x32xf32>
    %347 = arith.mulf %342, %344 : vector<2x32xf32>
    %348 = arith.addf %346, %347 : vector<2x32xf32>
    %349 = math.tanh %348 : vector<2x32xf32>
    %350 = arith.mulf %345, %349 : vector<2x32xf32>
    %351 = vector.extract_strided_slice %10 {offsets = [0, 4, 0], sizes = [2, 1, 128], strides = [1, 1, 1]} : vector<2x8x128xf32> to vector<2x1x128xf32>
    %352 = vector.shape_cast %351 : vector<2x1x128xf32> to vector<2x128xf32>
    %cst_82 = arith.constant dense<0.000000e+00> : vector<2x128xf32>
    %353 = tpu.matmul %290, %11, %cst_82 {dimension_numbers = #tpu.dot_dimension_numbers<[1], [0], [0], [1], [0, 0, 1, 1], [], []>} : vector<2x32xf32>, vector<32x128xf32>, vector<2x128xf32> -> vector<2x128xf32>
    %354 = arith.addf %352, %353 : vector<2x128xf32>
    %355 = arith.negf %354 : vector<2x128xf32>
    %356 = math.exp %355 : vector<2x128xf32>
    %cst_83 = arith.constant 1.000000e+00 : f32
    %357 = vector.broadcast %cst_83 : f32 to vector<2x128xf32>
    %358 = arith.addf %357, %356 : vector<2x128xf32>
    %359 = arith.divf %357, %358 : vector<2x128xf32>
    %360 = math.tanh %354 : vector<2x128xf32>
    %361 = vector.extract_strided_slice %359 {offsets = [0, 0], sizes = [2, 32], strides = [1, 1]} : vector<2x128xf32> to vector<2x32xf32>
    %362 = vector.extract_strided_slice %359 {offsets = [0, 32], sizes = [2, 32], strides = [1, 1]} : vector<2x128xf32> to vector<2x32xf32>
    %363 = vector.extract_strided_slice %360 {offsets = [0, 64], sizes = [2, 32], strides = [1, 1]} : vector<2x128xf32> to vector<2x32xf32>
    %364 = vector.extract_strided_slice %359 {offsets = [0, 96], sizes = [2, 32], strides = [1, 1]} : vector<2x128xf32> to vector<2x32xf32>
    %365 = arith.mulf %362, %288 : vector<2x32xf32>
    %366 = arith.mulf %361, %363 : vector<2x32xf32>
    %367 = arith.addf %365, %366 : vector<2x32xf32>
    %368 = math.tanh %367 : vector<2x32xf32>
    %369 = arith.mulf %364, %368 : vector<2x32xf32>
    %370 = tpu.concatenate %369, %310 in 1 : vector<2x32xf32>, vector<2x32xf32> -> vector<2x64xf32>
    %c0_84 = arith.constant 0 : index
    %c0_85 = arith.constant 0 : index
    %c0_86 = arith.constant 0 : index
    %371 = vector.load %arg3[%c0_84, %c0_85, %c0_86] : memref<3x64x128xf32, #tpu.memory_space<vmem>>, vector<1x64x128xf32>
    %372 = vector.shape_cast %371 : vector<1x64x128xf32> to vector<64x128xf32>
    %cst_87 = arith.constant dense<0.000000e+00> : vector<2x128xf32>
    %373 = tpu.matmul %370, %372, %cst_87 {dimension_numbers = #tpu.dot_dimension_numbers<[1], [0], [0], [1], [0, 0, 1, 1], [], []>} : vector<2x64xf32>, vector<64x128xf32>, vector<2x128xf32> -> vector<2x128xf32>
    %374 = arith.addf %373, %16 : vector<2x128xf32>
    %375 = arith.negf %374 : vector<2x128xf32>
    %376 = math.exp %375 : vector<2x128xf32>
    %cst_88 = arith.constant 1.000000e+00 : f32
    %377 = vector.broadcast %cst_88 : f32 to vector<2x128xf32>
    %378 = arith.addf %377, %376 : vector<2x128xf32>
    %379 = arith.divf %377, %378 : vector<2x128xf32>
    %380 = math.tanh %374 : vector<2x128xf32>
    %381 = vector.extract_strided_slice %379 {offsets = [0, 0], sizes = [2, 32], strides = [1, 1]} : vector<2x128xf32> to vector<2x32xf32>
    %382 = vector.extract_strided_slice %379 {offsets = [0, 32], sizes = [2, 32], strides = [1, 1]} : vector<2x128xf32> to vector<2x32xf32>
    %383 = vector.extract_strided_slice %380 {offsets = [0, 64], sizes = [2, 32], strides = [1, 1]} : vector<2x128xf32> to vector<2x32xf32>
    %384 = vector.extract_strided_slice %379 {offsets = [0, 96], sizes = [2, 32], strides = [1, 1]} : vector<2x128xf32> to vector<2x32xf32>
    %385 = arith.mulf %382, %308 : vector<2x32xf32>
    %386 = arith.mulf %381, %383 : vector<2x32xf32>
    %387 = arith.addf %385, %386 : vector<2x32xf32>
    %388 = math.tanh %387 : vector<2x32xf32>
    %389 = arith.mulf %384, %388 : vector<2x32xf32>
    %390 = tpu.concatenate %389, %330 in 1 : vector<2x32xf32>, vector<2x32xf32> -> vector<2x64xf32>
    %c1_89 = arith.constant 1 : index
    %c0_90 = arith.constant 0 : index
    %c0_91 = arith.constant 0 : index
    %391 = vector.load %arg3[%c1_89, %c0_90, %c0_91] : memref<3x64x128xf32, #tpu.memory_space<vmem>>, vector<1x64x128xf32>
    %392 = vector.shape_cast %391 : vector<1x64x128xf32> to vector<64x128xf32>
    %cst_92 = arith.constant dense<0.000000e+00> : vector<2x128xf32>
    %393 = tpu.matmul %390, %392, %cst_92 {dimension_numbers = #tpu.dot_dimension_numbers<[1], [0], [0], [1], [0, 0, 1, 1], [], []>} : vector<2x64xf32>, vector<64x128xf32>, vector<2x128xf32> -> vector<2x128xf32>
    %394 = arith.addf %393, %21 : vector<2x128xf32>
    %395 = arith.negf %394 : vector<2x128xf32>
    %396 = math.exp %395 : vector<2x128xf32>
    %cst_93 = arith.constant 1.000000e+00 : f32
    %397 = vector.broadcast %cst_93 : f32 to vector<2x128xf32>
    %398 = arith.addf %397, %396 : vector<2x128xf32>
    %399 = arith.divf %397, %398 : vector<2x128xf32>
    %400 = math.tanh %394 : vector<2x128xf32>
    %401 = vector.extract_strided_slice %399 {offsets = [0, 0], sizes = [2, 32], strides = [1, 1]} : vector<2x128xf32> to vector<2x32xf32>
    %402 = vector.extract_strided_slice %399 {offsets = [0, 32], sizes = [2, 32], strides = [1, 1]} : vector<2x128xf32> to vector<2x32xf32>
    %403 = vector.extract_strided_slice %400 {offsets = [0, 64], sizes = [2, 32], strides = [1, 1]} : vector<2x128xf32> to vector<2x32xf32>
    %404 = vector.extract_strided_slice %399 {offsets = [0, 96], sizes = [2, 32], strides = [1, 1]} : vector<2x128xf32> to vector<2x32xf32>
    %405 = arith.mulf %402, %328 : vector<2x32xf32>
    %406 = arith.mulf %401, %403 : vector<2x32xf32>
    %407 = arith.addf %405, %406 : vector<2x32xf32>
    %408 = math.tanh %407 : vector<2x32xf32>
    %409 = arith.mulf %404, %408 : vector<2x32xf32>
    %410 = tpu.concatenate %409, %350 in 1 : vector<2x32xf32>, vector<2x32xf32> -> vector<2x64xf32>
    %c2_94 = arith.constant 2 : index
    %c0_95 = arith.constant 0 : index
    %c0_96 = arith.constant 0 : index
    %411 = vector.load %arg3[%c2_94, %c0_95, %c0_96] : memref<3x64x128xf32, #tpu.memory_space<vmem>>, vector<1x64x128xf32>
    %412 = vector.shape_cast %411 : vector<1x64x128xf32> to vector<64x128xf32>
    %cst_97 = arith.constant dense<0.000000e+00> : vector<2x128xf32>
    %413 = tpu.matmul %410, %412, %cst_97 {dimension_numbers = #tpu.dot_dimension_numbers<[1], [0], [0], [1], [0, 0, 1, 1], [], []>} : vector<2x64xf32>, vector<64x128xf32>, vector<2x128xf32> -> vector<2x128xf32>
    %414 = arith.addf %413, %26 : vector<2x128xf32>
    %415 = arith.negf %414 : vector<2x128xf32>
    %416 = math.exp %415 : vector<2x128xf32>
    %cst_98 = arith.constant 1.000000e+00 : f32
    %417 = vector.broadcast %cst_98 : f32 to vector<2x128xf32>
    %418 = arith.addf %417, %416 : vector<2x128xf32>
    %419 = arith.divf %417, %418 : vector<2x128xf32>
    %420 = math.tanh %414 : vector<2x128xf32>
    %421 = vector.extract_strided_slice %419 {offsets = [0, 0], sizes = [2, 32], strides = [1, 1]} : vector<2x128xf32> to vector<2x32xf32>
    %422 = vector.extract_strided_slice %419 {offsets = [0, 32], sizes = [2, 32], strides = [1, 1]} : vector<2x128xf32> to vector<2x32xf32>
    %423 = vector.extract_strided_slice %420 {offsets = [0, 64], sizes = [2, 32], strides = [1, 1]} : vector<2x128xf32> to vector<2x32xf32>
    %424 = vector.extract_strided_slice %419 {offsets = [0, 96], sizes = [2, 32], strides = [1, 1]} : vector<2x128xf32> to vector<2x32xf32>
    %425 = arith.mulf %422, %348 : vector<2x32xf32>
    %426 = arith.mulf %421, %423 : vector<2x32xf32>
    %427 = arith.addf %425, %426 : vector<2x32xf32>
    %428 = math.tanh %427 : vector<2x32xf32>
    %429 = arith.mulf %424, %428 : vector<2x32xf32>
    %430 = vector.extract_strided_slice %10 {offsets = [0, 5, 0], sizes = [2, 1, 128], strides = [1, 1, 1]} : vector<2x8x128xf32> to vector<2x1x128xf32>
    %431 = vector.shape_cast %430 : vector<2x1x128xf32> to vector<2x128xf32>
    %cst_99 = arith.constant dense<0.000000e+00> : vector<2x128xf32>
    %432 = tpu.matmul %369, %11, %cst_99 {dimension_numbers = #tpu.dot_dimension_numbers<[1], [0], [0], [1], [0, 0, 1, 1], [], []>} : vector<2x32xf32>, vector<32x128xf32>, vector<2x128xf32> -> vector<2x128xf32>
    %433 = arith.addf %431, %432 : vector<2x128xf32>
    %434 = arith.negf %433 : vector<2x128xf32>
    %435 = math.exp %434 : vector<2x128xf32>
    %cst_100 = arith.constant 1.000000e+00 : f32
    %436 = vector.broadcast %cst_100 : f32 to vector<2x128xf32>
    %437 = arith.addf %436, %435 : vector<2x128xf32>
    %438 = arith.divf %436, %437 : vector<2x128xf32>
    %439 = math.tanh %433 : vector<2x128xf32>
    %440 = vector.extract_strided_slice %438 {offsets = [0, 0], sizes = [2, 32], strides = [1, 1]} : vector<2x128xf32> to vector<2x32xf32>
    %441 = vector.extract_strided_slice %438 {offsets = [0, 32], sizes = [2, 32], strides = [1, 1]} : vector<2x128xf32> to vector<2x32xf32>
    %442 = vector.extract_strided_slice %439 {offsets = [0, 64], sizes = [2, 32], strides = [1, 1]} : vector<2x128xf32> to vector<2x32xf32>
    %443 = vector.extract_strided_slice %438 {offsets = [0, 96], sizes = [2, 32], strides = [1, 1]} : vector<2x128xf32> to vector<2x32xf32>
    %444 = arith.mulf %441, %367 : vector<2x32xf32>
    %445 = arith.mulf %440, %442 : vector<2x32xf32>
    %446 = arith.addf %444, %445 : vector<2x32xf32>
    %447 = math.tanh %446 : vector<2x32xf32>
    %448 = arith.mulf %443, %447 : vector<2x32xf32>
    %449 = tpu.concatenate %448, %389 in 1 : vector<2x32xf32>, vector<2x32xf32> -> vector<2x64xf32>
    %c0_101 = arith.constant 0 : index
    %c0_102 = arith.constant 0 : index
    %c0_103 = arith.constant 0 : index
    %450 = vector.load %arg3[%c0_101, %c0_102, %c0_103] : memref<3x64x128xf32, #tpu.memory_space<vmem>>, vector<1x64x128xf32>
    %451 = vector.shape_cast %450 : vector<1x64x128xf32> to vector<64x128xf32>
    %cst_104 = arith.constant dense<0.000000e+00> : vector<2x128xf32>
    %452 = tpu.matmul %449, %451, %cst_104 {dimension_numbers = #tpu.dot_dimension_numbers<[1], [0], [0], [1], [0, 0, 1, 1], [], []>} : vector<2x64xf32>, vector<64x128xf32>, vector<2x128xf32> -> vector<2x128xf32>
    %453 = arith.addf %452, %16 : vector<2x128xf32>
    %454 = arith.negf %453 : vector<2x128xf32>
    %455 = math.exp %454 : vector<2x128xf32>
    %cst_105 = arith.constant 1.000000e+00 : f32
    %456 = vector.broadcast %cst_105 : f32 to vector<2x128xf32>
    %457 = arith.addf %456, %455 : vector<2x128xf32>
    %458 = arith.divf %456, %457 : vector<2x128xf32>
    %459 = math.tanh %453 : vector<2x128xf32>
    %460 = vector.extract_strided_slice %458 {offsets = [0, 0], sizes = [2, 32], strides = [1, 1]} : vector<2x128xf32> to vector<2x32xf32>
    %461 = vector.extract_strided_slice %458 {offsets = [0, 32], sizes = [2, 32], strides = [1, 1]} : vector<2x128xf32> to vector<2x32xf32>
    %462 = vector.extract_strided_slice %459 {offsets = [0, 64], sizes = [2, 32], strides = [1, 1]} : vector<2x128xf32> to vector<2x32xf32>
    %463 = vector.extract_strided_slice %458 {offsets = [0, 96], sizes = [2, 32], strides = [1, 1]} : vector<2x128xf32> to vector<2x32xf32>
    %464 = arith.mulf %461, %387 : vector<2x32xf32>
    %465 = arith.mulf %460, %462 : vector<2x32xf32>
    %466 = arith.addf %464, %465 : vector<2x32xf32>
    %467 = math.tanh %466 : vector<2x32xf32>
    %468 = arith.mulf %463, %467 : vector<2x32xf32>
    %469 = tpu.concatenate %468, %409 in 1 : vector<2x32xf32>, vector<2x32xf32> -> vector<2x64xf32>
    %c1_106 = arith.constant 1 : index
    %c0_107 = arith.constant 0 : index
    %c0_108 = arith.constant 0 : index
    %470 = vector.load %arg3[%c1_106, %c0_107, %c0_108] : memref<3x64x128xf32, #tpu.memory_space<vmem>>, vector<1x64x128xf32>
    %471 = vector.shape_cast %470 : vector<1x64x128xf32> to vector<64x128xf32>
    %cst_109 = arith.constant dense<0.000000e+00> : vector<2x128xf32>
    %472 = tpu.matmul %469, %471, %cst_109 {dimension_numbers = #tpu.dot_dimension_numbers<[1], [0], [0], [1], [0, 0, 1, 1], [], []>} : vector<2x64xf32>, vector<64x128xf32>, vector<2x128xf32> -> vector<2x128xf32>
    %473 = arith.addf %472, %21 : vector<2x128xf32>
    %474 = arith.negf %473 : vector<2x128xf32>
    %475 = math.exp %474 : vector<2x128xf32>
    %cst_110 = arith.constant 1.000000e+00 : f32
    %476 = vector.broadcast %cst_110 : f32 to vector<2x128xf32>
    %477 = arith.addf %476, %475 : vector<2x128xf32>
    %478 = arith.divf %476, %477 : vector<2x128xf32>
    %479 = math.tanh %473 : vector<2x128xf32>
    %480 = vector.extract_strided_slice %478 {offsets = [0, 0], sizes = [2, 32], strides = [1, 1]} : vector<2x128xf32> to vector<2x32xf32>
    %481 = vector.extract_strided_slice %478 {offsets = [0, 32], sizes = [2, 32], strides = [1, 1]} : vector<2x128xf32> to vector<2x32xf32>
    %482 = vector.extract_strided_slice %479 {offsets = [0, 64], sizes = [2, 32], strides = [1, 1]} : vector<2x128xf32> to vector<2x32xf32>
    %483 = vector.extract_strided_slice %478 {offsets = [0, 96], sizes = [2, 32], strides = [1, 1]} : vector<2x128xf32> to vector<2x32xf32>
    %484 = arith.mulf %481, %407 : vector<2x32xf32>
    %485 = arith.mulf %480, %482 : vector<2x32xf32>
    %486 = arith.addf %484, %485 : vector<2x32xf32>
    %487 = math.tanh %486 : vector<2x32xf32>
    %488 = arith.mulf %483, %487 : vector<2x32xf32>
    %489 = tpu.concatenate %488, %429 in 1 : vector<2x32xf32>, vector<2x32xf32> -> vector<2x64xf32>
    %c2_111 = arith.constant 2 : index
    %c0_112 = arith.constant 0 : index
    %c0_113 = arith.constant 0 : index
    %490 = vector.load %arg3[%c2_111, %c0_112, %c0_113] : memref<3x64x128xf32, #tpu.memory_space<vmem>>, vector<1x64x128xf32>
    %491 = vector.shape_cast %490 : vector<1x64x128xf32> to vector<64x128xf32>
    %cst_114 = arith.constant dense<0.000000e+00> : vector<2x128xf32>
    %492 = tpu.matmul %489, %491, %cst_114 {dimension_numbers = #tpu.dot_dimension_numbers<[1], [0], [0], [1], [0, 0, 1, 1], [], []>} : vector<2x64xf32>, vector<64x128xf32>, vector<2x128xf32> -> vector<2x128xf32>
    %493 = arith.addf %492, %26 : vector<2x128xf32>
    %494 = arith.negf %493 : vector<2x128xf32>
    %495 = math.exp %494 : vector<2x128xf32>
    %cst_115 = arith.constant 1.000000e+00 : f32
    %496 = vector.broadcast %cst_115 : f32 to vector<2x128xf32>
    %497 = arith.addf %496, %495 : vector<2x128xf32>
    %498 = arith.divf %496, %497 : vector<2x128xf32>
    %499 = math.tanh %493 : vector<2x128xf32>
    %500 = vector.extract_strided_slice %498 {offsets = [0, 0], sizes = [2, 32], strides = [1, 1]} : vector<2x128xf32> to vector<2x32xf32>
    %501 = vector.extract_strided_slice %498 {offsets = [0, 32], sizes = [2, 32], strides = [1, 1]} : vector<2x128xf32> to vector<2x32xf32>
    %502 = vector.extract_strided_slice %499 {offsets = [0, 64], sizes = [2, 32], strides = [1, 1]} : vector<2x128xf32> to vector<2x32xf32>
    %503 = vector.extract_strided_slice %498 {offsets = [0, 96], sizes = [2, 32], strides = [1, 1]} : vector<2x128xf32> to vector<2x32xf32>
    %504 = arith.mulf %501, %427 : vector<2x32xf32>
    %505 = arith.mulf %500, %502 : vector<2x32xf32>
    %506 = arith.addf %504, %505 : vector<2x32xf32>
    %507 = math.tanh %506 : vector<2x32xf32>
    %508 = arith.mulf %503, %507 : vector<2x32xf32>
    %509 = vector.extract_strided_slice %10 {offsets = [0, 6, 0], sizes = [2, 1, 128], strides = [1, 1, 1]} : vector<2x8x128xf32> to vector<2x1x128xf32>
    %510 = vector.shape_cast %509 : vector<2x1x128xf32> to vector<2x128xf32>
    %cst_116 = arith.constant dense<0.000000e+00> : vector<2x128xf32>
    %511 = tpu.matmul %448, %11, %cst_116 {dimension_numbers = #tpu.dot_dimension_numbers<[1], [0], [0], [1], [0, 0, 1, 1], [], []>} : vector<2x32xf32>, vector<32x128xf32>, vector<2x128xf32> -> vector<2x128xf32>
    %512 = arith.addf %510, %511 : vector<2x128xf32>
    %513 = arith.negf %512 : vector<2x128xf32>
    %514 = math.exp %513 : vector<2x128xf32>
    %cst_117 = arith.constant 1.000000e+00 : f32
    %515 = vector.broadcast %cst_117 : f32 to vector<2x128xf32>
    %516 = arith.addf %515, %514 : vector<2x128xf32>
    %517 = arith.divf %515, %516 : vector<2x128xf32>
    %518 = math.tanh %512 : vector<2x128xf32>
    %519 = vector.extract_strided_slice %517 {offsets = [0, 0], sizes = [2, 32], strides = [1, 1]} : vector<2x128xf32> to vector<2x32xf32>
    %520 = vector.extract_strided_slice %517 {offsets = [0, 32], sizes = [2, 32], strides = [1, 1]} : vector<2x128xf32> to vector<2x32xf32>
    %521 = vector.extract_strided_slice %518 {offsets = [0, 64], sizes = [2, 32], strides = [1, 1]} : vector<2x128xf32> to vector<2x32xf32>
    %522 = vector.extract_strided_slice %517 {offsets = [0, 96], sizes = [2, 32], strides = [1, 1]} : vector<2x128xf32> to vector<2x32xf32>
    %523 = arith.mulf %520, %446 : vector<2x32xf32>
    %524 = arith.mulf %519, %521 : vector<2x32xf32>
    %525 = arith.addf %523, %524 : vector<2x32xf32>
    %526 = math.tanh %525 : vector<2x32xf32>
    %527 = arith.mulf %522, %526 : vector<2x32xf32>
    %528 = tpu.concatenate %527, %468 in 1 : vector<2x32xf32>, vector<2x32xf32> -> vector<2x64xf32>
    %c0_118 = arith.constant 0 : index
    %c0_119 = arith.constant 0 : index
    %c0_120 = arith.constant 0 : index
    %529 = vector.load %arg3[%c0_118, %c0_119, %c0_120] : memref<3x64x128xf32, #tpu.memory_space<vmem>>, vector<1x64x128xf32>
    %530 = vector.shape_cast %529 : vector<1x64x128xf32> to vector<64x128xf32>
    %cst_121 = arith.constant dense<0.000000e+00> : vector<2x128xf32>
    %531 = tpu.matmul %528, %530, %cst_121 {dimension_numbers = #tpu.dot_dimension_numbers<[1], [0], [0], [1], [0, 0, 1, 1], [], []>} : vector<2x64xf32>, vector<64x128xf32>, vector<2x128xf32> -> vector<2x128xf32>
    %532 = arith.addf %531, %16 : vector<2x128xf32>
    %533 = arith.negf %532 : vector<2x128xf32>
    %534 = math.exp %533 : vector<2x128xf32>
    %cst_122 = arith.constant 1.000000e+00 : f32
    %535 = vector.broadcast %cst_122 : f32 to vector<2x128xf32>
    %536 = arith.addf %535, %534 : vector<2x128xf32>
    %537 = arith.divf %535, %536 : vector<2x128xf32>
    %538 = math.tanh %532 : vector<2x128xf32>
    %539 = vector.extract_strided_slice %537 {offsets = [0, 0], sizes = [2, 32], strides = [1, 1]} : vector<2x128xf32> to vector<2x32xf32>
    %540 = vector.extract_strided_slice %537 {offsets = [0, 32], sizes = [2, 32], strides = [1, 1]} : vector<2x128xf32> to vector<2x32xf32>
    %541 = vector.extract_strided_slice %538 {offsets = [0, 64], sizes = [2, 32], strides = [1, 1]} : vector<2x128xf32> to vector<2x32xf32>
    %542 = vector.extract_strided_slice %537 {offsets = [0, 96], sizes = [2, 32], strides = [1, 1]} : vector<2x128xf32> to vector<2x32xf32>
    %543 = arith.mulf %540, %466 : vector<2x32xf32>
    %544 = arith.mulf %539, %541 : vector<2x32xf32>
    %545 = arith.addf %543, %544 : vector<2x32xf32>
    %546 = math.tanh %545 : vector<2x32xf32>
    %547 = arith.mulf %542, %546 : vector<2x32xf32>
    %548 = tpu.concatenate %547, %488 in 1 : vector<2x32xf32>, vector<2x32xf32> -> vector<2x64xf32>
    %c1_123 = arith.constant 1 : index
    %c0_124 = arith.constant 0 : index
    %c0_125 = arith.constant 0 : index
    %549 = vector.load %arg3[%c1_123, %c0_124, %c0_125] : memref<3x64x128xf32, #tpu.memory_space<vmem>>, vector<1x64x128xf32>
    %550 = vector.shape_cast %549 : vector<1x64x128xf32> to vector<64x128xf32>
    %cst_126 = arith.constant dense<0.000000e+00> : vector<2x128xf32>
    %551 = tpu.matmul %548, %550, %cst_126 {dimension_numbers = #tpu.dot_dimension_numbers<[1], [0], [0], [1], [0, 0, 1, 1], [], []>} : vector<2x64xf32>, vector<64x128xf32>, vector<2x128xf32> -> vector<2x128xf32>
    %552 = arith.addf %551, %21 : vector<2x128xf32>
    %553 = arith.negf %552 : vector<2x128xf32>
    %554 = math.exp %553 : vector<2x128xf32>
    %cst_127 = arith.constant 1.000000e+00 : f32
    %555 = vector.broadcast %cst_127 : f32 to vector<2x128xf32>
    %556 = arith.addf %555, %554 : vector<2x128xf32>
    %557 = arith.divf %555, %556 : vector<2x128xf32>
    %558 = math.tanh %552 : vector<2x128xf32>
    %559 = vector.extract_strided_slice %557 {offsets = [0, 0], sizes = [2, 32], strides = [1, 1]} : vector<2x128xf32> to vector<2x32xf32>
    %560 = vector.extract_strided_slice %557 {offsets = [0, 32], sizes = [2, 32], strides = [1, 1]} : vector<2x128xf32> to vector<2x32xf32>
    %561 = vector.extract_strided_slice %558 {offsets = [0, 64], sizes = [2, 32], strides = [1, 1]} : vector<2x128xf32> to vector<2x32xf32>
    %562 = vector.extract_strided_slice %557 {offsets = [0, 96], sizes = [2, 32], strides = [1, 1]} : vector<2x128xf32> to vector<2x32xf32>
    %563 = arith.mulf %560, %486 : vector<2x32xf32>
    %564 = arith.mulf %559, %561 : vector<2x32xf32>
    %565 = arith.addf %563, %564 : vector<2x32xf32>
    %566 = math.tanh %565 : vector<2x32xf32>
    %567 = arith.mulf %562, %566 : vector<2x32xf32>
    %568 = tpu.concatenate %567, %508 in 1 : vector<2x32xf32>, vector<2x32xf32> -> vector<2x64xf32>
    %c2_128 = arith.constant 2 : index
    %c0_129 = arith.constant 0 : index
    %c0_130 = arith.constant 0 : index
    %569 = vector.load %arg3[%c2_128, %c0_129, %c0_130] : memref<3x64x128xf32, #tpu.memory_space<vmem>>, vector<1x64x128xf32>
    %570 = vector.shape_cast %569 : vector<1x64x128xf32> to vector<64x128xf32>
    %cst_131 = arith.constant dense<0.000000e+00> : vector<2x128xf32>
    %571 = tpu.matmul %568, %570, %cst_131 {dimension_numbers = #tpu.dot_dimension_numbers<[1], [0], [0], [1], [0, 0, 1, 1], [], []>} : vector<2x64xf32>, vector<64x128xf32>, vector<2x128xf32> -> vector<2x128xf32>
    %572 = arith.addf %571, %26 : vector<2x128xf32>
    %573 = arith.negf %572 : vector<2x128xf32>
    %574 = math.exp %573 : vector<2x128xf32>
    %cst_132 = arith.constant 1.000000e+00 : f32
    %575 = vector.broadcast %cst_132 : f32 to vector<2x128xf32>
    %576 = arith.addf %575, %574 : vector<2x128xf32>
    %577 = arith.divf %575, %576 : vector<2x128xf32>
    %578 = math.tanh %572 : vector<2x128xf32>
    %579 = vector.extract_strided_slice %577 {offsets = [0, 0], sizes = [2, 32], strides = [1, 1]} : vector<2x128xf32> to vector<2x32xf32>
    %580 = vector.extract_strided_slice %577 {offsets = [0, 32], sizes = [2, 32], strides = [1, 1]} : vector<2x128xf32> to vector<2x32xf32>
    %581 = vector.extract_strided_slice %578 {offsets = [0, 64], sizes = [2, 32], strides = [1, 1]} : vector<2x128xf32> to vector<2x32xf32>
    %582 = vector.extract_strided_slice %577 {offsets = [0, 96], sizes = [2, 32], strides = [1, 1]} : vector<2x128xf32> to vector<2x32xf32>
    %583 = arith.mulf %580, %506 : vector<2x32xf32>
    %584 = arith.mulf %579, %581 : vector<2x32xf32>
    %585 = arith.addf %583, %584 : vector<2x32xf32>
    %586 = math.tanh %585 : vector<2x32xf32>
    %587 = arith.mulf %582, %586 : vector<2x32xf32>
    %588 = vector.extract_strided_slice %10 {offsets = [0, 7, 0], sizes = [2, 1, 128], strides = [1, 1, 1]} : vector<2x8x128xf32> to vector<2x1x128xf32>
    %589 = vector.shape_cast %588 : vector<2x1x128xf32> to vector<2x128xf32>
    %cst_133 = arith.constant dense<0.000000e+00> : vector<2x128xf32>
    %590 = tpu.matmul %527, %11, %cst_133 {dimension_numbers = #tpu.dot_dimension_numbers<[1], [0], [0], [1], [0, 0, 1, 1], [], []>} : vector<2x32xf32>, vector<32x128xf32>, vector<2x128xf32> -> vector<2x128xf32>
    %591 = arith.addf %589, %590 : vector<2x128xf32>
    %592 = arith.negf %591 : vector<2x128xf32>
    %593 = math.exp %592 : vector<2x128xf32>
    %cst_134 = arith.constant 1.000000e+00 : f32
    %594 = vector.broadcast %cst_134 : f32 to vector<2x128xf32>
    %595 = arith.addf %594, %593 : vector<2x128xf32>
    %596 = arith.divf %594, %595 : vector<2x128xf32>
    %597 = math.tanh %591 : vector<2x128xf32>
    %598 = vector.extract_strided_slice %596 {offsets = [0, 0], sizes = [2, 32], strides = [1, 1]} : vector<2x128xf32> to vector<2x32xf32>
    %599 = vector.extract_strided_slice %596 {offsets = [0, 32], sizes = [2, 32], strides = [1, 1]} : vector<2x128xf32> to vector<2x32xf32>
    %600 = vector.extract_strided_slice %597 {offsets = [0, 64], sizes = [2, 32], strides = [1, 1]} : vector<2x128xf32> to vector<2x32xf32>
    %601 = vector.extract_strided_slice %596 {offsets = [0, 96], sizes = [2, 32], strides = [1, 1]} : vector<2x128xf32> to vector<2x32xf32>
    %602 = arith.mulf %599, %525 : vector<2x32xf32>
    %603 = arith.mulf %598, %600 : vector<2x32xf32>
    %604 = arith.addf %602, %603 : vector<2x32xf32>
    %605 = math.tanh %604 : vector<2x32xf32>
    %606 = arith.mulf %601, %605 : vector<2x32xf32>
    %607 = tpu.concatenate %606, %547 in 1 : vector<2x32xf32>, vector<2x32xf32> -> vector<2x64xf32>
    %c0_135 = arith.constant 0 : index
    %c0_136 = arith.constant 0 : index
    %c0_137 = arith.constant 0 : index
    %608 = vector.load %arg3[%c0_135, %c0_136, %c0_137] : memref<3x64x128xf32, #tpu.memory_space<vmem>>, vector<1x64x128xf32>
    %609 = vector.shape_cast %608 : vector<1x64x128xf32> to vector<64x128xf32>
    %cst_138 = arith.constant dense<0.000000e+00> : vector<2x128xf32>
    %610 = tpu.matmul %607, %609, %cst_138 {dimension_numbers = #tpu.dot_dimension_numbers<[1], [0], [0], [1], [0, 0, 1, 1], [], []>} : vector<2x64xf32>, vector<64x128xf32>, vector<2x128xf32> -> vector<2x128xf32>
    %611 = arith.addf %610, %16 : vector<2x128xf32>
    %612 = arith.negf %611 : vector<2x128xf32>
    %613 = math.exp %612 : vector<2x128xf32>
    %cst_139 = arith.constant 1.000000e+00 : f32
    %614 = vector.broadcast %cst_139 : f32 to vector<2x128xf32>
    %615 = arith.addf %614, %613 : vector<2x128xf32>
    %616 = arith.divf %614, %615 : vector<2x128xf32>
    %617 = math.tanh %611 : vector<2x128xf32>
    %618 = vector.extract_strided_slice %616 {offsets = [0, 0], sizes = [2, 32], strides = [1, 1]} : vector<2x128xf32> to vector<2x32xf32>
    %619 = vector.extract_strided_slice %616 {offsets = [0, 32], sizes = [2, 32], strides = [1, 1]} : vector<2x128xf32> to vector<2x32xf32>
    %620 = vector.extract_strided_slice %617 {offsets = [0, 64], sizes = [2, 32], strides = [1, 1]} : vector<2x128xf32> to vector<2x32xf32>
    %621 = vector.extract_strided_slice %616 {offsets = [0, 96], sizes = [2, 32], strides = [1, 1]} : vector<2x128xf32> to vector<2x32xf32>
    %622 = arith.mulf %619, %545 : vector<2x32xf32>
    %623 = arith.mulf %618, %620 : vector<2x32xf32>
    %624 = arith.addf %622, %623 : vector<2x32xf32>
    %625 = math.tanh %624 : vector<2x32xf32>
    %626 = arith.mulf %621, %625 : vector<2x32xf32>
    %627 = tpu.concatenate %626, %567 in 1 : vector<2x32xf32>, vector<2x32xf32> -> vector<2x64xf32>
    %c1_140 = arith.constant 1 : index
    %c0_141 = arith.constant 0 : index
    %c0_142 = arith.constant 0 : index
    %628 = vector.load %arg3[%c1_140, %c0_141, %c0_142] : memref<3x64x128xf32, #tpu.memory_space<vmem>>, vector<1x64x128xf32>
    %629 = vector.shape_cast %628 : vector<1x64x128xf32> to vector<64x128xf32>
    %cst_143 = arith.constant dense<0.000000e+00> : vector<2x128xf32>
    %630 = tpu.matmul %627, %629, %cst_143 {dimension_numbers = #tpu.dot_dimension_numbers<[1], [0], [0], [1], [0, 0, 1, 1], [], []>} : vector<2x64xf32>, vector<64x128xf32>, vector<2x128xf32> -> vector<2x128xf32>
    %631 = arith.addf %630, %21 : vector<2x128xf32>
    %632 = arith.negf %631 : vector<2x128xf32>
    %633 = math.exp %632 : vector<2x128xf32>
    %cst_144 = arith.constant 1.000000e+00 : f32
    %634 = vector.broadcast %cst_144 : f32 to vector<2x128xf32>
    %635 = arith.addf %634, %633 : vector<2x128xf32>
    %636 = arith.divf %634, %635 : vector<2x128xf32>
    %637 = math.tanh %631 : vector<2x128xf32>
    %638 = vector.extract_strided_slice %636 {offsets = [0, 0], sizes = [2, 32], strides = [1, 1]} : vector<2x128xf32> to vector<2x32xf32>
    %639 = vector.extract_strided_slice %636 {offsets = [0, 32], sizes = [2, 32], strides = [1, 1]} : vector<2x128xf32> to vector<2x32xf32>
    %640 = vector.extract_strided_slice %637 {offsets = [0, 64], sizes = [2, 32], strides = [1, 1]} : vector<2x128xf32> to vector<2x32xf32>
    %641 = vector.extract_strided_slice %636 {offsets = [0, 96], sizes = [2, 32], strides = [1, 1]} : vector<2x128xf32> to vector<2x32xf32>
    %642 = arith.mulf %639, %565 : vector<2x32xf32>
    %643 = arith.mulf %638, %640 : vector<2x32xf32>
    %644 = arith.addf %642, %643 : vector<2x32xf32>
    %645 = math.tanh %644 : vector<2x32xf32>
    %646 = arith.mulf %641, %645 : vector<2x32xf32>
    %647 = tpu.concatenate %646, %587 in 1 : vector<2x32xf32>, vector<2x32xf32> -> vector<2x64xf32>
    %c2_145 = arith.constant 2 : index
    %c0_146 = arith.constant 0 : index
    %c0_147 = arith.constant 0 : index
    %648 = vector.load %arg3[%c2_145, %c0_146, %c0_147] : memref<3x64x128xf32, #tpu.memory_space<vmem>>, vector<1x64x128xf32>
    %649 = vector.shape_cast %648 : vector<1x64x128xf32> to vector<64x128xf32>
    %cst_148 = arith.constant dense<0.000000e+00> : vector<2x128xf32>
    %650 = tpu.matmul %647, %649, %cst_148 {dimension_numbers = #tpu.dot_dimension_numbers<[1], [0], [0], [1], [0, 0, 1, 1], [], []>} : vector<2x64xf32>, vector<64x128xf32>, vector<2x128xf32> -> vector<2x128xf32>
    %651 = arith.addf %650, %26 : vector<2x128xf32>
    %652 = arith.negf %651 : vector<2x128xf32>
    %653 = math.exp %652 : vector<2x128xf32>
    %cst_149 = arith.constant 1.000000e+00 : f32
    %654 = vector.broadcast %cst_149 : f32 to vector<2x128xf32>
    %655 = arith.addf %654, %653 : vector<2x128xf32>
    %656 = arith.divf %654, %655 : vector<2x128xf32>
    %657 = math.tanh %651 : vector<2x128xf32>
    %658 = vector.extract_strided_slice %656 {offsets = [0, 0], sizes = [2, 32], strides = [1, 1]} : vector<2x128xf32> to vector<2x32xf32>
    %659 = vector.extract_strided_slice %656 {offsets = [0, 32], sizes = [2, 32], strides = [1, 1]} : vector<2x128xf32> to vector<2x32xf32>
    %660 = vector.extract_strided_slice %657 {offsets = [0, 64], sizes = [2, 32], strides = [1, 1]} : vector<2x128xf32> to vector<2x32xf32>
    %661 = vector.extract_strided_slice %656 {offsets = [0, 96], sizes = [2, 32], strides = [1, 1]} : vector<2x128xf32> to vector<2x32xf32>
    %662 = arith.mulf %659, %585 : vector<2x32xf32>
    %663 = arith.mulf %658, %660 : vector<2x32xf32>
    %664 = arith.addf %662, %663 : vector<2x32xf32>
    %665 = math.tanh %664 : vector<2x32xf32>
    %666 = arith.mulf %661, %665 : vector<2x32xf32>
    %c0_150 = arith.constant 0 : index
    %c0_151 = arith.constant 0 : index
    %667 = vector.load %arg5[%c0_150, %c0_151] : memref<32x1xf32, #tpu.memory_space<vmem>>, vector<32x1xf32>
    %cst_152 = arith.constant dense<0.000000e+00> : vector<2x1xf32>
    %668 = tpu.matmul %666, %667, %cst_152 {dimension_numbers = #tpu.dot_dimension_numbers<[1], [0], [0], [1], [0, 0, 1, 1], [], []>} : vector<2x32xf32>, vector<32x1xf32>, vector<2x1xf32> -> vector<2x1xf32>
    %c0_153 = arith.constant 0 : index
    %c0_154 = arith.constant 0 : index
    %669 = vector.load %arg6[%c0_153, %c0_154] : memref<1x1xf32, #tpu.memory_space<vmem>>, vector<1x1xf32>
    %670 = vector.broadcast %669 : vector<1x1xf32> to vector<2x1xf32>
    %671 = arith.addf %668, %670 : vector<2x1xf32>
    %c0_155 = arith.constant 0 : index
    %c0_156 = arith.constant 0 : index
    %672 = vector.load %arg7[%c0_155, %c0_156] : memref<2x1xf32, #tpu.memory_space<vmem>>, vector<2x1xf32>
    tpu.vector_store %arg7[%c0_155, %c0_156], %671 {strides = array<i32>} : memref<2x1xf32, #tpu.memory_space<vmem>>, vector<2x1xf32>,
    return
  }
}

</mosaic_0001>

<bundles_post_ra>
// kernel: tpu_custom_call.1
= control target key start
LH: loop header
LB: loop body
LE: loop exit
PB: predicated region body
PF: predicated region fallthrough
CT: control target
= control target key end

     0   :  { %s6543_s0 = inlined_call_operand.hbm [shape: f32[2,8,32], index: 0, kind: input, shape index: {}]   ;;  %s6544_s1 = inlined_call_operand.vmem [shape: f32[32,128], index: 1, kind: input, shape index: {}]   ;;  %s6545_s2 = inlined_call_operand.hbm [shape: f32[32,128], index: 2, kind: input, shape index: {}]   ;;  %s6546_s3 = inlined_call_operand.hbm [shape: f32[3,64,128], index: 3, kind: input, shape index: {}]   ;;  %s6547_s4 = inlined_call_operand.vmem [shape: f32[4,128], index: 4, kind: input, shape index: {}]   ;;  %s6548_s5 = inlined_call_operand.vmem [shape: f32[32,1], index: 5, kind: input, shape index: {}]   ;;  %s6549_s6 = inlined_call_operand.<no memory space> [shape: f32[1,1], index: 6, kind: input, shape index: {}]   ;;  %s6550_s7 = inlined_call_operand.vmem [shape: f32[2,1], index: 7, kind: output, shape index: {}]  }
   0x1   :  { %v12_v0 = vstv %s6549_s6 }
   0x2   :  { %13 = vst [vmem:[#allocation2] sm:$0x1] %v12_v0 }
   0x3   :  { %14 = vsyncpa [#allocation4], 0 }
   0x4   :  { %15 = vsyncpa [#allocation6], 0  ;;  %s5613_s26 = smov [#allocation5]   ;;  %s5614_s28 = smov [#allocation3]  }
   0x5   :  { %s35_s27 = sshll.u32 %s5613_s26, 4  ;;  %s21_s29 = sshll.u32 %s5614_s28, 4  ;;  %s36_s27 = int_to_ptr.vmem [resolvable:$true] %s35_s27  ;;  %s5666_s29 = int_to_ptr.vmem [resolvable:$true] %s21_s29 }
   0x6   :  { %s5543_s9 = scalar_lea.hbm %s6545_s2, 512 }
   0x7   :  { %p5544_p0 = scmp.ne.s32.totalorder %s6545_s2, %s5543_s9  ;;  %p5547_p1 = scmp.lt.u32.totalorder %s5543_s9, %s6545_s2 }
   0x9   :  { %p5549_p2 = pnand %p5547_p1, %p5544_p0 }
   0xb   :  { %5552 = shalt.err (!%p5549_p2)
}
   0xc   :  { %s5553_s13 = scalar_lea.vmem %s36_s27, 512  ;;  %p5558_p4 = scmp.lt.s32.totalorder %s36_s27, %s36_s27 }
   0xd   :  { %p5554_p3 = scmp.ne.s32.totalorder %s36_s27, %s5553_s13  ;;  %p5559_p5 = scmp.lt.s32.totalorder %s5553_s13, %s5553_s13 }
   0xf   :  { %p5560_p6 = por %p5559_p5, %p5558_p4 }
  0x11   :  { %p5561_p7 = pnand %p5560_p6, %p5554_p3 }
  0x13   :  { %5564 = shalt.err (!%p5561_p7)
}
  0x14   :  { %s5615_s14 = smov 128   ;;  %s5616_s15 = smov 8  }
  0x15   :  { %41 = dma.hbm_to_vmem [thread:$0]  %s6545_s2, 512, %s36_s27, [#allocation6], %s5615_s14, %s5615_s14, %s5616_s15  }
  0x16   :  { %s5565_s20 = scalar_lea.hbm %s6543_s0, 256 }
  0x17   :  { %p5566_p8 = scmp.ne.s32.totalorder %s6543_s0, %s5565_s20  ;;  %p5569_p9 = scmp.lt.u32.totalorder %s5565_s20, %s6543_s0 }
  0x19   :  { %p5571_p10 = pnand %p5569_p9, %p5566_p8 }
  0x1b   :  { %5574 = shalt.err (!%p5571_p10)
}
  0x1c   :  { %s5575_s25 = scalar_lea.vmem %s5666_s29, 256  ;;  %p5580_p12 = scmp.lt.s32.totalorder %s5666_s29, %s5666_s29 }
  0x1d   :  { %p5576_p11 = scmp.ne.s32.totalorder %s5666_s29, %s5575_s25  ;;  %p5581_p13 = scmp.lt.s32.totalorder %s5575_s25, %s5575_s25 }
  0x1f   :  { %p5582_p0 = por %p5581_p13, %p5580_p12 }
  0x21   :  { %p5583_p1 = pnand %p5582_p0, %p5576_p11 }
  0x23   :  { %5586 = shalt.err (!%p5583_p1)
}
  0x24   :  { %27 = dma.hbm_to_vmem [thread:$0]  %s6543_s0, 256, %s5666_s29, [#allocation4], %s5615_s14, %s5615_s14, %s5616_s15  }
  0x25   :  { %s5617_s27 = smov [#allocation7]   ;;  %s5587_s9 = scalar_lea.hbm %s6546_s3, 3072 }
  0x26   :  { %s47_s28 = sshll.u32 %s5617_s27, 4  ;;  %p5588_p2 = scmp.ne.s32.totalorder %s6546_s3, %s5587_s9  ;;  %s48_s28 = int_to_ptr.vmem [resolvable:$true] %s47_s28 }
  0x27   :  { %p5591_p3 = scmp.lt.u32.totalorder %s5587_s9, %s6546_s3 }
  0x29   :  { %p5593_p4 = pnand %p5591_p3, %p5588_p2 }
  0x2b   :  { %5596 = shalt.err (!%p5593_p4)
}
  0x2c   :  { %s5597_s13 = scalar_lea.vmem %s48_s28, 3072  ;;  %p5602_p6 = scmp.lt.s32.totalorder %s48_s28, %s48_s28 }
  0x2d   :  { %p5598_p5 = scmp.ne.s32.totalorder %s48_s28, %s5597_s13  ;;  %p5603_p7 = scmp.lt.s32.totalorder %s5597_s13, %s5597_s13 }
  0x2f   :  { %p5604_p8 = por %p5603_p7, %p5602_p6 }
  0x31   :  { %p5605_p9 = pnand %p5604_p8, %p5598_p5 }
  0x33   :  { %5608 = shalt.err (!%p5605_p9)
}
  0x34   :  { %53 = dma.hbm_to_vmem [thread:$0]  %s6546_s3, 3072, %s48_s28, [#allocation6], %s5615_s14, %s5615_s14, %s5616_s15  }
  0x35   :  { %5609 = dma.done.wait [#allocation4], 256  }
  0x36   :  { %5610 = vsyncadd [#allocation4], 4294967040 }
  0x37   :  { %5611 = dma.done.wait [#allocation6], 3584  }
  0x38   :  { %5612 = vsyncadd [#allocation6], 4294963712  ;;  %v5618_v1 = vmov 0.0|0.0   ;;  %vm5619_vm0 = vmmov 0   ;;  %v5620_v2 = vmov 0.0   ;;  %v72_v3 = vld [vmem:[%s6544_s1] sm:$0xff]  ;;  %v76_v17 = vlaneseq }
  0x39   :  { %4871 = vmatprep.subr.bf16.mxu1 %v5618_v1  ;;  %4316 = vmatprep.mubr.msk.f32.mxu1 %vm5619_vm0, %v5620_v2  ;;  %v73_v4 = vld [vmem:[%s6544_s1 + $0x8] sm:$0xff]  ;;  %v162_v5 = vld [vmem:[#allocation5] sm:$0xff]  ;;  %vm80_vm1 = vcmask 261120   ;;  %v163_v7 = vld [vmem:[#allocation5 + $0x8] sm:$0xff]  ;;  %s5622_s22 = smov 32   ;;  %vm308_vm2 = vcmask 1041409  }
  0x3a   :  { %v4863_v6 = vpack.c.bf16 %v73_v4, %v72_v3  ;;  %v74_v8 = vld [vmem:[%s6544_s1 + $0x10] sm:$0xff]  ;;  %v75_v9 = vld [vmem:[%s6544_s1 + $0x18] sm:$0xff]  ;;  %v5733_v10 = vpack.c.bf16 %v163_v7, %v162_v5  ;;  %v164_v12 = vld [vmem:[#allocation5 + $0x10] sm:$0xff]  ;;  %v77_v18 = vshrl.u32 %v76_v17, 7  ;;  %vm322_vm3 = vcmask 523264  }
  0x3b   :  { %v4867_v11 = vpack.c.bf16 %v75_v9, %v74_v8  ;;  %v165_v13 = vld [vmem:[#allocation5 + $0x18] sm:$0xff]  ;;  %v70_v14 = vld [vmem:[#allocation3] sm:$0xff]  ;;  %v314_v57 = vld [vmem:[#allocation7] sm:$0xff]  ;;  %vm777_vm4 = vcmask 1042434   ;;  %vm1236_vm5 = vcmask 1043459   ;;  %vm1696_vm6 = vcmask 1044484  }
  0x3c   :  { %4864 = vmatprep.subr.bf16.mxu0 %v4863_v6  ;;  %4305 = vmatprep.mubr.msk.f32.mxu0 %vm80_vm1, %v70_v14  ;;  %v5737_v15 = vpack.c.bf16 %v165_v13, %v164_v12  ;;  %v71_v16 = vld [vmem:[#allocation3 + $0x8] sm:$0xff]  ;;  %v168_v19 = vsub.s32 1, %v77_v18  ;;  %v172_v20 = vsub.s32 2, %v77_v18  ;;  %v176_v21 = vsub.s32 3, %v77_v18  ;;  %v69_v22 = vld [vmem:[%s6547_s4] sm:$0xf] }
  0x3d   :  { %4873 = vmatpush3.bf16.msra.mxu1 %v5733_v10  ;;  %4866 = vmatpush3.bf16.msra.mxu0 %v4863_v6  ;;  %v78_v26 = vsub.s32 0, %v77_v18  ;;  %s5621_s4 = smov 64   ;;  %v315_v58 = vld [vmem:[#allocation7 + $0x8] sm:$0xff]  ;;  %v316_v59 = vld [vmem:[#allocation7 + $0x10] sm:$0xff]  ;;  %v317_v61 = vld [vmem:[#allocation7 + $0x18] sm:$0xff]  ;;  %vm2156_vm7 = vcmask 1045509  }
  0x3e   :  { %4874 = vmatprep.subr.bf16.mxu1 %v5618_v1  ;;  %4868 = vmatprep.subr.bf16.mxu0 %v4867_v11  ;;  %v5752_v23 = vrot.slane %v69_v22, %v168_v19  ;;  %v5754_v24 = vrot.slane %v69_v22, %v172_v20  ;;  %v5756_v25 = vrot.slane %v69_v22, %v176_v21  ;;  %v318_v63 = vld [vmem:[#allocation7 + $0x20] sm:$0xff]  ;;  %v319_v0 = vld [vmem:[#allocation7 + $0x28] sm:$0xff]  ;;  %v320_v5 = vld [vmem:[#allocation7 + $0x30] sm:$0xff]  ;;  %vm2616_vm8 = vcmask 1046534  }
  0x3f   :  { %v79_v27 = vrot.slane %v69_v22, %v78_v26  ;;  %v5774_v60 = vpack.c.bf16 %v315_v58, %v314_v57  ;;  %v5777_v62 = vpack.c.bf16 %v317_v61, %v316_v59  ;;  %v5782_v4 = vpack.c.bf16 %v319_v0, %v318_v63  ;;  %v321_v6 = vld [vmem:[#allocation7 + $0x38] sm:$0xff] }
  0x40   :  { %v5787_v8 = vpack.c.bf16 %v321_v6, %v320_v5  ;;  %vm3076_vm9 = vcmask 1047559   ;;  %vm3550_vm10 = vcmask 1040384   ;;  %vm3947_vm11 = vcmask 1024  }
  0x41   :  { %4876 = vmatpush3.bf16.msra.mxu1 %v5737_v15  ;;  %4870 = vmatpush3.bf16.msra.mxu0 %v4867_v11 }
  0x42   :  { %4877 = vmatprep.subr.bf16.mxu0 %v5618_v1  ;;  %4889 = vmatprep.subr.bf16.mxu1 %v5618_v1 }
  0x44   :  { %4317 = vmatmul.mubr.f32.vlgmr.msra.gmra.mrb[0].mxu1 %v5620_v2  ;;  %4306 = vmatmul.mubr.msk.f32.vlgmr.msra.gmra.mrb[0].mxu0 %vm80_vm1, %v71_v16 }
  0x45   :  { %4335 = vmatprep.mubr.msk.f32.mxu0 %vm5619_vm0, %v5620_v2  ;;  %4354 = vmatprep.mubr.msk.f32.mxu1 %vm5619_vm0, %v5620_v2 }
  0x46   :  { %4879 = vmatpush3.bf16.msra.mxu0 %v5774_v60 }
  0x47   :  { %4880 = vmatprep.subr.bf16.mxu0 %v5618_v1 }
  0x4a   :  { %4882 = vmatpush3.bf16.msra.mxu0 %v5777_v62 }
  0x4b   :  { %4883 = vmatprep.subr.bf16.mxu0 %v5618_v1 }
  0x4e   :  { %4885 = vmatpush3.bf16.msra.mxu0 %v5782_v4 }
  0x4f   :  { %4886 = vmatprep.subr.bf16.mxu0 %v5618_v1 }
  0x52   :  { %4888 = vmatpush3.bf16.msra.mxu0 %v5787_v8 }
  0x53   :  { %4901 = vmatprep.subr.bf16.mxu0 %v5618_v1 }
 0x117   :  { %v247_v28 = vpop.f32.mrb[0].mxu1  ;;  %v4307_v29 = vpop.f32.mrb[0].mxu0 }
 0x118   :  { %v252_v30 = vrot.slane %v247_v28, 1  ;;  %v5758_v31 = vadd.f32 %v4307_v29, %v79_v27  ;;  %v4318_v32 = vpop.f32.mrb[1].mxu1  ;;  %v153_v33 = vpop.f32.mrb[1].mxu0 }
 0x119   :  { %v5760_v34 = vadd.f32 %v153_v33, %v79_v27 }
 0x11a   :  { %v256_v35 = vadd.f32 %v252_v30, %v5758_v31 }
 0x11b   :  { %v255_v36 = vadd.f32 %v247_v28, %v5760_v34 }
 0x11c   :  { %5223 = vtanh.f32 %v256_v35  ;;  %v3958_v39 = vmul.f32 -1.442695, %v256_v35 }
 0x11d   :  { %5225 = vtanh.f32 %v255_v36  ;;  %v3957_v40 = vmul.f32 -1.442695, %v255_v36 }
 0x11e   :  { %5227 = vpow2.f32 %v3958_v39  ;;  %v428_v39 = vld [vmem:[#allocation7 + $0x50] sm:$0xff] }
 0x11f   :  { %5229 = vpow2.f32 %v3957_v40 }
 0x126   :  { %v5224_v37 = vpop.eup %5223 }
 0x127   :  { %277 = vrot.lane.b32.xlu0 %v5224_v37, %s5621_s4  ;;  %v5226_v38 = vpop.eup %5225  ;;  %v426_v37 = vld [vmem:[#allocation7 + $0x40] sm:$0xff] }
 0x128   :  { %v5228_v41 = vpop.eup %5227 }
 0x129   :  { %v264_v42 = vadd.f32 1.0, %v5228_v41  ;;  %v5230_v43 = vpop.eup %5229  ;;  %v429_v41 = vld [vmem:[#allocation7 + $0x58] sm:$0xff] }
 0x12a   :  { %v263_v44 = vadd.f32 1.0, %v5230_v43  ;;  %v430_v43 = vld [vmem:[#allocation7 + $0x60] sm:$0xff] }
 0x12b   :  { %275 = vrot.lane.b32.xlu0 %v5226_v38, %s5621_s4  ;;  %5231 = vrcp.f32 %v264_v42  ;;  %v427_v38 = vld [vmem:[#allocation7 + $0x48] sm:$0xff]  ;;  %v5807_v42 = vpack.c.bf16 %v429_v41, %v428_v39 }
 0x12c   :  { %5233 = vrcp.f32 %v263_v44  ;;  %v5804_v40 = vpack.c.bf16 %v427_v38, %v426_v37  ;;  %v431_v44 = vld [vmem:[#allocation7 + $0x68] sm:$0xff] }
 0x12e   :  { %4891 = vmatpush3.bf16.msra.mxu1 %v5804_v40 }
 0x12f   :  { %4892 = vmatprep.subr.bf16.mxu1 %v5618_v1 }
 0x132   :  { %4894 = vmatpush3.bf16.msra.mxu1 %v5807_v42 }
 0x133   :  { %4895 = vmatprep.subr.bf16.mxu1 %v5618_v1 }
 0x135   :  { %v5232_v45 = vpop.eup %5231 }
 0x136   :  { %v5234_v48 = vpop.eup %5233  ;;  %v272_v51 = vmul.f32 0.0, %v5232_v45 }
 0x137   :  { %v271_v54 = vmul.f32 0.0, %v5234_v48 }
 0x199   :  { %v278_v46 = vpop.permute.xlu0 %277 }
 0x19a   :  { %v282_v47 = vmul.f32 %v5232_v45, %v278_v46  ;;  %v432_v46 = vld [vmem:[#allocation7 + $0x70] sm:$0xff] }
 0x19c   :  { %287 = vrot.lane.b32.xlu1 %v282_v47, %s5622_s22  ;;  %v433_v47 = vld [vmem:[#allocation7 + $0x78] sm:$0xff] }
 0x19d   :  { %v276_v49 = vpop.permute.xlu0 %275 }
 0x19e   :  { %v281_v50 = vmul.f32 %v5234_v48, %v276_v49  ;;  %v5816_v49 = vpack.c.bf16 %v433_v47, %v432_v46 }
 0x1a0   :  { %285 = vrot.lane.b32.xlu1 %v281_v50, %s5622_s22 }
 0x20e   :  { %v288_v52 = vpop.permute.xlu1 %287 }
 0x20f   :  { %v5768_v53 = vadd.f32 %v288_v52, %v272_v51 }
 0x211   :  { %5235 = vtanh.f32 %v5768_v53 }
 0x212   :  { %v286_v55 = vpop.permute.xlu1 %285 }
 0x213   :  { %v5771_v56 = vadd.f32 %v286_v55, %v271_v54 }
 0x215   :  { %5237 = vtanh.f32 %v5771_v56 }
 0x21b   :  { %v5236_v3 = vpop.eup %5235 }
 0x21c   :  { %299 = vrot.lane.b32.xlu0 %v5236_v3, %s5621_s4 }
 0x21f   :  { %v5238_v7 = vpop.eup %5237 }
 0x220   :  { %297 = vrot.lane.b32.xlu1 %v5238_v7, %s5621_s4 }
 0x28e   :  { %v300_v9 = vpop.permute.xlu0 %299 }
 0x28f   :  { %v304_v11 = vmul.f32 %v5232_v45, %v300_v9  ;;  %v5811_v45 = vpack.c.bf16 %v431_v44, %v430_v43 }
 0x291   :  { %v307_v13 = vrot.slane %v304_v11, 7  ;;  %4897 = vmatpush3.bf16.msra.mxu1 %v5811_v45 }
 0x292   :  { %v298_v12 = vpop.permute.xlu1 %297  ;;  %4898 = vmatprep.subr.bf16.mxu1 %v5618_v1 }
 0x293   :  { %v303_v14 = vmul.f32 %v5234_v48, %v298_v12 }
 0x295   :  { %v309_v16 = vsel %vm308_vm2, %v307_v13, %v303_v14  ;;  %4900 = vmatpush3.bf16.msra.mxu1 %v5816_v49 }
 0x296   :  { %310 = vrot.lane.b32.xlu0 %v309_v16, %s5622_s22  ;;  %4913 = vmatprep.subr.bf16.mxu1 %v5618_v1 }
 0x308   :  { %v311_v17 = vpop.permute.xlu0 %310 }
 0x309   :  { %v313_v18 = vsel %vm80_vm1, %v311_v17, 0.0 }
 0x30a   :  { %4336 = vmatmul.mubr.msk.f32.vlgmr.msra.gmra.mrb[2].mxu0 %vm322_vm3, %v313_v18 }
 0x30b   :  { %4373 = vmatprep.mubr.msk.f32.mxu0 %vm5619_vm0, %v5620_v2 }
 0x3dd   :  { %v392_v19 = vpop.f32.mrb[2].mxu0 }
 0x3de   :  { %v393_v20 = vadd.f32 %v392_v19, %v5752_v23  ;;  %v4337_v21 = vpop.f32.mrb[3].mxu0 }
 0x3df   :  { %v737_v21 = vrot.slane %v5768_v53, 7 }
 0x3e0   :  { %5239 = vtanh.f32 %v393_v20  ;;  %v3960_v26 = vmul.f32 -1.442695, %v393_v20 }
 0x3e2   :  { %5241 = vpow2.f32 %v3960_v26  ;;  %v736_v26 = vrot.slane %v5771_v56, 7 }
 0x3ea   :  { %v5240_v22 = vpop.eup %5239 }
 0x3eb   :  { %405 = vrot.lane.b32.xlu1 %v5240_v22, %s5621_s4 }
 0x3ec   :  { %v5242_v27 = vpop.eup %5241 }
 0x3ed   :  { %v399_v28 = vadd.f32 1.0, %v5242_v27 }
 0x3ef   :  { %5243 = vrcp.f32 %v399_v28 }
 0x3f9   :  { %v5244_v29 = vpop.eup %5243 }
 0x3fa   :  { %v403_v33 = vmul.f32 0.0, %v5244_v29 }
 0x45d   :  { %v406_v30 = vpop.permute.xlu1 %405 }
 0x45e   :  { %v408_v32 = vmul.f32 %v5244_v29, %v406_v30 }
 0x460   :  { %410 = vrot.lane.b32.xlu0 %v408_v32, %s5622_s22 }
 0x4d2   :  { %v411_v35 = vpop.permute.xlu0 %410 }
 0x4d3   :  { %v5801_v36 = vadd.f32 %v411_v35, %v403_v33 }
 0x4d5   :  { %5245 = vtanh.f32 %v5801_v36 }
 0x4df   :  { %v5246_v48 = vpop.eup %5245 }
 0x4e0   :  { %416 = vrot.lane.b32.xlu1 %v5246_v48, %s5621_s4 }
 0x552   :  { %v417_v50 = vpop.permute.xlu1 %416 }
 0x553   :  { %v5821_v51 = vmul.f32 %v5244_v29, %v417_v50 }
 0x555   :  { %421 = vrot.lane.b32.xlu0 %v5821_v51, %s5622_s22  ;;  %v782_v53 = vrot.slane %v5821_v51, 7 }
 0x5c7   :  { %v422_v52 = vpop.permute.xlu0 %421 }
 0x5c8   :  { %v424_v54 = vsel %vm80_vm1, %v422_v52, 0.0 }
 0x5c9   :  { %4355 = vmatmul.mubr.msk.f32.vlgmr.msra.gmra.mrb[2].mxu1 %vm322_vm3, %v424_v54 }
 0x5ca   :  { %4915 = vmatpush3.bf16.msra.mxu1 %v5733_v10  ;;  %4384 = vmatprep.mubr.msk.f32.mxu1 %vm5619_vm0, %v5620_v2 }
 0x5cb   :  { %4916 = vmatprep.subr.bf16.mxu1 %v5618_v1 }
 0x5ce   :  { %4918 = vmatpush3.bf16.msra.mxu1 %v5737_v15 }
 0x5cf   :  { %4919 = vmatprep.subr.bf16.mxu1 %v5618_v1 }
 0x5d1   :  { %4385 = vmatmul.mubr.msk.f32.vlgmr.msra.gmra.mrb[4].mxu1 %vm80_vm1, %v311_v17 }
 0x5d2   :  { %4921 = vmatpush3.bf16.msra.mxu1 %v5774_v60  ;;  %4403 = vmatprep.mubr.msk.f32.mxu1 %vm5619_vm0, %v5620_v2 }
 0x5d3   :  { %4922 = vmatprep.subr.bf16.mxu1 %v5618_v1 }
 0x5d6   :  { %4924 = vmatpush3.bf16.msra.mxu1 %v5777_v62 }
 0x5d7   :  { %4925 = vmatprep.subr.bf16.mxu1 %v5618_v1 }
 0x5da   :  { %4927 = vmatpush3.bf16.msra.mxu1 %v5782_v4 }
 0x5db   :  { %4928 = vmatprep.subr.bf16.mxu1 %v5618_v1 }
 0x5de   :  { %4930 = vmatpush3.bf16.msra.mxu1 %v5787_v8 }
 0x5df   :  { %4943 = vmatprep.subr.bf16.mxu1 %v5618_v1 }
 0x69c   :  { %v503_v55 = vpop.f32.mrb[2].mxu1 }
 0x69d   :  { %v4356_v57 = vpop.f32.mrb[3].mxu1  ;;  %v504_v56 = vadd.f32 %v503_v55, %v5754_v24 }
 0x69f   :  { %v3962_v50 = vmul.f32 -1.442695, %v504_v56 }
 0x6a4   :  { %v710_v58 = vpop.f32.mrb[4].mxu1 }
 0x6a5   :  { %v715_v59 = vrot.slane %v710_v58, 7  ;;  %v719_v61 = vadd.f32 %v710_v58, %v5758_v31  ;;  %v4386_v63 = vpop.f32.mrb[5].mxu1 }
 0x6a7   :  { %v718_v0 = vadd.f32 %v715_v59, %v5760_v34  ;;  %5247 = vtanh.f32 %v719_v61  ;;  %v3967_v6 = vmul.f32 -1.442695, %v719_v61 }
 0x6a9   :  { %5249 = vtanh.f32 %v718_v0  ;;  %v3966_v7 = vmul.f32 -1.442695, %v718_v0 }
 0x6aa   :  { %5251 = vpow2.f32 %v3967_v6 }
 0x6ab   :  { %5253 = vpow2.f32 %v3966_v7 }
 0x6b1   :  { %v5248_v3 = vpop.eup %5247 }
 0x6b2   :  { %746 = vrot.lane.b32.xlu1 %v5248_v3, %s5621_s4 }
 0x6b3   :  { %v5250_v5 = vpop.eup %5249 }
 0x6b4   :  { %744 = vrot.lane.b32.xlu0 %v5250_v5, %s5621_s4  ;;  %v5252_v9 = vpop.eup %5251 }
 0x6b5   :  { %v5254_v11 = vpop.eup %5253  ;;  %v727_v12 = vadd.f32 1.0, %v5252_v9 }
 0x6b6   :  { %v726_v13 = vadd.f32 1.0, %v5254_v11 }
 0x6b7   :  { %5255 = vrcp.f32 %v727_v12  ;;  %v537_v12 = vld [vmem:[#allocation7 + $0x80] sm:$0xff] }
 0x6b8   :  { %5257 = vrcp.f32 %v726_v13  ;;  %v538_v13 = vld [vmem:[#allocation7 + $0x88] sm:$0xff] }
 0x6c1   :  { %v5256_v14 = vpop.eup %5255 }
 0x6c2   :  { %v5258_v18 = vpop.eup %5257  ;;  %v741_v22 = vmul.f32 %v5256_v14, %v737_v21 }
 0x6c3   :  { %v740_v29 = vmul.f32 %v5258_v18, %v736_v26  ;;  %v544_v26 = vld [vmem:[#allocation7 + $0xb8] sm:$0xff] }
 0x724   :  { %v747_v16 = vpop.permute.xlu1 %746 }
 0x725   :  { %v751_v17 = vmul.f32 %v5256_v14, %v747_v16  ;;  %v5878_v16 = vpack.c.bf16 %v538_v13, %v537_v12 }
 0x726   :  { %v745_v19 = vpop.permute.xlu0 %744 }
 0x727   :  { %756 = vrot.lane.b32.xlu1 %v751_v17, %s5622_s22  ;;  %v750_v20 = vmul.f32 %v5258_v18, %v745_v19  ;;  %v540_v17 = vld [vmem:[#allocation7 + $0x98] sm:$0xff]  ;;  %4903 = vmatpush3.bf16.msra.mxu0 %v5878_v16  ;;  %v541_v19 = vld [vmem:[#allocation7 + $0xa0] sm:$0xff] }
 0x728   :  { %4904 = vmatprep.subr.bf16.mxu0 %v5618_v1 }
 0x729   :  { %754 = vrot.lane.b32.xlu0 %v750_v20, %s5622_s22  ;;  %v542_v20 = vld [vmem:[#allocation7 + $0xa8] sm:$0xff] }
 0x72a   :  { %v5887_v21 = vpack.c.bf16 %v542_v20, %v541_v19 }
 0x799   :  { %v757_v27 = vpop.permute.xlu1 %756 }
 0x79a   :  { %v5852_v28 = vadd.f32 %v757_v27, %v741_v22  ;;  %v543_v22 = vld [vmem:[#allocation7 + $0xb0] sm:$0xff] }
 0x79b   :  { %v755_v30 = vpop.permute.xlu0 %754 }
 0x79c   :  { %5259 = vtanh.f32 %v5852_v28  ;;  %v5855_v32 = vadd.f32 %v755_v30, %v740_v29  ;;  %v5894_v29 = vpack.c.bf16 %v544_v26, %v543_v22 }
 0x79e   :  { %5261 = vtanh.f32 %v5855_v32 }
 0x79f   :  { %5263 = vtanh.f32 %v504_v56 }
 0x7a0   :  { %5265 = vpow2.f32 %v3962_v50 }
 0x7a6   :  { %v5260_v33 = vpop.eup %5259 }
 0x7a7   :  { %768 = vrot.lane.b32.xlu1 %v5260_v33, %s5621_s4 }
 0x7a8   :  { %v5262_v35 = vpop.eup %5261 }
 0x7a9   :  { %766 = vrot.lane.b32.xlu0 %v5262_v35, %s5621_s4  ;;  %v5264_v48 = vpop.eup %5263 }
 0x7aa   :  { %v5266_v51 = vpop.eup %5265 }
 0x7ab   :  { %v510_v52 = vadd.f32 1.0, %v5266_v51 }
 0x7ad   :  { %783 = vrot.lane.b32.xlu0 %v782_v53, %s5621_s4  ;;  %5267 = vrcp.f32 %v510_v52 }
 0x7b7   :  { %v5268_v59 = vpop.eup %5267 }
 0x7b8   :  { %v514_v0 = vmul.f32 0.0, %v5268_v59 }
 0x819   :  { %v769_v37 = vpop.permute.xlu1 %768 }
 0x81a   :  { %v773_v38 = vmul.f32 %v5256_v14, %v769_v37  ;;  %v539_v14 = vld [vmem:[#allocation7 + $0x90] sm:$0xff] }
 0x81b   :  { %v767_v41 = vpop.permute.xlu0 %766 }
 0x81c   :  { %v776_v39 = vrot.slane %v773_v38, 7  ;;  %v772_v43 = vmul.f32 %v5258_v18, %v767_v41  ;;  %v5881_v18 = vpack.c.bf16 %v540_v17, %v539_v14 }
 0x81e   :  { %v1096_v44 = vrot.slane %v772_v43, 1  ;;  %v778_v46 = vsel %vm777_vm4, %v776_v39, %v772_v43  ;;  %4906 = vmatpush3.bf16.msra.mxu0 %v5881_v18 }
 0x81f   :  { %779 = vrot.lane.b32.xlu1 %v778_v46, %s5622_s22  ;;  %v784_v54 = vpop.permute.xlu0 %783  ;;  %4907 = vmatprep.subr.bf16.mxu0 %v5618_v1 }
 0x820   :  { %v5865_v47 = vsel %vm308_vm2, %v773_v38, %v1096_v44 }
 0x822   :  { %4909 = vmatpush3.bf16.msra.mxu0 %v5887_v21 }
 0x823   :  { %516 = vrot.lane.b32.xlu1 %v5264_v48, %s5621_s4  ;;  %4910 = vmatprep.subr.bf16.mxu0 %v5618_v1 }
 0x826   :  { %4912 = vmatpush3.bf16.msra.mxu0 %v5894_v29 }
 0x827   :  { %4931 = vmatprep.subr.bf16.mxu0 %v5618_v1 }
 0x891   :  { %v780_v55 = vpop.permute.xlu1 %779 }
 0x892   :  { %v786_v57 = vsel %vm80_vm1, %v780_v55, %v784_v54 }
 0x893   :  { %v788_v58 = vrot.slane %v786_v57, 1 }
 0x895   :  { %v517_v61 = vpop.permute.xlu1 %516  ;;  %4404 = vmatmul.mubr.msk.f32.vlgmr.msra.gmra.mrb[6].mxu1 %vm322_vm3, %v788_v58 }
 0x896   :  { %v519_v63 = vmul.f32 %v5268_v59, %v517_v61  ;;  %4441 = vmatprep.mubr.msk.f32.mxu1 %vm5619_vm0, %v5620_v2  ;;  %4945 = vmatpush3.bf16.msra.mxu1 %v5878_v16 }
 0x897   :  { %4946 = vmatprep.subr.bf16.mxu1 %v5618_v1 }
 0x898   :  { %521 = vrot.lane.b32.xlu1 %v519_v63, %s5622_s22 }
 0x89a   :  { %4948 = vmatpush3.bf16.msra.mxu1 %v5881_v18 }
 0x89b   :  { %4949 = vmatprep.subr.bf16.mxu1 %v5618_v1 }
 0x89e   :  { %4951 = vmatpush3.bf16.msra.mxu1 %v5887_v21 }
 0x89f   :  { %4952 = vmatprep.subr.bf16.mxu1 %v5618_v1 }
 0x8a2   :  { %4954 = vmatpush3.bf16.msra.mxu1 %v5894_v29 }
 0x8a3   :  { %4973 = vmatprep.subr.bf16.mxu1 %v5618_v1 }
 0x90a   :  { %v522_v3 = vpop.permute.xlu1 %521 }
 0x90b   :  { %v5873_v5 = vadd.f32 %v522_v3, %v514_v0 }
 0x90d   :  { %5269 = vtanh.f32 %v5873_v5 }
 0x917   :  { %v5270_v6 = vpop.eup %5269 }
 0x918   :  { %527 = vrot.lane.b32.xlu1 %v5270_v6, %s5621_s4 }
 0x968   :  { %v857_v7 = vpop.f32.mrb[6].mxu1 }
 0x969   :  { %v858_v9 = vadd.f32 %v857_v7, %v5752_v23  ;;  %v4405_v11 = vpop.f32.mrb[7].mxu1 }
 0x96b   :  { %5271 = vtanh.f32 %v858_v9  ;;  %v3969_v35 = vmul.f32 -1.442695, %v858_v9 }
 0x96d   :  { %5273 = vpow2.f32 %v3969_v35 }
 0x975   :  { %v5272_v27 = vpop.eup %5271 }
 0x976   :  { %870 = vrot.lane.b32.xlu0 %v5272_v27, %s5621_s4 }
 0x977   :  { %v5274_v53 = vpop.eup %5273 }
 0x978   :  { %v864_v56 = vadd.f32 1.0, %v5274_v53 }
 0x97a   :  { %5275 = vrcp.f32 %v864_v56  ;;  %v1195_v56 = vrot.slane %v5855_v32, 7 }
 0x984   :  { %v5276_v37 = vpop.eup %5275 }
 0x985   :  { %v868_v44 = vmul.f32 %v5276_v37, %v5801_v36 }
 0x98a   :  { %v528_v30 = vpop.permute.xlu1 %527 }
 0x98b   :  { %v530_v33 = vmul.f32 %v5268_v59, %v528_v30 }
 0x98d   :  { %532 = vrot.lane.b32.xlu1 %v530_v33, %s5622_s22 }
 0x991   :  { %889 = vrot.lane.b32.xlu1 %v530_v33, %s5621_s4 }
 0x9e8   :  { %v871_v38 = vpop.permute.xlu0 %870 }
 0x9e9   :  { %v873_v39 = vmul.f32 %v5276_v37, %v871_v38 }
 0x9eb   :  { %875 = vrot.lane.b32.xlu0 %v873_v39, %s5622_s22 }
 0x9ff   :  { %v533_v41 = vpop.permute.xlu1 %532 }
 0xa00   :  { %v535_v43 = vsel %vm80_vm1, %v533_v41, 0.0 }
 0xa01   :  { %4374 = vmatmul.mubr.msk.f32.vlgmr.msra.gmra.mrb[4].mxu0 %vm322_vm3, %v535_v43 }
 0xa02   :  { %4933 = vmatpush3.bf16.msra.mxu0 %v5804_v40  ;;  %4422 = vmatprep.mubr.msk.f32.mxu0 %vm5619_vm0, %v5620_v2 }
 0xa03   :  { %4934 = vmatprep.subr.bf16.mxu0 %v5618_v1  ;;  %v890_v36 = vpop.permute.xlu1 %889 }
 0xa06   :  { %4936 = vmatpush3.bf16.msra.mxu0 %v5807_v42 }
 0xa07   :  { %4937 = vmatprep.subr.bf16.mxu0 %v5618_v1 }
 0xa0a   :  { %4939 = vmatpush3.bf16.msra.mxu0 %v5811_v45 }
 0xa0b   :  { %4940 = vmatprep.subr.bf16.mxu0 %v5618_v1 }
 0xa0e   :  { %4942 = vmatpush3.bf16.msra.mxu0 %v5816_v49 }
 0xa0f   :  { %4955 = vmatprep.subr.bf16.mxu0 %v5618_v1 }
 0xa5d   :  { %v876_v46 = vpop.permute.xlu0 %875 }
 0xa5e   :  { %v5919_v48 = vadd.f32 %v876_v46, %v868_v44 }
 0xa60   :  { %5277 = vtanh.f32 %v5919_v48 }
 0xa6a   :  { %v5278_v50 = vpop.eup %5277 }
 0xa6b   :  { %881 = vrot.lane.b32.xlu0 %v5278_v50, %s5621_s4 }
 0xad4   :  { %v5923_v51 = vpop.f32.mrb[4].mxu0 }
 0xad5   :  { %v4375_v52 = vpop.f32.mrb[5].mxu0 }
 0xadd   :  { %v882_v54 = vpop.permute.xlu0 %881 }
 0xade   :  { %v5925_v55 = vmul.f32 %v5276_v37, %v882_v54  ;;  %v1196_v37 = vrot.slane %v5852_v28, 7 }
 0xae0   :  { %886 = vrot.lane.b32.xlu0 %v5925_v55, %s5622_s22  ;;  %v1241_v28 = vrot.slane %v5925_v55, 6 }
 0xae4   :  { %1098 = vrot.lane.b32.xlu0 %v5865_v47, %s5622_s22 }
 0xb52   :  { %v887_v57 = vpop.permute.xlu0 %886 }
 0xb53   :  { %v892_v58 = vsel %vm80_vm1, %v887_v57, %v890_v36  ;;  %v615_v36 = vadd.f32 %v5923_v51, %v5756_v25 }
 0xb54   :  { %4423 = vmatmul.mubr.msk.f32.vlgmr.msra.gmra.mrb[6].mxu0 %vm322_vm3, %v892_v58 }
 0xb55   :  { %4957 = vmatpush3.bf16.msra.mxu0 %v5733_v10  ;;  %4452 = vmatprep.mubr.msk.f32.mxu0 %vm5619_vm0, %v5620_v2 }
 0xb56   :  { %4958 = vmatprep.subr.bf16.mxu0 %v5618_v1  ;;  %v1099_v59 = vpop.permute.xlu0 %1098 }
 0xb59   :  { %4960 = vmatpush3.bf16.msra.mxu0 %v5737_v15 }
 0xb5a   :  { %4961 = vmatprep.subr.bf16.mxu0 %v5618_v1 }
 0xb5c   :  { %4453 = vmatmul.mubr.msk.f32.vlgmr.msra.gmra.mrb[8].mxu0 %vm80_vm1, %v1099_v59 }
 0xb5d   :  { %4963 = vmatpush3.bf16.msra.mxu0 %v5774_v60  ;;  %4471 = vmatprep.mubr.msk.f32.mxu0 %vm5619_vm0, %v5620_v2 }
 0xb5e   :  { %4964 = vmatprep.subr.bf16.mxu0 %v5618_v1 }
 0xb61   :  { %4966 = vmatpush3.bf16.msra.mxu0 %v5777_v62 }
 0xb62   :  { %4967 = vmatprep.subr.bf16.mxu0 %v5618_v1 }
 0xb65   :  { %4969 = vmatpush3.bf16.msra.mxu0 %v5782_v4 }
 0xb66   :  { %4970 = vmatprep.subr.bf16.mxu0 %v5618_v1 }
 0xb69   :  { %4972 = vmatpush3.bf16.msra.mxu0 %v5787_v8 }
 0xb6a   :  { %4985 = vmatprep.subr.bf16.mxu0 %v5618_v1 }
 0xc27   :  { %v962_v47 = vpop.f32.mrb[6].mxu0 }
 0xc28   :  { %v4424_v61 = vpop.f32.mrb[7].mxu0  ;;  %v963_v50 = vadd.f32 %v962_v47, %v5754_v24 }
 0xc2f   :  { %v1168_v63 = vpop.f32.mrb[8].mxu0 }
 0xc30   :  { %v1173_v0 = vrot.slane %v1168_v63, 6  ;;  %v1174_v3 = vrot.slane %v1168_v63, 7  ;;  %v4454_v6 = vpop.f32.mrb[9].mxu0 }
 0xc32   :  { %v1177_v7 = vadd.f32 %v1173_v0, %v5760_v34  ;;  %v1178_v9 = vadd.f32 %v1174_v3, %v5758_v31 }
 0xc34   :  { %5279 = vtanh.f32 %v1177_v7  ;;  %v3975_v13 = vmul.f32 -1.442695, %v1177_v7  ;;  %v3976_v14 = vmul.f32 -1.442695, %v1178_v9  ;;  %v3964_v7 = vmul.f32 -1.442695, %v615_v36 }
 0xc35   :  { %5281 = vtanh.f32 %v1178_v9 }
 0xc36   :  { %5283 = vpow2.f32 %v3975_v13 }
 0xc37   :  { %5285 = vpow2.f32 %v3976_v14 }
 0xc3e   :  { %v5280_v11 = vpop.eup %5279 }
 0xc3f   :  { %v5282_v12 = vpop.eup %5281  ;;  %1203 = vrot.lane.b32.xlu0 %v5280_v11, %s5621_s4 }
 0xc40   :  { %1205 = vrot.lane.b32.xlu1 %v5282_v12, %s5621_s4  ;;  %v5284_v17 = vpop.eup %5283 }
 0xc41   :  { %v5286_v19 = vpop.eup %5285  ;;  %v1185_v20 = vadd.f32 1.0, %v5284_v17 }
 0xc42   :  { %v1186_v22 = vadd.f32 1.0, %v5286_v19 }
 0xc43   :  { %5287 = vrcp.f32 %v1185_v20 }
 0xc44   :  { %5289 = vrcp.f32 %v1186_v22  ;;  %v3971_v22 = vmul.f32 -1.442695, %v963_v50 }
 0xc4d   :  { %v5288_v26 = vpop.eup %5287 }
 0xc4e   :  { %v5290_v30 = vpop.eup %5289  ;;  %v1199_v38 = vmul.f32 %v5288_v26, %v1195_v56 }
 0xc4f   :  { %v1200_v39 = vmul.f32 %v5290_v30, %v1196_v37 }
 0xcb1   :  { %v1204_v27 = vpop.permute.xlu0 %1203 }
 0xcb2   :  { %v1206_v33 = vpop.permute.xlu1 %1205  ;;  %v1209_v35 = vmul.f32 %v5288_v26, %v1204_v27 }
 0xcb3   :  { %v1210_v53 = vmul.f32 %v5290_v30, %v1206_v33 }
 0xcb4   :  { %1213 = vrot.lane.b32.xlu0 %v1209_v35, %s5622_s22 }
 0xcb5   :  { %1215 = vrot.lane.b32.xlu1 %v1210_v53, %s5622_s22 }
 0xd26   :  { %v1214_v41 = vpop.permute.xlu0 %1213 }
 0xd27   :  { %v1216_v43 = vpop.permute.xlu1 %1215  ;;  %v5958_v44 = vadd.f32 %v1214_v41, %v1199_v38 }
 0xd28   :  { %v5960_v46 = vadd.f32 %v1216_v43, %v1200_v39 }
 0xd29   :  { %5291 = vtanh.f32 %v5958_v44 }
 0xd2a   :  { %5293 = vtanh.f32 %v5960_v46 }
 0xd2b   :  { %5295 = vtanh.f32 %v963_v50 }
 0xd2c   :  { %5297 = vtanh.f32 %v615_v36 }
 0xd2d   :  { %5299 = vpow2.f32 %v3964_v7 }
 0xd33   :  { %v5292_v52 = vpop.eup %5291 }
 0xd34   :  { %v5294_v54 = vpop.eup %5293  ;;  %1225 = vrot.lane.b32.xlu0 %v5292_v52, %s5621_s4 }
 0xd35   :  { %1227 = vrot.lane.b32.xlu1 %v5294_v54, %s5621_s4  ;;  %v5296_v32 = vpop.eup %5295 }
 0xd36   :  { %v5298_v6 = vpop.eup %5297 }
 0xd37   :  { %v5300_v51 = vpop.eup %5299 }
 0xd38   :  { %1242 = vrot.lane.b32.xlu0 %v1241_v28, %s5621_s4  ;;  %v621_v9 = vadd.f32 1.0, %v5300_v51 }
 0xd3a   :  { %5301 = vrcp.f32 %v621_v9 }
 0xd3b   :  { %5303 = vpow2.f32 %v3971_v22 }
 0xd3c   :  { %975 = vrot.lane.b32.xlu0 %v5296_v32, %s5621_s4 }
 0xd44   :  { %v5302_v17 = vpop.eup %5301 }
 0xd45   :  { %v625_v37 = vmul.f32 0.0, %v5302_v17 }
 0xda6   :  { %v1226_v57 = vpop.permute.xlu0 %1225 }
 0xda7   :  { %v1228_v58 = vpop.permute.xlu1 %1227  ;;  %v1231_v59 = vmul.f32 %v5288_v26, %v1226_v57  ;;  %v5304_v26 = vpop.eup %5303 }
 0xda8   :  { %v1232_v47 = vmul.f32 %v5290_v30, %v1228_v58  ;;  %v969_v33 = vadd.f32 1.0, %v5304_v26 }
 0xda9   :  { %v1555_v61 = vrot.slane %v1231_v59, 2 }
 0xdaa   :  { %v1235_v63 = vrot.slane %v1232_v47, 7  ;;  %v1556_v0 = vrot.slane %v1232_v47, 1  ;;  %v1243_v11 = vpop.permute.xlu0 %1242 }
 0xdac   :  { %v1237_v3 = vsel %vm1236_vm5, %v1235_v63, %v1231_v59  ;;  %v5973_v55 = vsel %vm308_vm2, %v1556_v0, %v1555_v61 }
 0xdad   :  { %1238 = vrot.lane.b32.xlu1 %v1237_v3, %s5622_s22 }
 0xdae   :  { %v976_v27 = vpop.permute.xlu0 %975 }
 0xdb1   :  { %627 = vrot.lane.b32.xlu1 %v5298_v6, %s5621_s4 }
 0xe1f   :  { %v1239_v12 = vpop.permute.xlu1 %1238 }
 0xe20   :  { %v1245_v13 = vsel %vm80_vm1, %v1239_v12, %v1243_v11 }
 0xe21   :  { %v1247_v14 = vrot.slane %v1245_v13, 2 }
 0xe23   :  { %v628_v19 = vpop.permute.xlu1 %627  ;;  %4472 = vmatmul.mubr.msk.f32.vlgmr.msra.gmra.mrb[10].mxu0 %vm322_vm3, %v1247_v14 }
 0xe24   :  { %v630_v20 = vmul.f32 %v5302_v17, %v628_v19  ;;  %4987 = vmatpush3.bf16.msra.mxu0 %v5878_v16  ;;  %4509 = vmatprep.mubr.msk.f32.mxu0 %vm5619_vm0, %v5620_v2 }
 0xe25   :  { %4988 = vmatprep.subr.bf16.mxu0 %v5618_v1 }
 0xe26   :  { %632 = vrot.lane.b32.xlu0 %v630_v20, %s5622_s22 }
 0xe28   :  { %4990 = vmatpush3.bf16.msra.mxu0 %v5881_v18 }
 0xe29   :  { %4991 = vmatprep.subr.bf16.mxu0 %v5618_v1 }
 0xe2c   :  { %4993 = vmatpush3.bf16.msra.mxu0 %v5887_v21 }
 0xe2d   :  { %4994 = vmatprep.subr.bf16.mxu0 %v5618_v1 }
 0xe30   :  { %4996 = vmatpush3.bf16.msra.mxu0 %v5894_v29 }
 0xe31   :  { %5015 = vmatprep.subr.bf16.mxu0 %v5618_v1 }
 0xe98   :  { %v633_v56 = vpop.permute.xlu0 %632 }
 0xe99   :  { %v5991_v38 = vadd.f32 %v633_v56, %v625_v37 }
 0xef6   :  { %v1316_v30 = vpop.f32.mrb[10].mxu0 }
 0xef7   :  { %v1317_v35 = vadd.f32 %v1316_v30, %v5752_v23  ;;  %v4473_v53 = vpop.f32.mrb[11].mxu0 }
 0xef9   :  { %5305 = vtanh.f32 %v1317_v35  ;;  %v3978_v52 = vmul.f32 -1.442695, %v1317_v35 }
 0xefa   :  { %5307 = vrcp.f32 %v969_v33 }
 0xefb   :  { %5309 = vtanh.f32 %v5991_v38 }
 0xefc   :  { %5311 = vpow2.f32 %v3978_v52 }
 0xf03   :  { %v5306_v39 = vpop.eup %5305 }
 0xf04   :  { %1329 = vrot.lane.b32.xlu1 %v5306_v39, %s5621_s4  ;;  %v5308_v41 = vpop.eup %5307 }
 0xf05   :  { %v978_v43 = vmul.f32 %v5308_v41, %v976_v27  ;;  %v5310_v50 = vpop.eup %5309  ;;  %v973_v58 = vmul.f32 %v5308_v41, %v5873_v5 }
 0xf06   :  { %v5312_v54 = vpop.eup %5311 }
 0xf07   :  { %v1323_v28 = vadd.f32 1.0, %v5312_v54 }
 0xf08   :  { %980 = vrot.lane.b32.xlu1 %v978_v43, %s5622_s22 }
 0xf09   :  { %5313 = vrcp.f32 %v1323_v28 }
 0xf0c   :  { %638 = vrot.lane.b32.xlu1 %v5310_v50, %s5621_s4 }
 0xf13   :  { %v5314_v32 = vpop.eup %5313 }
 0xf14   :  { %v1327_v63 = vmul.f32 %v5314_v32, %v5919_v48 }
 0xf76   :  { %v1330_v36 = vpop.permute.xlu1 %1329 }
 0xf77   :  { %v1332_v57 = vmul.f32 %v5314_v32, %v1330_v36 }
 0xf79   :  { %1334 = vrot.lane.b32.xlu0 %v1332_v57, %s5622_s22 }
 0xf7a   :  { %v981_v59 = vpop.permute.xlu1 %980 }
 0xf7b   :  { %v5999_v47 = vadd.f32 %v981_v59, %v973_v58 }
 0xf7d   :  { %5315 = vtanh.f32 %v5999_v47 }
 0xf7e   :  { %v639_v7 = vpop.permute.xlu1 %638 }
 0xf7f   :  { %v641_v51 = vmul.f32 %v5302_v17, %v639_v7  ;;  %v1656_v7 = vrot.slane %v5960_v46, 7 }
 0xf87   :  { %v5316_v61 = vpop.eup %5315 }
 0xf88   :  { %986 = vrot.lane.b32.xlu0 %v5316_v61, %s5621_s4 }
 0xfeb   :  { %v1335_v0 = vpop.permute.xlu0 %1334 }
 0xfec   :  { %v6004_v3 = vadd.f32 %v1335_v0, %v1327_v63 }
 0xfee   :  { %5317 = vtanh.f32 %v6004_v3 }
 0xff8   :  { %v5318_v6 = vpop.eup %5317 }
 0xff9   :  { %1340 = vrot.lane.b32.xlu1 %v5318_v6, %s5621_s4  ;;  %v1655_v6 = vrot.slane %v5958_v44, 7 }
 0xffa   :  { %v987_v5 = vpop.permute.xlu0 %986 }
 0xffb   :  { %v989_v9 = vmul.f32 %v5308_v41, %v987_v5 }
 0xffd   :  { %991 = vrot.lane.b32.xlu0 %v989_v9, %s5622_s22  ;;  %995 = vrot.lane.b32.xlu1 %v641_v51, %s5621_s4 }
0x1001   :  { %1348 = vrot.lane.b32.xlu1 %v989_v9, %s5621_s4 }
0x106b   :  { %v1341_v11 = vpop.permute.xlu1 %1340 }
0x106c   :  { %v6011_v48 = vmul.f32 %v5314_v32, %v1341_v11 }
0x106e   :  { %1345 = vrot.lane.b32.xlu0 %v6011_v48, %s5622_s22  ;;  %v1701_v44 = vrot.slane %v6011_v48, 5 }
0x106f   :  { %v992_v12 = vpop.permute.xlu0 %991  ;;  %v996_v13 = vpop.permute.xlu1 %995 }
0x1070   :  { %v998_v14 = vsel %vm80_vm1, %v992_v12, %v996_v13 }
0x1071   :  { %4442 = vmatmul.mubr.msk.f32.vlgmr.msra.gmra.mrb[8].mxu1 %vm322_vm3, %v998_v14 }
0x1072   :  { %1558 = vrot.lane.b32.xlu0 %v5973_v55, %s5622_s22  ;;  %4975 = vmatpush3.bf16.msra.mxu1 %v5804_v40 }
0x1073   :  { %4976 = vmatprep.subr.bf16.mxu1 %v5618_v1  ;;  %4490 = vmatprep.mubr.msk.f32.mxu1 %vm5619_vm0, %v5620_v2  ;;  %v1349_v55 = vpop.permute.xlu1 %1348 }
0x1076   :  { %4978 = vmatpush3.bf16.msra.mxu1 %v5807_v42 }
0x1077   :  { %4979 = vmatprep.subr.bf16.mxu1 %v5618_v1 }
0x107a   :  { %4981 = vmatpush3.bf16.msra.mxu1 %v5811_v45 }
0x107b   :  { %4982 = vmatprep.subr.bf16.mxu1 %v5618_v1 }
0x107e   :  { %4984 = vmatpush3.bf16.msra.mxu1 %v5816_v49 }
0x107f   :  { %4997 = vmatprep.subr.bf16.mxu1 %v5618_v1 }
0x10e0   :  { %v1346_v17 = vpop.permute.xlu0 %1345 }
0x10e1   :  { %v1351_v19 = vsel %vm80_vm1, %v1346_v17, %v1349_v55 }
0x10e2   :  { %4491 = vmatmul.mubr.msk.f32.vlgmr.msra.gmra.mrb[10].mxu1 %vm322_vm3, %v1351_v19 }
0x10e3   :  { %4999 = vmatpush3.bf16.msra.mxu1 %v5733_v10  ;;  %4520 = vmatprep.mubr.msk.f32.mxu1 %vm5619_vm0, %v5620_v2 }
0x10e4   :  { %5000 = vmatprep.subr.bf16.mxu1 %v5618_v1  ;;  %v1559_v20 = vpop.permute.xlu0 %1558 }
0x10e7   :  { %5002 = vmatpush3.bf16.msra.mxu1 %v5737_v15 }
0x10e8   :  { %5003 = vmatprep.subr.bf16.mxu1 %v5618_v1 }
0x10ea   :  { %4521 = vmatmul.mubr.msk.f32.vlgmr.msra.gmra.mrb[12].mxu1 %vm80_vm1, %v1559_v20 }
0x10eb   :  { %5005 = vmatpush3.bf16.msra.mxu1 %v5774_v60  ;;  %4539 = vmatprep.mubr.msk.f32.mxu1 %vm5619_vm0, %v5620_v2 }
0x10ec   :  { %5006 = vmatprep.subr.bf16.mxu1 %v5618_v1 }
0x10ef   :  { %5008 = vmatpush3.bf16.msra.mxu1 %v5777_v62 }
0x10f0   :  { %5009 = vmatprep.subr.bf16.mxu1 %v5618_v1 }
0x10f3   :  { %5011 = vmatpush3.bf16.msra.mxu1 %v5782_v4 }
0x10f4   :  { %5012 = vmatprep.subr.bf16.mxu1 %v5618_v1 }
0x10f7   :  { %5014 = vmatpush3.bf16.msra.mxu1 %v5787_v8 }
0x10f8   :  { %5027 = vmatprep.subr.bf16.mxu1 %v5618_v1 }
0x1144   :  { %v1068_v22 = vpop.f32.mrb[8].mxu1 }
0x1145   :  { %v4443_v26 = vpop.f32.mrb[9].mxu1  ;;  %v1069_v19 = vadd.f32 %v1068_v22, %v5756_v25 }
0x11b5   :  { %v1421_v27 = vpop.f32.mrb[10].mxu1 }
0x11b6   :  { %v4492_v30 = vpop.f32.mrb[11].mxu1  ;;  %v1422_v14 = vadd.f32 %v1421_v27, %v5754_v24 }
0x11bd   :  { %v1628_v33 = vpop.f32.mrb[12].mxu1 }
0x11be   :  { %v1633_v35 = vrot.slane %v1628_v33, 5  ;;  %v1634_v53 = vrot.slane %v1628_v33, 6  ;;  %v4522_v56 = vpop.f32.mrb[13].mxu1 }
0x11c0   :  { %v1637_v37 = vadd.f32 %v1633_v35, %v5760_v34  ;;  %v1638_v39 = vadd.f32 %v1634_v53, %v5758_v31 }
0x11c2   :  { %5319 = vtanh.f32 %v1637_v37  ;;  %v3984_v50 = vmul.f32 -1.442695, %v1637_v37  ;;  %v3985_v52 = vmul.f32 -1.442695, %v1638_v39 }
0x11c3   :  { %5321 = vtanh.f32 %v1638_v39  ;;  %v3973_v39 = vmul.f32 -1.442695, %v1069_v19 }
0x11c4   :  { %5323 = vpow2.f32 %v3984_v50 }
0x11c5   :  { %5325 = vpow2.f32 %v3985_v52 }
0x11cc   :  { %v5320_v41 = vpop.eup %5319 }
0x11cd   :  { %v5322_v43 = vpop.eup %5321  ;;  %1663 = vrot.lane.b32.xlu0 %v5320_v41, %s5621_s4 }
0x11ce   :  { %1665 = vrot.lane.b32.xlu1 %v5322_v43, %s5621_s4  ;;  %v5324_v54 = vpop.eup %5323 }
0x11cf   :  { %v5326_v28 = vpop.eup %5325  ;;  %v1645_v32 = vadd.f32 1.0, %v5324_v54 }
0x11d0   :  { %v1646_v36 = vadd.f32 1.0, %v5326_v28 }
0x11d1   :  { %5327 = vrcp.f32 %v1645_v32 }
0x11d2   :  { %5329 = vrcp.f32 %v1646_v36 }
0x11db   :  { %v5328_v57 = vpop.eup %5327 }
0x11dc   :  { %v5330_v59 = vpop.eup %5329  ;;  %v1659_v5 = vmul.f32 %v5328_v57, %v1655_v6 }
0x11dd   :  { %v1660_v51 = vmul.f32 %v5330_v59, %v1656_v7 }
0x123f   :  { %v1664_v58 = vpop.permute.xlu0 %1663 }
0x1240   :  { %v1666_v61 = vpop.permute.xlu1 %1665  ;;  %v1669_v63 = vmul.f32 %v5328_v57, %v1664_v58 }
0x1241   :  { %v1670_v0 = vmul.f32 %v5330_v59, %v1666_v61 }
0x1242   :  { %1673 = vrot.lane.b32.xlu0 %v1669_v63, %s5622_s22 }
0x1243   :  { %1675 = vrot.lane.b32.xlu1 %v1670_v0, %s5622_s22 }
0x12b4   :  { %v1674_v9 = vpop.permute.xlu0 %1673 }
0x12b5   :  { %v1676_v11 = vpop.permute.xlu1 %1675  ;;  %v6056_v12 = vadd.f32 %v1674_v9, %v1659_v5 }
0x12b6   :  { %v6058_v13 = vadd.f32 %v1676_v11, %v1660_v51 }
0x12b7   :  { %5331 = vtanh.f32 %v6056_v12 }
0x12b8   :  { %5333 = vtanh.f32 %v6058_v13 }
0x12b9   :  { %5335 = vtanh.f32 %v1422_v14 }
0x12ba   :  { %5337 = vtanh.f32 %v1069_v19 }
0x12bb   :  { %5339 = vpow2.f32 %v3973_v39 }
0x12c1   :  { %v5332_v55 = vpop.eup %5331 }
0x12c2   :  { %v5334_v17 = vpop.eup %5333  ;;  %1685 = vrot.lane.b32.xlu0 %v5332_v55, %s5621_s4 }
0x12c3   :  { %1687 = vrot.lane.b32.xlu1 %v5334_v17, %s5621_s4  ;;  %v5336_v46 = vpop.eup %5335 }
0x12c4   :  { %v5338_v48 = vpop.eup %5337 }
0x12c5   :  { %v5340_v22 = vpop.eup %5339 }
0x12c6   :  { %1702 = vrot.lane.b32.xlu0 %v1701_v44, %s5621_s4  ;;  %v1075_v41 = vadd.f32 1.0, %v5340_v22 }
0x12c8   :  { %5341 = vrcp.f32 %v1075_v41 }
0x12ca   :  { %1434 = vrot.lane.b32.xlu0 %v5336_v46, %s5621_s4 }
0x12d2   :  { %v5342_v28 = vpop.eup %5341 }
0x12d3   :  { %v1079_v5 = vmul.f32 %v5342_v28, %v5991_v38 }
0x1334   :  { %v1686_v20 = vpop.permute.xlu0 %1685 }
0x1335   :  { %v1688_v26 = vpop.permute.xlu1 %1687  ;;  %v1691_v27 = vmul.f32 %v5328_v57, %v1686_v20  ;;  %v3980_v57 = vmul.f32 -1.442695, %v1422_v14 }
0x1336   :  { %v1692_v30 = vmul.f32 %v5330_v59, %v1688_v26 }
0x1337   :  { %v2015_v33 = vrot.slane %v1691_v27, 3  ;;  %5343 = vpow2.f32 %v3980_v57 }
0x1338   :  { %v1695_v35 = vrot.slane %v1692_v30, 7  ;;  %v2016_v53 = vrot.slane %v1692_v30, 2  ;;  %v1703_v43 = vpop.permute.xlu0 %1702 }
0x133a   :  { %v1697_v56 = vsel %vm1696_vm6, %v1695_v35, %v1691_v27  ;;  %v6070_v37 = vsel %vm308_vm2, %v2016_v53, %v2015_v33 }
0x133b   :  { %1698 = vrot.lane.b32.xlu1 %v1697_v56, %s5622_s22 }
0x133c   :  { %v1435_v59 = vpop.permute.xlu0 %1434 }
0x133f   :  { %1081 = vrot.lane.b32.xlu1 %v5338_v48, %s5621_s4 }
0x1341   :  { %v5344_v58 = vpop.eup %5343 }
0x1342   :  { %v1428_v63 = vadd.f32 1.0, %v5344_v58 }
0x13ad   :  { %v1699_v50 = vpop.permute.xlu1 %1698 }
0x13ae   :  { %v1705_v52 = vsel %vm80_vm1, %v1699_v50, %v1703_v43 }
0x13af   :  { %v1707_v54 = vrot.slane %v1705_v52, 3 }
0x13b1   :  { %v1082_v32 = vpop.permute.xlu1 %1081  ;;  %4540 = vmatmul.mubr.msk.f32.vlgmr.msra.gmra.mrb[14].mxu1 %vm322_vm3, %v1707_v54 }
0x13b2   :  { %v1084_v36 = vmul.f32 %v5342_v28, %v1082_v32  ;;  %5029 = vmatpush3.bf16.msra.mxu1 %v5878_v16  ;;  %4577 = vmatprep.mubr.msk.f32.mxu1 %vm5619_vm0, %v5620_v2 }
0x13b3   :  { %5030 = vmatprep.subr.bf16.mxu1 %v5618_v1 }
0x13b4   :  { %1086 = vrot.lane.b32.xlu0 %v1084_v36, %s5622_s22 }
0x13b6   :  { %5032 = vmatpush3.bf16.msra.mxu1 %v5881_v18 }
0x13b7   :  { %5033 = vmatprep.subr.bf16.mxu1 %v5618_v1 }
0x13ba   :  { %5035 = vmatpush3.bf16.msra.mxu1 %v5887_v21 }
0x13bb   :  { %5036 = vmatprep.subr.bf16.mxu1 %v5618_v1 }
0x13be   :  { %5038 = vmatpush3.bf16.msra.mxu1 %v5894_v29 }
0x13bf   :  { %5057 = vmatprep.subr.bf16.mxu1 %v5618_v1 }
0x1426   :  { %v1087_v7 = vpop.permute.xlu0 %1086 }
0x1427   :  { %v6089_v51 = vadd.f32 %v1087_v7, %v1079_v5 }
0x1484   :  { %v1776_v61 = vpop.f32.mrb[14].mxu1 }
0x1485   :  { %v1777_v0 = vadd.f32 %v1776_v61, %v5752_v23  ;;  %v4541_v6 = vpop.f32.mrb[15].mxu1 }
0x1487   :  { %5345 = vtanh.f32 %v1777_v0  ;;  %v3987_v17 = vmul.f32 -1.442695, %v1777_v0 }
0x1488   :  { %5347 = vrcp.f32 %v1428_v63 }
0x1489   :  { %5349 = vtanh.f32 %v6089_v51 }
0x148a   :  { %5351 = vpow2.f32 %v3987_v17 }
0x1491   :  { %v5346_v9 = vpop.eup %5345 }
0x1492   :  { %1789 = vrot.lane.b32.xlu1 %v5346_v9, %s5621_s4  ;;  %v5348_v11 = vpop.eup %5347 }
0x1493   :  { %v1437_v14 = vmul.f32 %v5348_v11, %v1435_v59  ;;  %v5350_v55 = vpop.eup %5349  ;;  %v1432_v26 = vmul.f32 %v5348_v11, %v5999_v47 }
0x1494   :  { %v5352_v44 = vpop.eup %5351 }
0x1495   :  { %v1783_v46 = vadd.f32 1.0, %v5352_v44 }
0x1496   :  { %1439 = vrot.lane.b32.xlu1 %v1437_v14, %s5622_s22 }
0x1497   :  { %5353 = vrcp.f32 %v1783_v46 }
0x149a   :  { %1092 = vrot.lane.b32.xlu1 %v5350_v55, %s5621_s4 }
0x14a1   :  { %v5354_v38 = vpop.eup %5353 }
0x14a2   :  { %v1787_v35 = vmul.f32 %v5354_v38, %v6004_v3 }
0x1504   :  { %v1790_v19 = vpop.permute.xlu1 %1789 }
0x1505   :  { %v1792_v20 = vmul.f32 %v5354_v38, %v1790_v19 }
0x1507   :  { %1794 = vrot.lane.b32.xlu0 %v1792_v20, %s5622_s22 }
0x1508   :  { %v1440_v27 = vpop.permute.xlu1 %1439 }
0x1509   :  { %v6097_v30 = vadd.f32 %v1440_v27, %v1432_v26 }
0x150b   :  { %5355 = vtanh.f32 %v6097_v30 }
0x150c   :  { %v1093_v39 = vpop.permute.xlu1 %1092 }
0x150d   :  { %v1095_v22 = vmul.f32 %v5342_v28, %v1093_v39  ;;  %v2116_v39 = vrot.slane %v6058_v13, 7 }
0x1515   :  { %v5356_v33 = vpop.eup %5355 }
0x1516   :  { %1445 = vrot.lane.b32.xlu0 %v5356_v33, %s5621_s4 }
0x1579   :  { %v1795_v53 = vpop.permute.xlu0 %1794 }
0x157a   :  { %v6102_v56 = vadd.f32 %v1795_v53, %v1787_v35 }
0x157c   :  { %5357 = vtanh.f32 %v6102_v56 }
0x1586   :  { %v5358_v48 = vpop.eup %5357 }
0x1587   :  { %1800 = vrot.lane.b32.xlu1 %v5358_v48, %s5621_s4  ;;  %v2115_v48 = vrot.slane %v6056_v12, 7 }
0x1588   :  { %v1446_v47 = vpop.permute.xlu0 %1445 }
0x1589   :  { %v1448_v41 = vmul.f32 %v5348_v11, %v1446_v47 }
0x158b   :  { %1450 = vrot.lane.b32.xlu0 %v1448_v41, %s5622_s22  ;;  %1454 = vrot.lane.b32.xlu1 %v1095_v22, %s5621_s4 }
0x158f   :  { %1808 = vrot.lane.b32.xlu1 %v1448_v41, %s5621_s4 }
0x15f9   :  { %v1801_v43 = vpop.permute.xlu1 %1800 }
0x15fa   :  { %v6109_v3 = vmul.f32 %v5354_v38, %v1801_v43 }
0x15fc   :  { %1805 = vrot.lane.b32.xlu0 %v6109_v3, %s5622_s22  ;;  %v2161_v12 = vrot.slane %v6109_v3, 4 }
0x15fd   :  { %v1451_v50 = vpop.permute.xlu0 %1450  ;;  %v1455_v52 = vpop.permute.xlu1 %1454 }
0x15fe   :  { %v1457_v54 = vsel %vm80_vm1, %v1451_v50, %v1455_v52 }
0x15ff   :  { %4510 = vmatmul.mubr.msk.f32.vlgmr.msra.gmra.mrb[12].mxu0 %vm322_vm3, %v1457_v54 }
0x1600   :  { %2018 = vrot.lane.b32.xlu0 %v6070_v37, %s5622_s22  ;;  %5017 = vmatpush3.bf16.msra.mxu0 %v5804_v40 }
0x1601   :  { %5018 = vmatprep.subr.bf16.mxu0 %v5618_v1  ;;  %4558 = vmatprep.mubr.msk.f32.mxu0 %vm5619_vm0, %v5620_v2  ;;  %v1809_v37 = vpop.permute.xlu1 %1808 }
0x1604   :  { %5020 = vmatpush3.bf16.msra.mxu0 %v5807_v42 }
0x1605   :  { %5021 = vmatprep.subr.bf16.mxu0 %v5618_v1 }
0x1608   :  { %5023 = vmatpush3.bf16.msra.mxu0 %v5811_v45 }
0x1609   :  { %5024 = vmatprep.subr.bf16.mxu0 %v5618_v1 }
0x160c   :  { %5026 = vmatpush3.bf16.msra.mxu0 %v5816_v49 }
0x160d   :  { %5039 = vmatprep.subr.bf16.mxu0 %v5618_v1 }
0x166e   :  { %v1806_v28 = vpop.permute.xlu0 %1805 }
0x166f   :  { %v1811_v32 = vsel %vm80_vm1, %v1806_v28, %v1809_v37 }
0x1670   :  { %4559 = vmatmul.mubr.msk.f32.vlgmr.msra.gmra.mrb[14].mxu0 %vm322_vm3, %v1811_v32 }
0x1671   :  { %5041 = vmatpush3.bf16.msra.mxu0 %v5733_v10  ;;  %4588 = vmatprep.mubr.msk.f32.mxu0 %vm5619_vm0, %v5620_v2 }
0x1672   :  { %5042 = vmatprep.subr.bf16.mxu0 %v5618_v1  ;;  %v2019_v36 = vpop.permute.xlu0 %2018 }
0x1675   :  { %5044 = vmatpush3.bf16.msra.mxu0 %v5737_v15 }
0x1676   :  { %5045 = vmatprep.subr.bf16.mxu0 %v5618_v1 }
0x1678   :  { %4589 = vmatmul.mubr.msk.f32.vlgmr.msra.gmra.mrb[16].mxu0 %vm80_vm1, %v2019_v36 }
0x1679   :  { %5047 = vmatpush3.bf16.msra.mxu0 %v5774_v60  ;;  %4607 = vmatprep.mubr.msk.f32.mxu0 %vm5619_vm0, %v5620_v2 }
0x167a   :  { %5048 = vmatprep.subr.bf16.mxu0 %v5618_v1 }
0x167d   :  { %5050 = vmatpush3.bf16.msra.mxu0 %v5777_v62 }
0x167e   :  { %5051 = vmatprep.subr.bf16.mxu0 %v5618_v1 }
0x1681   :  { %5053 = vmatpush3.bf16.msra.mxu0 %v5782_v4 }
0x1682   :  { %5054 = vmatprep.subr.bf16.mxu0 %v5618_v1 }
0x1685   :  { %5056 = vmatpush3.bf16.msra.mxu0 %v5787_v8 }
0x1686   :  { %5069 = vmatprep.subr.bf16.mxu0 %v5618_v1 }
0x16d2   :  { %v1527_v57 = vpop.f32.mrb[12].mxu0 }
0x16d3   :  { %v4511_v58 = vpop.f32.mrb[13].mxu0  ;;  %v1528_v32 = vadd.f32 %v1527_v57, %v5756_v25 }
0x1743   :  { %v1881_v59 = vpop.f32.mrb[14].mxu0 }
0x1744   :  { %v4560_v61 = vpop.f32.mrb[15].mxu0  ;;  %v1882_v54 = vadd.f32 %v1881_v59, %v5754_v24 }
0x174b   :  { %v2088_v63 = vpop.f32.mrb[16].mxu0 }
0x174c   :  { %v2093_v0 = vrot.slane %v2088_v63, 4  ;;  %v2094_v6 = vrot.slane %v2088_v63, 5  ;;  %v4590_v7 = vpop.f32.mrb[17].mxu0 }
0x174e   :  { %v2097_v5 = vadd.f32 %v2093_v0, %v5760_v34  ;;  %v2098_v9 = vadd.f32 %v2094_v6, %v5758_v31 }
0x1750   :  { %5359 = vtanh.f32 %v2097_v5  ;;  %v3993_v55 = vmul.f32 -1.442695, %v2097_v5  ;;  %v3994_v17 = vmul.f32 -1.442695, %v2098_v9 }
0x1751   :  { %5361 = vtanh.f32 %v2098_v9  ;;  %v3982_v9 = vmul.f32 -1.442695, %v1528_v32 }
0x1752   :  { %5363 = vpow2.f32 %v3993_v55 }
0x1753   :  { %5365 = vpow2.f32 %v3994_v17 }
0x175a   :  { %v5360_v11 = vpop.eup %5359 }
0x175b   :  { %v5362_v14 = vpop.eup %5361  ;;  %2123 = vrot.lane.b32.xlu0 %v5360_v11, %s5621_s4 }
0x175c   :  { %2125 = vrot.lane.b32.xlu1 %v5362_v14, %s5621_s4  ;;  %v5364_v44 = vpop.eup %5363 }
0x175d   :  { %v5366_v46 = vpop.eup %5365  ;;  %v2105_v38 = vadd.f32 1.0, %v5364_v44 }
0x175e   :  { %v2106_v19 = vadd.f32 1.0, %v5366_v46 }
0x175f   :  { %5367 = vrcp.f32 %v2105_v38 }
0x1760   :  { %5369 = vrcp.f32 %v2106_v19 }
0x1769   :  { %v5368_v20 = vpop.eup %5367 }
0x176a   :  { %v5370_v27 = vpop.eup %5369  ;;  %v2119_v47 = vmul.f32 %v5368_v20, %v2115_v48 }
0x176b   :  { %v2120_v22 = vmul.f32 %v5370_v27, %v2116_v39 }
0x17cd   :  { %v2124_v26 = vpop.permute.xlu0 %2123 }
0x17ce   :  { %v2126_v33 = vpop.permute.xlu1 %2125  ;;  %v2129_v35 = vmul.f32 %v5368_v20, %v2124_v26 }
0x17cf   :  { %v2130_v53 = vmul.f32 %v5370_v27, %v2126_v33 }
0x17d0   :  { %2133 = vrot.lane.b32.xlu0 %v2129_v35, %s5622_s22 }
0x17d1   :  { %2135 = vrot.lane.b32.xlu1 %v2130_v53, %s5622_s22 }
0x1842   :  { %v2134_v41 = vpop.permute.xlu0 %2133 }
0x1843   :  { %v2136_v43 = vpop.permute.xlu1 %2135  ;;  %v6154_v50 = vadd.f32 %v2134_v41, %v2119_v47 }
0x1844   :  { %v6156_v52 = vadd.f32 %v2136_v43, %v2120_v22 }
0x1845   :  { %5371 = vtanh.f32 %v6154_v50 }
0x1846   :  { %5373 = vtanh.f32 %v6156_v52 }
0x1847   :  { %5375 = vtanh.f32 %v1882_v54 }
0x1848   :  { %5377 = vtanh.f32 %v1528_v32 }
0x1849   :  { %5379 = vpow2.f32 %v3982_v9 }
0x184f   :  { %v5372_v37 = vpop.eup %5371 }
0x1850   :  { %v5374_v28 = vpop.eup %5373  ;;  %2145 = vrot.lane.b32.xlu0 %v5372_v37, %s5621_s4 }
0x1851   :  { %2147 = vrot.lane.b32.xlu1 %v5374_v28, %s5621_s4  ;;  %v5376_v13 = vpop.eup %5375 }
0x1852   :  { %v5378_v3 = vpop.eup %5377 }
0x1853   :  { %v5380_v57 = vpop.eup %5379 }
0x1854   :  { %2162 = vrot.lane.b32.xlu0 %v2161_v12, %s5621_s4  ;;  %v1534_v11 = vadd.f32 1.0, %v5380_v57 }
0x1856   :  { %5381 = vrcp.f32 %v1534_v11 }
0x1858   :  { %1894 = vrot.lane.b32.xlu0 %v5376_v13, %s5621_s4 }
0x1860   :  { %v5382_v46 = vpop.eup %5381 }
0x1861   :  { %v1538_v47 = vmul.f32 %v5382_v46, %v6089_v51 }
0x18c2   :  { %v2146_v36 = vpop.permute.xlu0 %2145 }
0x18c3   :  { %v2148_v58 = vpop.permute.xlu1 %2147  ;;  %v2151_v59 = vmul.f32 %v5368_v20, %v2146_v36  ;;  %v3989_v20 = vmul.f32 -1.442695, %v1882_v54 }
0x18c4   :  { %v2152_v61 = vmul.f32 %v5370_v27, %v2148_v58 }
0x18c5   :  { %v2475_v63 = vrot.slane %v2151_v59, 4  ;;  %5383 = vpow2.f32 %v3989_v20 }
0x18c6   :  { %v2155_v0 = vrot.slane %v2152_v61, 7  ;;  %v2476_v6 = vrot.slane %v2152_v61, 3  ;;  %v2163_v14 = vpop.permute.xlu0 %2162 }
0x18c8   :  { %v2157_v7 = vsel %vm2156_vm7, %v2155_v0, %v2151_v59  ;;  %v6168_v5 = vsel %vm308_vm2, %v2476_v6, %v2475_v63 }
0x18c9   :  { %2158 = vrot.lane.b32.xlu1 %v2157_v7, %s5622_s22 }
0x18ca   :  { %v1895_v27 = vpop.permute.xlu0 %1894 }
0x18cd   :  { %1540 = vrot.lane.b32.xlu1 %v5378_v3, %s5621_s4 }
0x18cf   :  { %v5384_v26 = vpop.eup %5383 }
0x18d0   :  { %v1888_v35 = vadd.f32 1.0, %v5384_v26 }
0x193b   :  { %v2159_v55 = vpop.permute.xlu1 %2158 }
0x193c   :  { %v2165_v17 = vsel %vm80_vm1, %v2159_v55, %v2163_v14 }
0x193d   :  { %v2167_v44 = vrot.slane %v2165_v17, 4 }
0x193f   :  { %v1541_v38 = vpop.permute.xlu1 %1540  ;;  %4608 = vmatmul.mubr.msk.f32.vlgmr.msra.gmra.mrb[18].mxu0 %vm322_vm3, %v2167_v44 }
0x1940   :  { %v1543_v19 = vmul.f32 %v5382_v46, %v1541_v38  ;;  %5071 = vmatpush3.bf16.msra.mxu0 %v5878_v16  ;;  %4645 = vmatprep.mubr.msk.f32.mxu0 %vm5619_vm0, %v5620_v2 }
0x1941   :  { %5072 = vmatprep.subr.bf16.mxu0 %v5618_v1 }
0x1942   :  { %1545 = vrot.lane.b32.xlu0 %v1543_v19, %s5622_s22 }
0x1944   :  { %5074 = vmatpush3.bf16.msra.mxu0 %v5881_v18 }
0x1945   :  { %5075 = vmatprep.subr.bf16.mxu0 %v5618_v1 }
0x1948   :  { %5077 = vmatpush3.bf16.msra.mxu0 %v5887_v21 }
0x1949   :  { %5078 = vmatprep.subr.bf16.mxu0 %v5618_v1 }
0x194c   :  { %5080 = vmatpush3.bf16.msra.mxu0 %v5894_v29 }
0x194d   :  { %5099 = vmatprep.subr.bf16.mxu0 %v5618_v1 }
0x19b4   :  { %v1546_v39 = vpop.permute.xlu0 %1545 }
0x19b5   :  { %v6187_v22 = vadd.f32 %v1546_v39, %v1538_v47 }
0x1a12   :  { %v2236_v33 = vpop.f32.mrb[18].mxu0 }
0x1a13   :  { %v2237_v53 = vadd.f32 %v2236_v33, %v5752_v23  ;;  %v4609_v48 = vpop.f32.mrb[19].mxu0 }
0x1a15   :  { %5385 = vtanh.f32 %v2237_v53  ;;  %v3996_v28 = vmul.f32 -1.442695, %v2237_v53 }
0x1a16   :  { %5387 = vrcp.f32 %v1888_v35 }
0x1a17   :  { %5389 = vtanh.f32 %v6187_v22 }
0x1a18   :  { %5391 = vpow2.f32 %v3996_v28 }
0x1a1f   :  { %v5386_v41 = vpop.eup %5385 }
0x1a20   :  { %2249 = vrot.lane.b32.xlu1 %v5386_v41, %s5621_s4  ;;  %v5388_v43 = vpop.eup %5387 }
0x1a21   :  { %v1897_v54 = vmul.f32 %v5388_v43, %v1895_v27  ;;  %v5390_v37 = vpop.eup %5389  ;;  %v1892_v58 = vmul.f32 %v5388_v43, %v6097_v30 }
0x1a22   :  { %v5392_v12 = vpop.eup %5391 }
0x1a23   :  { %v2243_v13 = vadd.f32 1.0, %v5392_v12 }
0x1a24   :  { %1899 = vrot.lane.b32.xlu1 %v1897_v54, %s5622_s22 }
0x1a25   :  { %5393 = vrcp.f32 %v2243_v13 }
0x1a28   :  { %1551 = vrot.lane.b32.xlu1 %v5390_v37, %s5621_s4 }
0x1a2f   :  { %v5394_v51 = vpop.eup %5393 }
0x1a30   :  { %v2247_v0 = vmul.f32 %v5394_v51, %v6102_v56 }
0x1a92   :  { %v2250_v32 = vpop.permute.xlu1 %2249 }
0x1a93   :  { %v2252_v36 = vmul.f32 %v5394_v51, %v2250_v32 }
0x1a95   :  { %2254 = vrot.lane.b32.xlu0 %v2252_v36, %s5622_s22 }
0x1a96   :  { %v1900_v59 = vpop.permute.xlu1 %1899 }
0x1a97   :  { %v6195_v61 = vadd.f32 %v1900_v59, %v1892_v58 }
0x1a99   :  { %5395 = vtanh.f32 %v6195_v61 }
0x1a9a   :  { %v1552_v9 = vpop.permute.xlu1 %1551 }
0x1a9b   :  { %v1554_v57 = vmul.f32 %v5382_v46, %v1552_v9  ;;  %v2576_v9 = vrot.slane %v6156_v52, 7 }
0x1aa3   :  { %v5396_v63 = vpop.eup %5395 }
0x1aa4   :  { %1905 = vrot.lane.b32.xlu0 %v5396_v63, %s5621_s4 }
0x1b07   :  { %v2255_v6 = vpop.permute.xlu0 %2254 }
0x1b08   :  { %v6200_v7 = vadd.f32 %v2255_v6, %v2247_v0 }
0x1b0a   :  { %5397 = vtanh.f32 %v6200_v7 }
0x1b14   :  { %v5398_v3 = vpop.eup %5397 }
0x1b15   :  { %2260 = vrot.lane.b32.xlu1 %v5398_v3, %s5621_s4  ;;  %v2575_v3 = vrot.slane %v6154_v50, 7 }
0x1b16   :  { %v1906_v30 = vpop.permute.xlu0 %1905 }
0x1b17   :  { %v1908_v11 = vmul.f32 %v5388_v43, %v1906_v30 }
0x1b19   :  { %1910 = vrot.lane.b32.xlu0 %v1908_v11, %s5622_s22  ;;  %1914 = vrot.lane.b32.xlu1 %v1554_v57, %s5621_s4 }
0x1b1d   :  { %2268 = vrot.lane.b32.xlu1 %v1908_v11, %s5621_s4 }
0x1b87   :  { %v2261_v14 = vpop.permute.xlu1 %2260 }
0x1b88   :  { %v6207_v56 = vmul.f32 %v5394_v51, %v2261_v14 }
0x1b8a   :  { %2265 = vrot.lane.b32.xlu0 %v6207_v56, %s5622_s22  ;;  %v2621_v50 = vrot.slane %v6207_v56, 3 }
0x1b8b   :  { %v1911_v55 = vpop.permute.xlu0 %1910  ;;  %v1915_v17 = vpop.permute.xlu1 %1914 }
0x1b8c   :  { %v1917_v44 = vsel %vm80_vm1, %v1911_v55, %v1915_v17 }
0x1b8d   :  { %4578 = vmatmul.mubr.msk.f32.vlgmr.msra.gmra.mrb[16].mxu1 %vm322_vm3, %v1917_v44 }
0x1b8e   :  { %2478 = vrot.lane.b32.xlu0 %v6168_v5, %s5622_s22  ;;  %5059 = vmatpush3.bf16.msra.mxu1 %v5804_v40 }
0x1b8f   :  { %5060 = vmatprep.subr.bf16.mxu1 %v5618_v1  ;;  %4626 = vmatprep.mubr.msk.f32.mxu1 %vm5619_vm0, %v5620_v2  ;;  %v2269_v5 = vpop.permute.xlu1 %2268 }
0x1b92   :  { %5062 = vmatpush3.bf16.msra.mxu1 %v5807_v42 }
0x1b93   :  { %5063 = vmatprep.subr.bf16.mxu1 %v5618_v1 }
0x1b96   :  { %5065 = vmatpush3.bf16.msra.mxu1 %v5811_v45 }
0x1b97   :  { %5066 = vmatprep.subr.bf16.mxu1 %v5618_v1 }
0x1b9a   :  { %5068 = vmatpush3.bf16.msra.mxu1 %v5816_v49 }
0x1b9b   :  { %5081 = vmatprep.subr.bf16.mxu1 %v5618_v1 }
0x1bfc   :  { %v2266_v46 = vpop.permute.xlu0 %2265 }
0x1bfd   :  { %v2271_v38 = vsel %vm80_vm1, %v2266_v46, %v2269_v5 }
0x1bfe   :  { %4627 = vmatmul.mubr.msk.f32.vlgmr.msra.gmra.mrb[18].mxu1 %vm322_vm3, %v2271_v38 }
0x1bff   :  { %5083 = vmatpush3.bf16.msra.mxu1 %v5733_v10  ;;  %4656 = vmatprep.mubr.msk.f32.mxu1 %vm5619_vm0, %v5620_v2 }
0x1c00   :  { %5084 = vmatprep.subr.bf16.mxu1 %v5618_v1  ;;  %v2479_v19 = vpop.permute.xlu0 %2478 }
0x1c03   :  { %5086 = vmatpush3.bf16.msra.mxu1 %v5737_v15 }
0x1c04   :  { %5087 = vmatprep.subr.bf16.mxu1 %v5618_v1 }
0x1c06   :  { %4657 = vmatmul.mubr.msk.f32.vlgmr.msra.gmra.mrb[20].mxu1 %vm80_vm1, %v2479_v19 }
0x1c07   :  { %5089 = vmatpush3.bf16.msra.mxu1 %v5774_v60  ;;  %4675 = vmatprep.mubr.msk.f32.mxu1 %vm5619_vm0, %v5620_v2 }
0x1c08   :  { %5090 = vmatprep.subr.bf16.mxu1 %v5618_v1 }
0x1c0b   :  { %5092 = vmatpush3.bf16.msra.mxu1 %v5777_v62 }
0x1c0c   :  { %5093 = vmatprep.subr.bf16.mxu1 %v5618_v1 }
0x1c0f   :  { %5095 = vmatpush3.bf16.msra.mxu1 %v5782_v4 }
0x1c10   :  { %5096 = vmatprep.subr.bf16.mxu1 %v5618_v1 }
0x1c13   :  { %5098 = vmatpush3.bf16.msra.mxu1 %v5787_v8 }
0x1c14   :  { %5111 = vmatprep.subr.bf16.mxu1 %v5618_v1 }
0x1c60   :  { %v1987_v20 = vpop.f32.mrb[16].mxu1 }
0x1c61   :  { %v4579_v26 = vpop.f32.mrb[17].mxu1  ;;  %v1988_v38 = vadd.f32 %v1987_v20, %v5756_v25 }
0x1cd1   :  { %v2341_v27 = vpop.f32.mrb[18].mxu1 }
0x1cd2   :  { %v4628_v33 = vpop.f32.mrb[19].mxu1  ;;  %v2342_v44 = vadd.f32 %v2341_v27, %v5754_v24 }
0x1cd9   :  { %v2548_v35 = vpop.f32.mrb[20].mxu1 }
0x1cda   :  { %v2553_v53 = vrot.slane %v2548_v35, 3  ;;  %v2554_v48 = vrot.slane %v2548_v35, 4  ;;  %v4658_v39 = vpop.f32.mrb[21].mxu1 }
0x1cdc   :  { %v2557_v47 = vadd.f32 %v2553_v53, %v5760_v34  ;;  %v2558_v41 = vadd.f32 %v2554_v48, %v5758_v31 }
0x1cde   :  { %5399 = vtanh.f32 %v2557_v47  ;;  %v4002_v37 = vmul.f32 -1.442695, %v2557_v47  ;;  %v4003_v28 = vmul.f32 -1.442695, %v2558_v41 }
0x1cdf   :  { %5401 = vtanh.f32 %v2558_v41  ;;  %v3991_v41 = vmul.f32 -1.442695, %v1988_v38 }
0x1ce0   :  { %5403 = vpow2.f32 %v4002_v37 }
0x1ce1   :  { %5405 = vpow2.f32 %v4003_v28 }
0x1ce8   :  { %v5400_v43 = vpop.eup %5399 }
0x1ce9   :  { %v5402_v54 = vpop.eup %5401  ;;  %2583 = vrot.lane.b32.xlu0 %v5400_v43, %s5621_s4 }
0x1cea   :  { %2585 = vrot.lane.b32.xlu1 %v5402_v54, %s5621_s4  ;;  %v5404_v12 = vpop.eup %5403 }
0x1ceb   :  { %v5406_v13 = vpop.eup %5405  ;;  %v2565_v51 = vadd.f32 1.0, %v5404_v12 }
0x1cec   :  { %v2566_v32 = vadd.f32 1.0, %v5406_v13 }
0x1ced   :  { %5407 = vrcp.f32 %v2565_v51 }
0x1cee   :  { %5409 = vrcp.f32 %v2566_v32 }
0x1cf7   :  { %v5408_v36 = vpop.eup %5407 }
0x1cf8   :  { %v5410_v59 = vpop.eup %5409  ;;  %v2579_v30 = vmul.f32 %v5408_v36, %v2575_v3 }
0x1cf9   :  { %v2580_v57 = vmul.f32 %v5410_v59, %v2576_v9 }
0x1d5b   :  { %v2584_v58 = vpop.permute.xlu0 %2583 }
0x1d5c   :  { %v2586_v63 = vpop.permute.xlu1 %2585  ;;  %v2589_v0 = vmul.f32 %v5408_v36, %v2584_v58 }
0x1d5d   :  { %v2590_v6 = vmul.f32 %v5410_v59, %v2586_v63 }
0x1d5e   :  { %2593 = vrot.lane.b32.xlu0 %v2589_v0, %s5622_s22 }
0x1d5f   :  { %2595 = vrot.lane.b32.xlu1 %v2590_v6, %s5622_s22 }
0x1dd0   :  { %v2594_v11 = vpop.permute.xlu0 %2593 }
0x1dd1   :  { %v2596_v14 = vpop.permute.xlu1 %2595  ;;  %v6252_v55 = vadd.f32 %v2594_v11, %v2579_v30 }
0x1dd2   :  { %v6254_v17 = vadd.f32 %v2596_v14, %v2580_v57 }
0x1dd3   :  { %5411 = vtanh.f32 %v6252_v55 }
0x1dd4   :  { %5413 = vtanh.f32 %v6254_v17 }
0x1dd5   :  { %5415 = vtanh.f32 %v2342_v44 }
0x1dd6   :  { %5417 = vtanh.f32 %v1988_v38 }
0x1dd7   :  { %5419 = vpow2.f32 %v3991_v41 }
0x1ddd   :  { %v5412_v5 = vpop.eup %5411 }
0x1dde   :  { %v5414_v46 = vpop.eup %5413  ;;  %2605 = vrot.lane.b32.xlu0 %v5412_v5, %s5621_s4 }
0x1ddf   :  { %2607 = vrot.lane.b32.xlu1 %v5414_v46, %s5621_s4  ;;  %v5416_v52 = vpop.eup %5415 }
0x1de0   :  { %v5418_v56 = vpop.eup %5417 }
0x1de1   :  { %v5420_v20 = vpop.eup %5419 }
0x1de2   :  { %2622 = vrot.lane.b32.xlu0 %v2621_v50, %s5621_s4  ;;  %v1994_v43 = vadd.f32 1.0, %v5420_v20 }
0x1de4   :  { %5421 = vrcp.f32 %v1994_v43 }
0x1de6   :  { %2354 = vrot.lane.b32.xlu0 %v5416_v52, %s5621_s4 }
0x1dee   :  { %v5422_v13 = vpop.eup %5421 }
0x1def   :  { %v1998_v30 = vmul.f32 %v5422_v13, %v6187_v22 }
0x1e50   :  { %v2606_v19 = vpop.permute.xlu0 %2605 }
0x1e51   :  { %v2608_v26 = vpop.permute.xlu1 %2607  ;;  %v2611_v27 = vmul.f32 %v5408_v36, %v2606_v19  ;;  %v3998_v36 = vmul.f32 -1.442695, %v2342_v44 }
0x1e52   :  { %v2612_v33 = vmul.f32 %v5410_v59, %v2608_v26 }
0x1e53   :  { %v2935_v35 = vrot.slane %v2611_v27, 5  ;;  %5423 = vpow2.f32 %v3998_v36 }
0x1e54   :  { %v2615_v53 = vrot.slane %v2612_v33, 7  ;;  %v2936_v48 = vrot.slane %v2612_v33, 4  ;;  %v2623_v54 = vpop.permute.xlu0 %2622 }
0x1e56   :  { %v2617_v39 = vsel %vm2616_vm8, %v2615_v53, %v2611_v27  ;;  %v6266_v47 = vsel %vm308_vm2, %v2936_v48, %v2935_v35 }
0x1e57   :  { %2618 = vrot.lane.b32.xlu1 %v2617_v39, %s5622_s22 }
0x1e58   :  { %v2355_v59 = vpop.permute.xlu0 %2354 }
0x1e5b   :  { %2000 = vrot.lane.b32.xlu1 %v5418_v56, %s5621_s4 }
0x1e5d   :  { %v5424_v58 = vpop.eup %5423 }
0x1e5e   :  { %v2348_v0 = vadd.f32 1.0, %v5424_v58 }
0x1ec9   :  { %v2619_v37 = vpop.permute.xlu1 %2618 }
0x1eca   :  { %v2625_v28 = vsel %vm80_vm1, %v2619_v37, %v2623_v54 }
0x1ecb   :  { %v2627_v12 = vrot.slane %v2625_v28, 5 }
0x1ecd   :  { %v2001_v51 = vpop.permute.xlu1 %2000  ;;  %4676 = vmatmul.mubr.msk.f32.vlgmr.msra.gmra.mrb[22].mxu1 %vm322_vm3, %v2627_v12 }
0x1ece   :  { %v2003_v32 = vmul.f32 %v5422_v13, %v2001_v51  ;;  %5113 = vmatpush3.bf16.msra.mxu1 %v5878_v16  ;;  %4713 = vmatprep.mubr.msk.f32.mxu1 %vm5619_vm0, %v5620_v2 }
0x1ecf   :  { %5114 = vmatprep.subr.bf16.mxu1 %v5618_v1 }
0x1ed0   :  { %2005 = vrot.lane.b32.xlu0 %v2003_v32, %s5622_s22 }
0x1ed2   :  { %5116 = vmatpush3.bf16.msra.mxu1 %v5881_v18 }
0x1ed3   :  { %5117 = vmatprep.subr.bf16.mxu1 %v5618_v1 }
0x1ed6   :  { %5119 = vmatpush3.bf16.msra.mxu1 %v5887_v21 }
0x1ed7   :  { %5120 = vmatprep.subr.bf16.mxu1 %v5618_v1 }
0x1eda   :  { %5122 = vmatpush3.bf16.msra.mxu1 %v5894_v29 }
0x1edb   :  { %5141 = vmatprep.subr.bf16.mxu1 %v5618_v1 }
0x1f42   :  { %v2006_v9 = vpop.permute.xlu0 %2005 }
0x1f43   :  { %v6285_v57 = vadd.f32 %v2006_v9, %v1998_v30 }
0x1fa0   :  { %v2696_v63 = vpop.f32.mrb[22].mxu1 }
0x1fa1   :  { %v2697_v6 = vadd.f32 %v2696_v63, %v5752_v23  ;;  %v4677_v3 = vpop.f32.mrb[23].mxu1 }
0x1fa3   :  { %5425 = vtanh.f32 %v2697_v6  ;;  %v4005_v46 = vmul.f32 -1.442695, %v2697_v6 }
0x1fa4   :  { %5427 = vrcp.f32 %v2348_v0 }
0x1fa5   :  { %5429 = vtanh.f32 %v6285_v57 }
0x1fa6   :  { %5431 = vpow2.f32 %v4005_v46 }
0x1fad   :  { %v5426_v11 = vpop.eup %5425 }
0x1fae   :  { %2709 = vrot.lane.b32.xlu1 %v5426_v11, %s5621_s4  ;;  %v5428_v14 = vpop.eup %5427 }
0x1faf   :  { %v2357_v44 = vmul.f32 %v5428_v14, %v2355_v59  ;;  %v5430_v5 = vpop.eup %5429  ;;  %v2352_v26 = vmul.f32 %v5428_v14, %v6195_v61 }
0x1fb0   :  { %v5432_v50 = vpop.eup %5431 }
0x1fb1   :  { %v2703_v52 = vadd.f32 1.0, %v5432_v50 }
0x1fb2   :  { %2359 = vrot.lane.b32.xlu1 %v2357_v44, %s5622_s22 }
0x1fb3   :  { %5433 = vrcp.f32 %v2703_v52 }
0x1fb6   :  { %2011 = vrot.lane.b32.xlu1 %v5430_v5, %s5621_s4 }
0x1fbd   :  { %v5434_v22 = vpop.eup %5433 }
0x1fbe   :  { %v2707_v53 = vmul.f32 %v5434_v22, %v6200_v7 }
0x2020   :  { %v2710_v38 = vpop.permute.xlu1 %2709 }
0x2021   :  { %v2712_v19 = vmul.f32 %v5434_v22, %v2710_v38 }
0x2023   :  { %2714 = vrot.lane.b32.xlu0 %v2712_v19, %s5622_s22 }
0x2024   :  { %v2360_v27 = vpop.permute.xlu1 %2359 }
0x2025   :  { %v6293_v33 = vadd.f32 %v2360_v27, %v2352_v26 }
0x2027   :  { %5435 = vtanh.f32 %v6293_v33 }
0x2028   :  { %v2012_v41 = vpop.permute.xlu1 %2011 }
0x2029   :  { %v2014_v20 = vmul.f32 %v5422_v13, %v2012_v41  ;;  %v3036_v41 = vrot.slane %v6254_v17, 7 }
0x2031   :  { %v5436_v35 = vpop.eup %5435 }
0x2032   :  { %2365 = vrot.lane.b32.xlu0 %v5436_v35, %s5621_s4 }
0x2095   :  { %v2715_v48 = vpop.permute.xlu0 %2714 }
0x2096   :  { %v6298_v39 = vadd.f32 %v2715_v48, %v2707_v53 }
0x2098   :  { %5437 = vtanh.f32 %v6298_v39 }
0x20a2   :  { %v5438_v56 = vpop.eup %5437 }
0x20a3   :  { %2720 = vrot.lane.b32.xlu1 %v5438_v56, %s5621_s4  ;;  %v3035_v56 = vrot.slane %v6252_v55, 7 }
0x20a4   :  { %v2366_v61 = vpop.permute.xlu0 %2365 }
0x20a5   :  { %v2368_v43 = vmul.f32 %v5428_v14, %v2366_v61 }
0x20a7   :  { %2370 = vrot.lane.b32.xlu0 %v2368_v43, %s5622_s22  ;;  %2374 = vrot.lane.b32.xlu1 %v2014_v20, %s5621_s4 }
0x20ab   :  { %2728 = vrot.lane.b32.xlu1 %v2368_v43, %s5621_s4 }
0x2115   :  { %v2721_v54 = vpop.permute.xlu1 %2720 }
0x2116   :  { %v6305_v7 = vmul.f32 %v5434_v22, %v2721_v54 }
0x2118   :  { %2725 = vrot.lane.b32.xlu0 %v6305_v7, %s5622_s22  ;;  %v3081_v55 = vrot.slane %v6305_v7, 2 }
0x2119   :  { %v2371_v37 = vpop.permute.xlu0 %2370  ;;  %v2375_v28 = vpop.permute.xlu1 %2374 }
0x211a   :  { %v2377_v12 = vsel %vm80_vm1, %v2371_v37, %v2375_v28 }
0x211b   :  { %4646 = vmatmul.mubr.msk.f32.vlgmr.msra.gmra.mrb[20].mxu0 %vm322_vm3, %v2377_v12 }
0x211c   :  { %2938 = vrot.lane.b32.xlu0 %v6266_v47, %s5622_s22  ;;  %5101 = vmatpush3.bf16.msra.mxu0 %v5804_v40 }
0x211d   :  { %5102 = vmatprep.subr.bf16.mxu0 %v5618_v1  ;;  %4694 = vmatprep.mubr.msk.f32.mxu0 %vm5619_vm0, %v5620_v2  ;;  %v2729_v47 = vpop.permute.xlu1 %2728 }
0x2120   :  { %5104 = vmatpush3.bf16.msra.mxu0 %v5807_v42 }
0x2121   :  { %5105 = vmatprep.subr.bf16.mxu0 %v5618_v1 }
0x2124   :  { %5107 = vmatpush3.bf16.msra.mxu0 %v5811_v45 }
0x2125   :  { %5108 = vmatprep.subr.bf16.mxu0 %v5618_v1 }
0x2128   :  { %5110 = vmatpush3.bf16.msra.mxu0 %v5816_v49 }
0x2129   :  { %5123 = vmatprep.subr.bf16.mxu0 %v5618_v1 }
0x218a   :  { %v2726_v13 = vpop.permute.xlu0 %2725 }
0x218b   :  { %v2731_v51 = vsel %vm80_vm1, %v2726_v13, %v2729_v47 }
0x218c   :  { %4695 = vmatmul.mubr.msk.f32.vlgmr.msra.gmra.mrb[22].mxu0 %vm322_vm3, %v2731_v51 }
0x218d   :  { %5125 = vmatpush3.bf16.msra.mxu0 %v5733_v10  ;;  %4724 = vmatprep.mubr.msk.f32.mxu0 %vm5619_vm0, %v5620_v2 }
0x218e   :  { %5126 = vmatprep.subr.bf16.mxu0 %v5618_v1  ;;  %v2939_v32 = vpop.permute.xlu0 %2938 }
0x2191   :  { %5128 = vmatpush3.bf16.msra.mxu0 %v5737_v15 }
0x2192   :  { %5129 = vmatprep.subr.bf16.mxu0 %v5618_v1 }
0x2194   :  { %4725 = vmatmul.mubr.msk.f32.vlgmr.msra.gmra.mrb[24].mxu0 %vm80_vm1, %v2939_v32 }
0x2195   :  { %5131 = vmatpush3.bf16.msra.mxu0 %v5774_v60  ;;  %4743 = vmatprep.mubr.msk.f32.mxu0 %vm5619_vm0, %v5620_v2 }
0x2196   :  { %5132 = vmatprep.subr.bf16.mxu0 %v5618_v1 }
0x2199   :  { %5134 = vmatpush3.bf16.msra.mxu0 %v5777_v62 }
0x219a   :  { %5135 = vmatprep.subr.bf16.mxu0 %v5618_v1 }
0x219d   :  { %5137 = vmatpush3.bf16.msra.mxu0 %v5782_v4 }
0x219e   :  { %5138 = vmatprep.subr.bf16.mxu0 %v5618_v1 }
0x21a1   :  { %5140 = vmatpush3.bf16.msra.mxu0 %v5787_v8 }
0x21a2   :  { %5153 = vmatprep.subr.bf16.mxu0 %v5618_v1 }
0x21ee   :  { %v2447_v36 = vpop.f32.mrb[20].mxu0 }
0x21ef   :  { %v4647_v58 = vpop.f32.mrb[21].mxu0  ;;  %v2448_v51 = vadd.f32 %v2447_v36, %v5756_v25 }
0x225f   :  { %v2801_v59 = vpop.f32.mrb[22].mxu0 }
0x2260   :  { %v4696_v63 = vpop.f32.mrb[23].mxu0  ;;  %v2802_v12 = vadd.f32 %v2801_v59, %v5754_v24 }
0x2267   :  { %v3008_v0 = vpop.f32.mrb[24].mxu0 }
0x2268   :  { %v3013_v6 = vrot.slane %v3008_v0, 2  ;;  %v3014_v3 = vrot.slane %v3008_v0, 3  ;;  %v4726_v9 = vpop.f32.mrb[25].mxu0 }
0x226a   :  { %v3017_v30 = vadd.f32 %v3013_v6, %v5760_v34  ;;  %v3018_v11 = vadd.f32 %v3014_v3, %v5758_v31 }
0x226c   :  { %5439 = vtanh.f32 %v3017_v30  ;;  %v4011_v5 = vmul.f32 -1.442695, %v3017_v30  ;;  %v4012_v46 = vmul.f32 -1.442695, %v3018_v11 }
0x226d   :  { %5441 = vtanh.f32 %v3018_v11  ;;  %v4000_v11 = vmul.f32 -1.442695, %v2448_v51 }
0x226e   :  { %5443 = vpow2.f32 %v4011_v5 }
0x226f   :  { %5445 = vpow2.f32 %v4012_v46 }
0x2276   :  { %v5440_v14 = vpop.eup %5439 }
0x2277   :  { %v5442_v44 = vpop.eup %5441  ;;  %3043 = vrot.lane.b32.xlu0 %v5440_v14, %s5621_s4 }
0x2278   :  { %3045 = vrot.lane.b32.xlu1 %v5442_v44, %s5621_s4  ;;  %v5444_v50 = vpop.eup %5443 }
0x2279   :  { %v5446_v52 = vpop.eup %5445  ;;  %v3025_v22 = vadd.f32 1.0, %v5444_v50 }
0x227a   :  { %v3026_v38 = vadd.f32 1.0, %v5446_v52 }
0x227b   :  { %5447 = vrcp.f32 %v3025_v22 }
0x227c   :  { %5449 = vrcp.f32 %v3026_v38 }
0x2285   :  { %v5448_v19 = vpop.eup %5447 }
0x2286   :  { %v5450_v27 = vpop.eup %5449  ;;  %v3039_v61 = vmul.f32 %v5448_v19, %v3035_v56 }
0x2287   :  { %v3040_v20 = vmul.f32 %v5450_v27, %v3036_v41 }
0x22e9   :  { %v3044_v26 = vpop.permute.xlu0 %3043 }
0x22ea   :  { %v3046_v35 = vpop.permute.xlu1 %3045  ;;  %v3049_v53 = vmul.f32 %v5448_v19, %v3044_v26 }
0x22eb   :  { %v3050_v48 = vmul.f32 %v5450_v27, %v3046_v35 }
0x22ec   :  { %3053 = vrot.lane.b32.xlu0 %v3049_v53, %s5622_s22 }
0x22ed   :  { %3055 = vrot.lane.b32.xlu1 %v3050_v48, %s5622_s22 }
0x235e   :  { %v3054_v43 = vpop.permute.xlu0 %3053 }
0x235f   :  { %v3056_v54 = vpop.permute.xlu1 %3055  ;;  %v6350_v37 = vadd.f32 %v3054_v43, %v3039_v61 }
0x2360   :  { %v6352_v28 = vadd.f32 %v3056_v54, %v3040_v20 }
0x2361   :  { %5451 = vtanh.f32 %v6350_v37 }
0x2362   :  { %5453 = vtanh.f32 %v6352_v28 }
0x2363   :  { %5455 = vtanh.f32 %v2802_v12 }
0x2364   :  { %5457 = vtanh.f32 %v2448_v51 }
0x2365   :  { %5459 = vpow2.f32 %v4000_v11 }
0x236b   :  { %v5452_v47 = vpop.eup %5451 }
0x236c   :  { %v5454_v13 = vpop.eup %5453  ;;  %3065 = vrot.lane.b32.xlu0 %v5452_v47, %s5621_s4 }
0x236d   :  { %3067 = vrot.lane.b32.xlu1 %v5454_v13, %s5621_s4  ;;  %v5456_v17 = vpop.eup %5455 }
0x236e   :  { %v5458_v7 = vpop.eup %5457 }
0x236f   :  { %v5460_v36 = vpop.eup %5459 }
0x2370   :  { %3082 = vrot.lane.b32.xlu0 %v3081_v55, %s5621_s4  ;;  %v2454_v14 = vadd.f32 1.0, %v5460_v36 }
0x2372   :  { %5461 = vrcp.f32 %v2454_v14 }
0x2374   :  { %2814 = vrot.lane.b32.xlu0 %v5456_v17, %s5621_s4 }
0x237c   :  { %v5462_v52 = vpop.eup %5461 }
0x237d   :  { %v2458_v61 = vmul.f32 %v5462_v52, %v6285_v57 }
0x23de   :  { %v3066_v32 = vpop.permute.xlu0 %3065 }
0x23df   :  { %v3068_v58 = vpop.permute.xlu1 %3067  ;;  %v3071_v59 = vmul.f32 %v5448_v19, %v3066_v32  ;;  %v4007_v19 = vmul.f32 -1.442695, %v2802_v12 }
0x23e0   :  { %v3072_v63 = vmul.f32 %v5450_v27, %v3068_v58 }
0x23e1   :  { %v3395_v0 = vrot.slane %v3071_v59, 6  ;;  %5463 = vpow2.f32 %v4007_v19 }
0x23e2   :  { %v3075_v6 = vrot.slane %v3072_v63, 7  ;;  %v3396_v3 = vrot.slane %v3072_v63, 5  ;;  %v3083_v44 = vpop.permute.xlu0 %3082 }
0x23e4   :  { %v3077_v9 = vsel %vm3076_vm9, %v3075_v6, %v3071_v59  ;;  %v6364_v30 = vsel %vm308_vm2, %v3396_v3, %v3395_v0 }
0x23e5   :  { %3078 = vrot.lane.b32.xlu1 %v3077_v9, %s5622_s22 }
0x23e6   :  { %v2815_v27 = vpop.permute.xlu0 %2814 }
0x23e9   :  { %2460 = vrot.lane.b32.xlu1 %v5458_v7, %s5621_s4 }
0x23eb   :  { %v5464_v26 = vpop.eup %5463 }
0x23ec   :  { %v2808_v53 = vadd.f32 1.0, %v5464_v26 }
0x2457   :  { %v3079_v5 = vpop.permute.xlu1 %3078 }
0x2458   :  { %v3085_v46 = vsel %vm80_vm1, %v3079_v5, %v3083_v44 }
0x2459   :  { %v3087_v50 = vrot.slane %v3085_v46, 6 }
0x245b   :  { %v2461_v22 = vpop.permute.xlu1 %2460  ;;  %4744 = vmatmul.mubr.msk.f32.vlgmr.msra.gmra.mrb[26].mxu0 %vm322_vm3, %v3087_v50 }
0x245c   :  { %v2463_v38 = vmul.f32 %v5462_v52, %v2461_v22  ;;  %5155 = vmatpush3.bf16.msra.mxu0 %v5878_v16  ;;  %4781 = vmatprep.mubr.msk.f32.mxu0 %vm5619_vm0, %v5620_v2 }
0x245d   :  { %5156 = vmatprep.subr.bf16.mxu0 %v5618_v1 }
0x245e   :  { %2465 = vrot.lane.b32.xlu0 %v2463_v38, %s5622_s22 }
0x2460   :  { %5158 = vmatpush3.bf16.msra.mxu0 %v5881_v18 }
0x2461   :  { %5159 = vmatprep.subr.bf16.mxu0 %v5618_v1 }
0x2464   :  { %5161 = vmatpush3.bf16.msra.mxu0 %v5887_v21 }
0x2465   :  { %5162 = vmatprep.subr.bf16.mxu0 %v5618_v1 }
0x2468   :  { %5164 = vmatpush3.bf16.msra.mxu0 %v5894_v29 }
0x2469   :  { %5183 = vmatprep.subr.bf16.mxu0 %v5618_v1 }
0x24d0   :  { %v2466_v41 = vpop.permute.xlu0 %2465 }
0x24d1   :  { %v6383_v20 = vadd.f32 %v2466_v41, %v2458_v61 }
0x252e   :  { %v3156_v35 = vpop.f32.mrb[26].mxu0 }
0x252f   :  { %v3157_v48 = vadd.f32 %v3156_v35, %v5752_v23  ;;  %v4745_v56 = vpop.f32.mrb[27].mxu0 }
0x2531   :  { %5465 = vtanh.f32 %v3157_v48  ;;  %v4014_v13 = vmul.f32 -1.442695, %v3157_v48 }
0x2532   :  { %5467 = vrcp.f32 %v2808_v53 }
0x2533   :  { %5469 = vtanh.f32 %v6383_v20 }
0x2534   :  { %5471 = vpow2.f32 %v4014_v13 }
0x253b   :  { %v5466_v43 = vpop.eup %5465 }
0x253c   :  { %3169 = vrot.lane.b32.xlu1 %v5466_v43, %s5621_s4  ;;  %v5468_v54 = vpop.eup %5467 }
0x253d   :  { %v2817_v12 = vmul.f32 %v5468_v54, %v2815_v27  ;;  %v5470_v47 = vpop.eup %5469  ;;  %v2812_v58 = vmul.f32 %v5468_v54, %v6293_v33 }
0x253e   :  { %v5472_v55 = vpop.eup %5471 }
0x253f   :  { %v3163_v17 = vadd.f32 1.0, %v5472_v55 }
0x2540   :  { %2819 = vrot.lane.b32.xlu1 %v2817_v12, %s5622_s22 }
0x2541   :  { %5473 = vrcp.f32 %v3163_v17 }
0x2544   :  { %2471 = vrot.lane.b32.xlu1 %v5470_v47, %s5621_s4 }
0x254b   :  { %v5474_v57 = vpop.eup %5473 }
0x254c   :  { %v3167_v6 = vmul.f32 %v5474_v57, %v6298_v39 }
0x25ae   :  { %v3170_v51 = vpop.permute.xlu1 %3169 }
0x25af   :  { %v3172_v32 = vmul.f32 %v5474_v57, %v3170_v51  ;;  %v3496_v51 = vrot.slane %v6352_v28, 7 }
0x25b1   :  { %3174 = vrot.lane.b32.xlu0 %v3172_v32, %s5622_s22 }
0x25b2   :  { %v2820_v59 = vpop.permute.xlu1 %2819 }
0x25b3   :  { %v6391_v63 = vadd.f32 %v2820_v59, %v2812_v58 }
0x25b5   :  { %5475 = vtanh.f32 %v6391_v63 }
0x25b6   :  { %v2472_v11 = vpop.permute.xlu1 %2471 }
0x25b7   :  { %v2474_v36 = vmul.f32 %v5462_v52, %v2472_v11 }
0x25bf   :  { %v5476_v0 = vpop.eup %5475 }
0x25c0   :  { %2825 = vrot.lane.b32.xlu0 %v5476_v0, %s5621_s4 }
0x2623   :  { %v3175_v3 = vpop.permute.xlu0 %3174 }
0x2624   :  { %v6396_v9 = vadd.f32 %v3175_v3, %v3167_v6 }
0x2626   :  { %5477 = vtanh.f32 %v6396_v9 }
0x2630   :  { %v5478_v7 = vpop.eup %5477 }
0x2631   :  { %3180 = vrot.lane.b32.xlu1 %v5478_v7, %s5621_s4 }
0x2632   :  { %v2826_v33 = vpop.permute.xlu0 %2825 }
0x2633   :  { %v2828_v14 = vmul.f32 %v5468_v54, %v2826_v33 }
0x2635   :  { %2830 = vrot.lane.b32.xlu0 %v2828_v14, %s5622_s22  ;;  %2834 = vrot.lane.b32.xlu1 %v2474_v36, %s5621_s4 }
0x2639   :  { %3188 = vrot.lane.b32.xlu1 %v2828_v14, %s5621_s4 }
0x26a3   :  { %v3181_v44 = vpop.permute.xlu1 %3180 }
0x26a4   :  { %v6403_v39 = vmul.f32 %v5474_v57, %v3181_v44  ;;  %v3495_v57 = vrot.slane %v6350_v37, 7 }
0x26a6   :  { %3185 = vrot.lane.b32.xlu0 %v6403_v39, %s5622_s22 }
0x26a7   :  { %v2831_v5 = vpop.permute.xlu0 %2830  ;;  %v2835_v46 = vpop.permute.xlu1 %2834 }
0x26a8   :  { %v2837_v50 = vsel %vm80_vm1, %v2831_v5, %v2835_v46  ;;  %v3542_v46 = vrot.slane %v6403_v39, 1 }
0x26a9   :  { %4714 = vmatmul.mubr.msk.f32.vlgmr.msra.gmra.mrb[24].mxu1 %vm322_vm3, %v2837_v50 }
0x26aa   :  { %3398 = vrot.lane.b32.xlu0 %v6364_v30, %s5622_s22  ;;  %5143 = vmatpush3.bf16.msra.mxu1 %v5804_v40 }
0x26ab   :  { %5144 = vmatprep.subr.bf16.mxu1 %v5618_v1  ;;  %4762 = vmatprep.mubr.msk.f32.mxu1 %vm5619_vm0, %v5620_v2  ;;  %v3189_v30 = vpop.permute.xlu1 %3188 }
0x26ae   :  { %5146 = vmatpush3.bf16.msra.mxu1 %v5807_v42 }
0x26af   :  { %5147 = vmatprep.subr.bf16.mxu1 %v5618_v1 }
0x26b2   :  { %5149 = vmatpush3.bf16.msra.mxu1 %v5811_v45 }
0x26b3   :  { %5150 = vmatprep.subr.bf16.mxu1 %v5618_v1 }
0x26b6   :  { %5152 = vmatpush3.bf16.msra.mxu1 %v5816_v49 }
0x26b7   :  { %5165 = vmatprep.subr.bf16.mxu1 %v5618_v1 }
0x2718   :  { %v3186_v52 = vpop.permute.xlu0 %3185 }
0x2719   :  { %v3191_v22 = vsel %vm80_vm1, %v3186_v52, %v3189_v30 }
0x271a   :  { %4763 = vmatmul.mubr.msk.f32.vlgmr.msra.gmra.mrb[26].mxu1 %vm322_vm3, %v3191_v22 }
0x271b   :  { %5167 = vmatpush3.bf16.msra.mxu1 %v5733_v10  ;;  %4792 = vmatprep.mubr.msk.f32.mxu1 %vm5619_vm0, %v5620_v2 }
0x271c   :  { %5168 = vmatprep.subr.bf16.mxu1 %v5618_v1  ;;  %v3399_v38 = vpop.permute.xlu0 %3398 }
0x271f   :  { %5170 = vmatpush3.bf16.msra.mxu1 %v5737_v15 }
0x2720   :  { %5171 = vmatprep.subr.bf16.mxu1 %v5618_v1 }
0x2722   :  { %4793 = vmatmul.mubr.msk.f32.vlgmr.msra.gmra.mrb[28].mxu1 %vm80_vm1, %v3399_v38 }
0x2723   :  { %5173 = vmatpush3.bf16.msra.mxu1 %v5774_v60  ;;  %4811 = vmatprep.mubr.msk.f32.mxu1 %vm5619_vm0, %v5620_v2 }
0x2724   :  { %5174 = vmatprep.subr.bf16.mxu1 %v5618_v1 }
0x2727   :  { %5176 = vmatpush3.bf16.msra.mxu1 %v5777_v62 }
0x2728   :  { %5177 = vmatprep.subr.bf16.mxu1 %v5618_v1 }
0x272b   :  { %5179 = vmatpush3.bf16.msra.mxu1 %v5782_v4 }
0x272c   :  { %5180 = vmatprep.subr.bf16.mxu1 %v5618_v1 }
0x272f   :  { %5182 = vmatpush3.bf16.msra.mxu1 %v5787_v8 }
0x2730   :  { %5195 = vmatprep.subr.bf16.mxu1 %v5618_v1 }
0x277c   :  { %v2907_v10 = vpop.f32.mrb[24].mxu1 }
0x277d   :  { %v4715_v15 = vpop.f32.mrb[25].mxu1  ;;  %v2908_v33 = vadd.f32 %v2907_v10, %v5756_v25 }
0x277f   :  { %v4009_v52 = vmul.f32 -1.442695, %v2908_v33 }
0x27ed   :  { %v3261_v60 = vpop.f32.mrb[26].mxu1 }
0x27ee   :  { %v4764_v19 = vpop.f32.mrb[27].mxu1  ;;  %v3262_v37 = vadd.f32 %v3261_v60, %v5754_v24 }
0x27f5   :  { %v3468_v26 = vpop.f32.mrb[28].mxu1 }
0x27f6   :  { %v3473_v27 = vrot.slane %v3468_v26, 1  ;;  %v3474_v35 = vrot.slane %v3468_v26, 2  ;;  %v4794_v53 = vpop.f32.mrb[29].mxu1 }
0x27f8   :  { %v3477_v62 = vadd.f32 %v3473_v27, %v5760_v34  ;;  %v3478_v48 = vadd.f32 %v3474_v35, %v5758_v31 }
0x27fa   :  { %5479 = vtanh.f32 %v3477_v62  ;;  %v4020_v8 = vmul.f32 -1.442695, %v3477_v62  ;;  %v4021_v41 = vmul.f32 -1.442695, %v3478_v48 }
0x27fb   :  { %5481 = vtanh.f32 %v3478_v48 }
0x27fc   :  { %5483 = vpow2.f32 %v4020_v8 }
0x27fd   :  { %5485 = vpow2.f32 %v4021_v41 }
0x2804   :  { %v5480_v4 = vpop.eup %5479 }
0x2805   :  { %v5482_v56 = vpop.eup %5481  ;;  %3503 = vrot.lane.b32.xlu0 %v5480_v4, %s5621_s4  ;;  %v4016_v4 = vmul.f32 -1.442695, %v3262_v37 }
0x2806   :  { %3505 = vrot.lane.b32.xlu1 %v5482_v56, %s5621_s4  ;;  %v5484_v61 = vpop.eup %5483 }
0x2807   :  { %v5486_v43 = vpop.eup %5485  ;;  %v3485_v54 = vadd.f32 1.0, %v5484_v61 }
0x2808   :  { %v3486_v12 = vadd.f32 1.0, %v5486_v43 }
0x2809   :  { %5487 = vrcp.f32 %v3485_v54 }
0x280a   :  { %5489 = vrcp.f32 %v3486_v12 }
0x2813   :  { %v5488_v34 = vpop.eup %5487 }
0x2814   :  { %v5490_v47 = vpop.eup %5489  ;;  %v3499_v32 = vmul.f32 %v5488_v34, %v3495_v57 }
0x2815   :  { %v3500_v58 = vmul.f32 %v5490_v47, %v3496_v51 }
0x2877   :  { %v3504_v31 = vpop.permute.xlu0 %3503 }
0x2878   :  { %v3506_v13 = vpop.permute.xlu1 %3505  ;;  %v3509_v55 = vmul.f32 %v5488_v34, %v3504_v31 }
0x2879   :  { %v3510_v17 = vmul.f32 %v5490_v47, %v3506_v13 }
0x287a   :  { %3513 = vrot.lane.b32.xlu0 %v3509_v55, %s5622_s22 }
0x287b   :  { %3515 = vrot.lane.b32.xlu1 %v3510_v17, %s5622_s22 }
0x28ec   :  { %v3514_v59 = vpop.permute.xlu0 %3513 }
0x28ed   :  { %v3516_v0 = vpop.permute.xlu1 %3515  ;;  %v3519_v6 = vadd.f32 %v3514_v59, %v3499_v32 }
0x28ee   :  { %v3520_v3 = vadd.f32 %v3516_v0, %v3500_v58 }
0x28ef   :  { %5491 = vtanh.f32 %v3519_v6 }
0x28f0   :  { %5493 = vtanh.f32 %v3520_v3 }
0x28f1   :  { %5495 = vtanh.f32 %v2908_v33 }
0x28f2   :  { %5497 = vtanh.f32 %v3262_v37 }
0x28f3   :  { %5499 = vpow2.f32 %v4009_v52 }
0x28f9   :  { %v5492_v7 = vpop.eup %5491 }
0x28fa   :  { %v5494_v11 = vpop.eup %5493  ;;  %3525 = vrot.lane.b32.xlu0 %v5492_v7, %s5621_s4 }
0x28fb   :  { %3527 = vrot.lane.b32.xlu1 %v5494_v11, %s5621_s4  ;;  %v5496_v50 = vpop.eup %5495 }
0x28fc   :  { %v5498_v30 = vpop.eup %5497 }
0x28fd   :  { %v5500_v22 = vpop.eup %5499 }
0x28fe   :  { %v2914_v38 = vadd.f32 1.0, %v5500_v22 }
0x2900   :  { %5501 = vrcp.f32 %v2914_v38 }
0x2901   :  { %5503 = vpow2.f32 %v4016_v4 }
0x290a   :  { %v5502_v35 = vpop.eup %5501 }
0x290b   :  { %v5504_v56 = vpop.eup %5503 }
0x290c   :  { %v3268_v41 = vadd.f32 1.0, %v5504_v56 }
0x296c   :  { %v3526_v28 = vpop.permute.xlu0 %3525 }
0x296d   :  { %v3528_v36 = vpop.permute.xlu1 %3527  ;;  %v3531_v14 = vmul.f32 %v5488_v34, %v3526_v28 }
0x296e   :  { %v3532_v44 = vmul.f32 %v5490_v47, %v3528_v36 }
0x296f   :  { %3536 = vrot.lane.b32.xlu1 %v3531_v14, %s5622_s22 }
0x2970   :  { %v3535_v5 = vrot.slane %v3532_v44, 7 }
0x2972   :  { %3538 = vrot.lane.b32.xlu0 %v3535_v5, %s5622_s22 }
0x2973   :  { %3543 = vrot.lane.b32.xlu1 %v3542_v46, %s5621_s4 }
0x2976   :  { %2920 = vrot.lane.b32.xlu0 %v5496_v50, %s5621_s4 }
0x2977   :  { %3274 = vrot.lane.b32.xlu1 %v5498_v30, %s5621_s4 }
0x29e1   :  { %v3537_v10 = vpop.permute.xlu1 %3536 }
0x29e4   :  { %v3539_v15 = vpop.permute.xlu0 %3538 }
0x29e5   :  { %v3544_v60 = vpop.permute.xlu1 %3543 }
0x29e6   :  { %v3546_v39 = vsel %vm80_vm1, %v3537_v10, %v3544_v60  ;;  %v3547_v19 = vsel %vm80_vm1, %v3539_v15, %v3544_v60 }
0x29e7   :  { %v3551_v26 = vrot.slane %v3546_v39, 7  ;;  %v3552_v27 = vrot.slane %v3547_v19, 7 }
0x29e8   :  { %v2921_v53 = vpop.permute.xlu0 %2920 }
0x29e9   :  { %v2923_v62 = vmul.f32 %v5502_v35, %v2921_v53  ;;  %v3553_v48 = vsel %vm3550_vm10, %v3551_v26, %v3552_v27  ;;  %v3275_v8 = vpop.permute.xlu1 %3274 }
0x29ea   :  { %4812 = vmatmul.mubr.msk.f32.vlgmr.msra.gmra.mrb[30].mxu1 %vm322_vm3, %v3553_v48 }
0x29eb   :  { %2925 = vrot.lane.b32.xlu1 %v2923_v62, %s5622_s22  ;;  %5197 = vmatpush3.bf16.msra.mxu1 %v5878_v16 }
0x29ec   :  { %5198 = vmatprep.subr.bf16.mxu1 %v5618_v1  ;;  %4849 = vmatprep.mubr.msk.f32.mxu1 %vm5619_vm0, %v5620_v2 }
0x29ef   :  { %5200 = vmatpush3.bf16.msra.mxu1 %v5881_v18  ;;  %v2918_v18 = vmul.f32 %v5502_v35, %v6383_v20 }
0x29f0   :  { %5201 = vmatprep.subr.bf16.mxu1 %v5618_v1 }
0x29f3   :  { %5203 = vmatpush3.bf16.msra.mxu1 %v5887_v21 }
0x29f4   :  { %5204 = vmatprep.subr.bf16.mxu1 %v5618_v1 }
0x29f7   :  { %5206 = vmatpush3.bf16.msra.mxu1 %v5894_v29 }
0x2a5d   :  { %v2926_v54 = vpop.permute.xlu1 %2925 }
0x2a5e   :  { %v6473_v12 = vadd.f32 %v2926_v54, %v2918_v18 }
0x2abd   :  { %v3622_v16 = vpop.f32.mrb[30].mxu1 }
0x2abe   :  { %v3623_v61 = vadd.f32 %v3622_v16, %v5752_v23  ;;  %v4813_v43 = vpop.f32.mrb[31].mxu1 }
0x2ac0   :  { %5505 = vtanh.f32 %v3623_v61  ;;  %v4023_v23 = vmul.f32 -1.442695, %v3623_v61 }
0x2ac1   :  { %5507 = vrcp.f32 %v3268_v41 }
0x2ac2   :  { %5509 = vtanh.f32 %v6473_v12 }
0x2ac3   :  { %5511 = vpow2.f32 %v4023_v23 }
0x2aca   :  { %v5506_v21 = vpop.eup %5505 }
0x2acb   :  { %3635 = vrot.lane.b32.xlu0 %v5506_v21, %s5621_s4  ;;  %v5508_v29 = vpop.eup %5507 }
0x2acc   :  { %v3277_v34 = vmul.f32 %v5508_v29, %v3275_v8  ;;  %v5510_v31 = vpop.eup %5509  ;;  %v3272_v57 = vmul.f32 %v5508_v29, %v6391_v63 }
0x2acd   :  { %v5512_v47 = vpop.eup %5511 }
0x2ace   :  { %v3629_v13 = vadd.f32 1.0, %v5512_v47 }
0x2acf   :  { %3279 = vrot.lane.b32.xlu0 %v3277_v34, %s5622_s22 }
0x2ad0   :  { %5513 = vrcp.f32 %v3629_v13 }
0x2ad3   :  { %2931 = vrot.lane.b32.xlu0 %v5510_v31, %s5621_s4 }
0x2ada   :  { %v5514_v20 = vpop.eup %5513 }
0x2adb   :  { %v3633_v59 = vmul.f32 %v5514_v20, %v6396_v9 }
0x2b3d   :  { %v3636_v55 = vpop.permute.xlu0 %3635 }
0x2b3e   :  { %v3638_v17 = vmul.f32 %v5514_v20, %v3636_v55 }
0x2b40   :  { %3640 = vrot.lane.b32.xlu1 %v3638_v17, %s5622_s22 }
0x2b41   :  { %v3280_v51 = vpop.permute.xlu0 %3279 }
0x2b42   :  { %v6481_v32 = vadd.f32 %v3280_v51, %v3272_v57 }
0x2b44   :  { %5515 = vtanh.f32 %v6481_v32 }
0x2b45   :  { %v2932_v7 = vpop.permute.xlu0 %2931 }
0x2b46   :  { %v2934_v33 = vmul.f32 %v5502_v35, %v2932_v7 }
0x2b4e   :  { %v5516_v58 = vpop.eup %5515 }
0x2b4f   :  { %3285 = vrot.lane.b32.xlu1 %v5516_v58, %s5621_s4 }
0x2bb2   :  { %v3641_v0 = vpop.permute.xlu1 %3640 }
0x2bb3   :  { %v3643_v6 = vadd.f32 %v3641_v0, %v3633_v59 }
0x2bb5   :  { %5517 = vtanh.f32 %v3643_v6  ;;  %v3862_v6 = vld [vmem:[%s6548_s5 + $0x8] sm:$0xff] }
0x2bbf   :  { %v5518_v3 = vpop.eup %5517 }
0x2bc0   :  { %3646 = vrot.lane.b32.xlu0 %v5518_v3, %s5621_s4  ;;  %v3863_v3 = vld [vmem:[%s6548_s5 + $0x10] sm:$0xff] }
0x2bc1   :  { %v3286_v11 = vpop.permute.xlu1 %3285 }
0x2bc2   :  { %v3288_v63 = vmul.f32 %v5508_v29, %v3286_v11  ;;  %v3864_v11 = vld [vmem:[%s6548_s5 + $0x18] sm:$0xff] }
0x2bc4   :  { %3290 = vrot.lane.b32.xlu1 %v3288_v63, %s5622_s22  ;;  %3294 = vrot.lane.b32.xlu0 %v2934_v33, %s5621_s4  ;;  %v5211_v33 = vpack.c.bf16 %v3864_v11, %v3863_v3 }
0x2bc8   :  { %3654 = vrot.lane.b32.xlu0 %v3288_v63, %s5621_s4 }
0x2c32   :  { %v3647_v37 = vpop.permute.xlu0 %3646 }
0x2c33   :  { %v3649_v28 = vmul.f32 %v5514_v20, %v3647_v37 }
0x2c35   :  { %3651 = vrot.lane.b32.xlu1 %v3649_v28, %s5622_s22 }
0x2c36   :  { %v3291_v9 = vpop.permute.xlu1 %3290  ;;  %v3295_v36 = vpop.permute.xlu0 %3294 }
0x2c37   :  { %v3297_v14 = vsel %vm80_vm1, %v3291_v9, %v3295_v36  ;;  %v4028_v36 = vld [vmem:[#allocation2] ss:$0 sm:$0xff] }
0x2c38   :  { %4782 = vmatmul.mubr.msk.f32.vlgmr.msra.gmra.mrb[28].mxu0 %vm322_vm3, %v3297_v14 }
0x2c39   :  { %5185 = vmatpush3.bf16.msra.mxu0 %v5804_v40  ;;  %4830 = vmatprep.mubr.msk.f32.mxu0 %vm5619_vm0, %v5620_v2 }
0x2c3a   :  { %5186 = vmatprep.subr.bf16.mxu0 %v5618_v1  ;;  %v3655_v44 = vpop.permute.xlu0 %3654 }
0x2c3d   :  { %5188 = vmatpush3.bf16.msra.mxu0 %v5807_v42 }
0x2c3e   :  { %5189 = vmatprep.subr.bf16.mxu0 %v5618_v1 }
0x2c41   :  { %5191 = vmatpush3.bf16.msra.mxu0 %v5811_v45 }
0x2c42   :  { %5192 = vmatprep.subr.bf16.mxu0 %v5618_v1 }
0x2c45   :  { %5194 = vmatpush3.bf16.msra.mxu0 %v5816_v49 }
0x2c46   :  { %5207 = vmatprep.subr.bf16.mxu0 %v5618_v1 }
0x2ca7   :  { %v3652_v5 = vpop.permute.xlu1 %3651 }
0x2ca8   :  { %v3657_v40 = vsel %vm80_vm1, %v3652_v5, %v3655_v44 }
0x2ca9   :  { %4831 = vmatmul.mubr.msk.f32.vlgmr.msra.gmra.mrb[30].mxu0 %vm322_vm3, %v3657_v40 }
0x2caa   :  { %4860 = vmatprep.mubr.msk.f32.mxu0 %vm5619_vm0, %v5620_v2 }
0x2d0b   :  { %v3367_v42 = vpop.f32.mrb[28].mxu0 }
0x2d0c   :  { %v3368_v46 = vadd.f32 %v3367_v42, %v5756_v25  ;;  %v4783_v50 = vpop.f32.mrb[29].mxu0 }
0x2d0e   :  { %5519 = vtanh.f32 %v3368_v46  ;;  %v4018_v49 = vmul.f32 -1.442695, %v3368_v46 }
0x2d10   :  { %5521 = vpow2.f32 %v4018_v49 }
0x2d18   :  { %v5520_v45 = vpop.eup %5519 }
0x2d19   :  { %3380 = vrot.lane.b32.xlu1 %v5520_v45, %s5621_s4 }
0x2d1a   :  { %v5522_v30 = vpop.eup %5521 }
0x2d1b   :  { %v3374_v22 = vadd.f32 1.0, %v5522_v30 }
0x2d7c   :  { %v3727_v52 = vpop.f32.mrb[30].mxu0 }
0x2d7d   :  { %v3728_v38 = vadd.f32 %v3727_v52, %v5754_v24  ;;  %v4832_v10 = vpop.f32.mrb[31].mxu0 }
0x2d7f   :  { %5523 = vtanh.f32 %v3728_v38  ;;  %v4025_v19 = vmul.f32 -1.442695, %v3728_v38 }
0x2d80   :  { %5525 = vrcp.f32 %v3374_v22 }
0x2d81   :  { %5527 = vpow2.f32 %v4025_v19 }
0x2d89   :  { %v5524_v15 = vpop.eup %5523 }
0x2d8a   :  { %3740 = vrot.lane.b32.xlu0 %v5524_v15, %s5621_s4  ;;  %v5526_v2 = vpop.eup %5525 }
0x2d8b   :  { %v3381_v60 = vpop.permute.xlu1 %3380  ;;  %v5528_v26 = vpop.eup %5527  ;;  %v3378_v24 = vmul.f32 %v5526_v2, %v6473_v12 }
0x2d8c   :  { %v3383_v39 = vmul.f32 %v5526_v2, %v3381_v60  ;;  %v3734_v27 = vadd.f32 1.0, %v5528_v26 }
0x2d8e   :  { %3385 = vrot.lane.b32.xlu1 %v3383_v39, %s5622_s22  ;;  %5529 = vrcp.f32 %v3734_v27 }
0x2d98   :  { %v5530_v35 = vpop.eup %5529 }
0x2d99   :  { %v3738_v8 = vmul.f32 %v5530_v35, %v6481_v32 }
0x2dfc   :  { %v3741_v53 = vpop.permute.xlu0 %3740 }
0x2dfd   :  { %v3743_v62 = vmul.f32 %v5530_v35, %v3741_v53 }
0x2dff   :  { %3745 = vrot.lane.b32.xlu0 %v3743_v62, %s5622_s22 }
0x2e00   :  { %v3386_v48 = vpop.permute.xlu1 %3385 }
0x2e01   :  { %v3388_v4 = vadd.f32 %v3386_v48, %v3378_v24 }
0x2e03   :  { %5531 = vtanh.f32 %v3388_v4 }
0x2e0d   :  { %v5532_v56 = vpop.eup %5531 }
0x2e0e   :  { %3391 = vrot.lane.b32.xlu1 %v5532_v56, %s5621_s4 }
0x2e71   :  { %v3746_v16 = vpop.permute.xlu0 %3745 }
0x2e72   :  { %v3748_v41 = vadd.f32 %v3746_v16, %v3738_v8 }
0x2e74   :  { %5533 = vtanh.f32 %v3748_v41 }
0x2e7e   :  { %v5534_v61 = vpop.eup %5533 }
0x2e7f   :  { %3751 = vrot.lane.b32.xlu0 %v5534_v61, %s5621_s4 }
0x2e80   :  { %v3392_v43 = vpop.permute.xlu1 %3391 }
0x2e81   :  { %v3394_v54 = vmul.f32 %v5526_v2, %v3392_v43 }
0x2e83   :  { %3760 = vrot.lane.b32.xlu0 %v3394_v54, %s5621_s4 }
0x2ef1   :  { %v3752_v18 = vpop.permute.xlu0 %3751 }
0x2ef2   :  { %v3754_v12 = vmul.f32 %v5530_v35, %v3752_v18 }
0x2ef4   :  { %3756 = vrot.lane.b32.xlu1 %v3754_v12, %s5622_s22 }
0x2ef5   :  { %v3761_v21 = vpop.permute.xlu0 %3760 }
0x2f66   :  { %v3757_v29 = vpop.permute.xlu1 %3756 }
0x2f67   :  { %v3763_v34 = vsel %vm80_vm1, %v3757_v29, %v3761_v21 }
0x2f68   :  { %4850 = vmatmul.mubr.msk.f32.vlgmr.msra.gmra.mrb[32].mxu1 %vm322_vm3, %v3763_v34 }
0x303b   :  { %v3833_v31 = vpop.f32.mrb[32].mxu1 }
0x303c   :  { %v3834_v23 = vadd.f32 %v3833_v31, %v5756_v25  ;;  %v4851_v47 = vpop.f32.mrb[33].mxu1  ;;  %v3861_v25 = vld [vmem:[%s6548_s5] sm:$0xff] }
0x303d   :  { %v5208_v7 = vpack.c.bf16 %v3862_v6, %v3861_v25 }
0x303e   :  { %5535 = vtanh.f32 %v3834_v23  ;;  %v4027_v20 = vmul.f32 -1.442695, %v3834_v23 }
0x303f   :  { %5209 = vmatpush3.bf16.msra.mxu0 %v5208_v7 }
0x3040   :  { %5537 = vpow2.f32 %v4027_v20  ;;  %5210 = vmatprep.subr.bf16.mxu0 %v5618_v1 }
0x3043   :  { %5212 = vmatpush3.bf16.msra.mxu0 %v5211_v33 }
0x3048   :  { %v5536_v13 = vpop.eup %5535 }
0x3049   :  { %3846 = vrot.lane.b32.xlu1 %v5536_v13, %s5621_s4 }
0x304a   :  { %v5538_v55 = vpop.eup %5537 }
0x304b   :  { %v3840_v17 = vadd.f32 1.0, %v5538_v55 }
0x304d   :  { %5539 = vrcp.f32 %v3840_v17 }
0x3057   :  { %v5540_v57 = vpop.eup %5539 }
0x3058   :  { %v3844_v58 = vmul.f32 %v5540_v57, %v3388_v4 }
0x30bb   :  { %v3847_v51 = vpop.permute.xlu1 %3846 }
0x30bc   :  { %v3849_v32 = vmul.f32 %v5540_v57, %v3847_v51 }
0x30be   :  { %3851 = vrot.lane.b32.xlu0 %v3849_v32, %s5622_s22 }
0x3130   :  { %v3852_v59 = vpop.permute.xlu0 %3851 }
0x3131   :  { %v3854_v0 = vadd.f32 %v3852_v59, %v3844_v58 }
0x3133   :  { %5541 = vtanh.f32 %v3854_v0 }
0x313d   :  { %v5542_v63 = vpop.eup %5541 }
0x313e   :  { %3857 = vrot.lane.b32.xlu1 %v5542_v63, %s5621_s4 }
0x31b0   :  { %v3858_v37 = vpop.permute.xlu1 %3857 }
0x31b1   :  { %v3860_v28 = vmul.f32 %v5540_v57, %v3858_v37 }
0x31b3   :  { %3873 = vrot.lane.b32.xlu0 %v3860_v28, %s5622_s22 }
0x3225   :  { %v3874_v9 = vpop.permute.xlu0 %3873 }
0x3226   :  { %4861 = vmatmul.mubr.msk.f32.vlgmr.msra.gmra.mrb[32].mxu0 %vm80_vm1, %v3874_v9 }
0x32f9   :  { %v3943_v14 = vpop.f32.mrb[32].mxu0 }
0x32fa   :  { %v3944_v44 = vadd.f32 %v4028_v36, %v3943_v14  ;;  %v4862_v5 = vpop.f32.mrb[33].mxu0 }
0x32fc   :  { %3948 = vst.msk [vmem:[%s6550_s7] sm:$0x3] %vm3947_vm11, %v3944_v44 }
0x32fd   :  { %3953 = vsyncpa [#allocation4], 1 }
0x32fe   :  { %3954 = vsyncpa [#allocation6], 1 }

</bundles_post_ra>
